<compile_context>
chip_gen: v7x
topology: tpu7x:2x2x1
jax: 0.10.0
libtpu: 0.0.40
codegen_flags: <defaults>
</compile_context>

<pallas_src>
import functools
import math

import jax
import jax.numpy as jnp
from jax import lax
from jax.experimental import pallas as pl
from jax.experimental.pallas import tpu as pltpu  # noqa: F401  (TPU backend)


# ----------------------------------------------------------------------------
# The single fused Pallas kernel
# ----------------------------------------------------------------------------

def _sphgen_fused_kernel(*refs, arg_names, n_heads, train_weight):
    r = dict(zip(arg_names, refs[:-1]))
    out_ref = refs[-1]
    f32 = jnp.float32

    def dot(a, b):
        return jnp.dot(a, b, preferred_element_type=f32)

    rep = r["rep"][...]            # (HG, G)  row i -> one-hot of (i % G)
    rep_t = r["rep_t"][...]        # (G, HG)
    hmask = r["headmask"][...]     # (HG, H)  row i keeps lanes of head (i // G)
    H = hmask.shape[1]
    head_dim = H // n_heads
    scale = 1.0 / math.sqrt(float(head_dim))

    # ---- feat_net surrogate (see TODO at top of file) ----
    pos_feat = jnp.tanh(dot(r["pos"][...], r["pos_w"][...]) + r["pos_b"][...])
    node_feat = r["emb_z"][...] + pos_feat                       # (N, H)

    # ---- focus MLP + BCE loss (fused) ----
    h1 = jnp.maximum(dot(node_feat, r["focus_w1"][...]) + r["focus_b1"][...], 0.0)
    focus_score = jax.nn.sigmoid(dot(h1, r["focus_w2"][...]) + r["focus_b2"][...])  # (N,1)
    y = r["cannot_focus"][...]
    logp = jnp.maximum(jnp.log(focus_score), -100.0)             # torch BCELoss clamp
    log1mp = jnp.maximum(jnp.log(1.0 - focus_score), -100.0)
    focus_ce = jnp.sum(-(y * logp + (1.0 - y) * log1mp)) / float(y.size)

    # ---- node_emb = node_feat * emb[new_atom_type][batch] ----
    node_emb = node_feat * r["type_emb_node"][...]               # (N, H)

    # ---- gathers as one-hot selection matmuls (stay in VMEM) ----
    sels = r["sels"]                                             # (6, G, N)
    loc_node = dot(sels[0], node_feat)       # node_feat[focus[:,0]]
    loc_dist = dot(sels[0], node_emb)        # node_emb[focus[:,0]]
    e_c11 = dot(sels[1], node_emb)           # node_emb[c1_focus[:,1]]
    e_c10 = dot(sels[2], node_emb)           # node_emb[c1_focus[:,0]]
    e_c22 = dot(sels[3], node_emb)           # node_emb[c2_c1_focus[:,2]]
    e_c21 = dot(sels[4], node_emb)           # node_emb[c2_c1_focus[:,1]]
    e_c20 = dot(sels[5], node_emb)           # node_emb[c2_c1_focus[:,0]]

    masks = r["masks"]                                           # (3, HG, N)
    m_fd = masks[0]
    m_a = masks[1]
    m_t = masks[2]

    def attend(q_parts, kv, mask_big, name):
        # Batched-over-heads masked attention.  Heads are stacked along the
        # sublane axis (row i of the (HG, N) score tile is head i//G, query
        # i%G), so one mask/softmax pass covers every head, and the output
        # projection is a single K=H matmul of the concat-of-heads tile.
        wq = r[name + "_wq"]        # (P, H, H)   wq split per q-feature part
        wkvo = r[name + "_wkvo"]    # (3, H, H)   [wk, wv, wo]
        b = r[name + "_b"]          # (4, 1, H)   [bq, bk, bv, bo]
        qp = b[0]
        for i, part in enumerate(q_parts):                        # concat(q) @ Wq
            qp = qp + dot(part, wq[i])
        kp = dot(kv, wkvo[0]) + b[1]                              # (N, H)
        vp = dot(kv, wkvo[1]) + b[2]                              # (N, H)
        qs = dot(rep, qp) * hmask                                 # (HG, H)
        s = lax.dot_general(qs, kp, (((1,), (1,)), ((), ())),
                            preferred_element_type=f32) * scale   # (HG, N)
        s = jnp.where(mask_big > 0.5, s, -1e30)
        s = s - jnp.max(s, axis=-1, keepdims=True)
        p = jnp.exp(s)
        p = p / jnp.sum(p, axis=-1, keepdims=True)
        ctx = dot(p, vp) * hmask                                  # (HG, H)
        oh = dot(rep_t, ctx)                                      # (G, H) == concat(heads)
        return dot(oh, wkvo[2]) + b[3]

    g_node = attend([loc_node], node_feat, m_fd, "natt")
    g_dist = attend([loc_dist], node_emb, m_fd, "datt")
    g_angle = attend([e_c11, e_c10], node_emb, m_a, "aatt")
    g_tors = attend([e_c22, e_c21, e_c20], node_emb, m_t, "tatt")

    def flow_ll(x, parts, name, out_dim):
        # flow_forward over ST_Net_Exp layers, fused with the Gaussian LL:
        #   s,t from tanh-MLP(concat(parts)); x = (x + t) * exp(s)
        #   log_jacob += s  (exact: log|exp(s)| == s)
        #   return mean(0.5 * x^2 - log_jacob)
        w1 = r[name + "_w1"]    # (L, P, H, H)  w1 split per feature part
        b1 = r[name + "_b1"]    # (L, 1, H)
        w2 = r[name + "_w2"]    # (L, H, 2*out_dim)
        b2 = r[name + "_b2"]    # (L, 1, 2*out_dim)
        rs = r[name + "_rs"]    # (L, 1, 1)
        n_layers = w1.shape[0]
        log_jacob = jnp.zeros_like(x)
        for l in range(n_layers):
            acc = b1[l]
            for i, part in enumerate(parts):                      # concat(feat) @ w1
                acc = acc + dot(part, w1[l, i])
            h = jnp.tanh(acc)
            st = dot(h, w2[l]) + b2[l]
            s = jnp.exp(rs[l]) * jnp.tanh(st[:, :out_dim])
            t = st[:, out_dim:]
            x = (x + t) * jnp.exp(s)
            log_jacob = log_jacob + s
        return jnp.sum(0.5 * x * x - log_jacob) / float(x.size)

    dat = r["dat"]                                                # (3, G, 1)
    x_z = r["x_z"][...]
    ll_node = flow_ll(x_z, [loc_node, g_node], "nflow", x_z.shape[1])
    ll_dist = flow_ll(dat[0], [loc_dist, g_dist], "dflow", 1)
    ll_angle = flow_ll(dat[1], [e_c11, e_c10, g_angle], "aflow", 1)
    ll_torsion = flow_ll(dat[2], [e_c22, e_c21, e_c20, g_tors], "tflow", 1)

    total = (ll_node * train_weight["node"] + ll_dist * train_weight["dist"]
             + ll_angle * train_weight["angle"] + ll_torsion * train_weight["torsion"]
             + focus_ce * train_weight["focus"])

    # pack the 6 scalars into one lane-dense output row
    losses = (total, ll_node, focus_ce, ll_dist, ll_angle, ll_torsion)
    lane = lax.broadcasted_iota(jnp.int32, (1, 128), 1)
    row = jnp.zeros((1, 128), f32)
    for i, v in enumerate(losses):
        row = row + jnp.where(lane == i, v, 0.0)
    out_ref[...] = row


# ----------------------------------------------------------------------------
# Parameter init (deterministic, synthetic)
# ----------------------------------------------------------------------------

def init_params(key, num_node_types, H, num_flow_layers):
    keys = iter(jax.random.split(key, 64))

    def nrm(shape, scale=0.1):
        return scale * jax.random.normal(next(keys), shape, dtype=jnp.float32)

    def att_params(q_dim):
        return dict(wq=nrm((q_dim, H)), bq=jnp.zeros((1, H), jnp.float32),
                    wk=nrm((H, H)), bk=jnp.zeros((1, H), jnp.float32),
                    wv=nrm((H, H)), bv=jnp.zeros((1, H), jnp.float32),
                    wo=nrm((H, H)), bo=jnp.zeros((1, H), jnp.float32))

    def flow_params(in_dim, out_dim):
        L = num_flow_layers
        return dict(w1=nrm((L, in_dim, H)), b1=jnp.zeros((L, 1, H), jnp.float32),
                    w2=nrm((L, H, 2 * out_dim)),
                    b2=jnp.zeros((L, 1, 2 * out_dim), jnp.float32),
                    rescale=jnp.zeros((L, 1, 1), jnp.float32))

    return dict(
        emb=nrm((num_node_types, H), 1.0),          # feat_net.init_e.emb
        pos_w=nrm((8, H)), pos_b=jnp.zeros((1, H), jnp.float32),
        focus_w1=nrm((H, H)), focus_b1=jnp.zeros((1, H), jnp.float32),
        focus_w2=nrm((H, 1)), focus_b2=jnp.zeros((1, 1), jnp.float32),
        node_att=att_params(H),
        dist_att=att_params(H),
        angle_att=att_params(2 * H),
        torsion_att=att_params(3 * H),
        node_flow=flow_params(2 * H, num_node_types),
        dist_flow=flow_params(2 * H, 1),
        angle_flow=flow_params(3 * H, 1),
        torsion_flow=flow_params(4 * H, 1),
    )


# ----------------------------------------------------------------------------
# SphGen forward: JAX-side input prep + single fused pallas_call
# ----------------------------------------------------------------------------

def sphgen_forward(params, data, key, *, num_node_types, deq_coeff, train_weight,
                   n_att_heads):
    z, pos, batch = data["atom_type"], data["position"], data["batch"]
    N = z.shape[0]
    G = data["new_atom_type"].shape[0]
    H = params["emb"].shape[1]
    heads = n_att_heads
    hd = H // heads
    f32 = jnp.float32

    # embeddings / gathers of plain inputs (tiny, done once in JAX)
    emb_z = jnp.take(params["emb"], z, axis=0)                                # (N,H)
    node_type_emb = jnp.take(params["emb"], data["new_atom_type"], axis=0)    # (G,H)
    type_emb_node = jnp.take(node_type_emb, batch, axis=0)                    # (N,H)

    pos_p = jnp.pad(pos.astype(f32), ((0, 0), (0, 8 - pos.shape[1])))         # (N,8)

    x_z = (jax.nn.one_hot(data["new_atom_type"], num_node_types, dtype=f32)
           + deq_coeff * jax.random.uniform(key, (G, num_node_types), dtype=f32))

    focus0 = data["focus"][:, 0]
    c1, c2 = data["c1_focus"], data["c2_c1_focus"]
    sels = jnp.stack([
        jax.nn.one_hot(focus0, N, dtype=f32),
        jax.nn.one_hot(c1[:, 1], N, dtype=f32),
        jax.nn.one_hot(c1[:, 0], N, dtype=f32),
        jax.nn.one_hot(c2[:, 2], N, dtype=f32),
        jax.nn.one_hot(c2[:, 1], N, dtype=f32),
        jax.nn.one_hot(c2[:, 0], N, dtype=f32),
    ], axis=0)                                                                # (6,G,N)

    def att_mask(q_idx):
        qb = jnp.take(batch, q_idx, axis=0)
        m = (qb[:, None] == batch[None, :]).astype(f32)                       # (G,N)
        return jnp.tile(m, (heads, 1))                                        # (HG,N)

    masks = jnp.stack([att_mask(focus0), att_mask(c1[:, 0]), att_mask(c2[:, 0])], axis=0)

    dat = jnp.stack([data["new_dist"].astype(f32),
                     data["new_angle"].astype(f32),
                     data["new_torsion"].astype(f32)], axis=0)                # (3,G,1)

    # head-stacking helpers (constants)
    rep = jnp.tile(jnp.eye(G, dtype=f32), (heads, 1))                         # (HG,G)
    rep_t = rep.T                                                             # (G,HG)
    head_row = jnp.repeat(jnp.arange(heads), G)                               # (HG,)
    headmask = (head_row[:, None] == (jnp.arange(H) // hd)[None, :]).astype(f32)

    def pack_att(p, n_parts):
        return (p["wq"].reshape(n_parts, H, H),
                jnp.stack([p["wk"], p["wv"], p["wo"]], axis=0),
                jnp.stack([p["bq"], p["bk"], p["bv"], p["bo"]], axis=0))

    def pack_flow(p, n_parts):
        L = p["w1"].shape[0]
        return (p["w1"].reshape(L, n_parts, H, H), p["b1"], p["w2"], p["b2"], p["rescale"])

    arrays = {
        "emb_z": emb_z, "pos": pos_p, "type_emb_node": type_emb_node, "x_z": x_z,
        "sels": sels, "masks": masks, "dat": dat,
        "cannot_focus": data["cannot_focus"].astype(f32),
        "rep": rep, "rep_t": rep_t, "headmask": headmask,
        "pos_w": params["pos_w"], "pos_b": params["pos_b"],
        "focus_w1": params["focus_w1"], "focus_b1": params["focus_b1"],
        "focus_w2": params["focus_w2"], "focus_b2": params["focus_b2"],
    }
    for name, p, n_parts in (("natt", params["node_att"], 1),
                             ("datt", params["dist_att"], 1),
                             ("aatt", params["angle_att"], 2),
                             ("tatt", params["torsion_att"], 3)):
        wq, wkvo, b = pack_att(p, n_parts)
        arrays[name + "_wq"] = wq
        arrays[name + "_wkvo"] = wkvo
        arrays[name + "_b"] = b
    for name, p, n_parts in (("nflow", params["node_flow"], 2),
                             ("dflow", params["dist_flow"], 2),
                             ("aflow", params["angle_flow"], 3),
                             ("tflow", params["torsion_flow"], 4)):
        w1, b1, w2, b2, rs = pack_flow(p, n_parts)
        arrays[name + "_w1"] = w1
        arrays[name + "_b1"] = b1
        arrays[name + "_w2"] = w2
        arrays[name + "_b2"] = b2
        arrays[name + "_rs"] = rs

    arg_names = tuple(arrays.keys())
    kernel = functools.partial(_sphgen_fused_kernel, arg_names=arg_names,
                               n_heads=heads, train_weight=train_weight)

    # single gridless pallas_call: every operand (all tiny) lives in VMEM,
    # one lane-dense (1,128) row holds the 6 loss scalars.
    out = pl.pallas_call(
        kernel,
        out_shape=jax.ShapeDtypeStruct((1, 128), jnp.float32),
    )(*[arrays[k] for k in arg_names])

    total_loss = out[0, 0]
    ll_node = out[0, 1]
    focus_ce = out[0, 2]
    ll_dist = out[0, 3]
    ll_angle = out[0, 4]
    ll_torsion = out[0, 5]
    return total_loss, ll_node, focus_ce, ll_dist, ll_angle, ll_torsion


# ----------------------------------------------------------------------------
# Main
# ----------------------------------------------------------------------------

if __name__ == "__main__":
    H = 32                     # hidden_channels
    num_node_types = 4
    num_flow_layers = 2
    n_att_heads = 4
    deq_coeff = 0.9
    train_weight = dict(node=1.0, dist=1.0, angle=1.0, torsion=1.0, focus=1.0)

    key = jax.random.PRNGKey(0)
    k_param, k_data, k_noise = jax.random.split(key, 3)
    params = init_params(k_param, num_node_types, H, num_flow_layers)

    G, per_graph = 2, 4        # 2 graphs, 4 nodes each
    N = G * per_graph
    kz, kpos, knat, kdist, kang, ktor, kcf = jax.random.split(k_data, 7)
    data = dict(
        atom_type=jax.random.randint(kz, (N,), 0, num_node_types),
        position=jax.random.normal(kpos, (N, 3), dtype=jnp.float32),
        batch=jnp.repeat(jnp.arange(G, dtype=jnp.int32), per_graph),
        new_atom_type=jax.random.randint(knat, (G,), 0, num_node_types),
        focus=jnp.array([[1], [5]], dtype=jnp.int32),
        c1_focus=jnp.array([[2, 1], [6, 5]], dtype=jnp.int32),
        c2_c1_focus=jnp.array([[3, 2, 1], [7, 6, 5]], dtype=jnp.int32),
        new_dist=jnp.abs(jax.random.normal(kdist, (G, 1), dtype=jnp.float32)) + 1.0,
        new_angle=jax.random.uniform(kang, (G, 1), dtype=jnp.float32, maxval=3.14),
        new_torsion=jax.random.uniform(ktor, (G, 1), dtype=jnp.float32, maxval=3.14),
        cannot_focus=jax.random.bernoulli(kcf, 0.5, (N, 1)).astype(jnp.float32),
    )

    fwd = jax.jit(functools.partial(
        sphgen_forward, num_node_types=num_node_types, deq_coeff=deq_coeff,
        train_weight=train_weight, n_att_heads=n_att_heads))

    out = fwd(params, data, k_noise)
    out = jax.block_until_ready(out)
    assert bool(jnp.all(jnp.isfinite(jnp.stack(out)))), "non-finite loss"
    print("KERNEL_OK")
</pallas_src>

<mosaic_0001>
module attributes {stable_mosaic.version = 11 : i64} {
  func.func @_sphgen_fused_kernel(%arg0: memref<8x32xf32, #tpu.memory_space<vmem>>, %arg1: memref<8x8xf32, #tpu.memory_space<vmem>>, %arg2: memref<8x32xf32, #tpu.memory_space<vmem>>, %arg3: memref<2x4xf32, #tpu.memory_space<vmem>>, %arg4: memref<6x2x8xf32, #tpu.memory_space<vmem>>, %arg5: memref<3x8x8xf32, #tpu.memory_space<vmem>>, %arg6: memref<3x2x1xf32, #tpu.memory_space<vmem>>, %arg7: memref<8x1xf32, #tpu.memory_space<vmem>>, %arg8: memref<8x2xf32, #tpu.memory_space<vmem>>, %arg9: memref<2x8xf32, #tpu.memory_space<vmem>>, %arg10: memref<8x32xf32, #tpu.memory_space<vmem>>, %arg11: memref<8x32xf32, #tpu.memory_space<vmem>>, %arg12: memref<1x32xf32, #tpu.memory_space<vmem>>, %arg13: memref<32x32xf32, #tpu.memory_space<vmem>>, %arg14: memref<1x32xf32, #tpu.memory_space<vmem>>, %arg15: memref<32x1xf32, #tpu.memory_space<vmem>>, %arg16: memref<1x1xf32, #tpu.memory_space<vmem>>, %arg17: memref<1x32x32xf32, #tpu.memory_space<vmem>>, %arg18: memref<3x32x32xf32, #tpu.memory_space<vmem>>, %arg19: memref<4x1x32xf32, #tpu.memory_space<vmem>>, %arg20: memref<1x32x32xf32, #tpu.memory_space<vmem>>, %arg21: memref<3x32x32xf32, #tpu.memory_space<vmem>>, %arg22: memref<4x1x32xf32, #tpu.memory_space<vmem>>, %arg23: memref<2x32x32xf32, #tpu.memory_space<vmem>>, %arg24: memref<3x32x32xf32, #tpu.memory_space<vmem>>, %arg25: memref<4x1x32xf32, #tpu.memory_space<vmem>>, %arg26: memref<3x32x32xf32, #tpu.memory_space<vmem>>, %arg27: memref<3x32x32xf32, #tpu.memory_space<vmem>>, %arg28: memref<4x1x32xf32, #tpu.memory_space<vmem>>, %arg29: memref<2x2x32x32xf32, #tpu.memory_space<vmem>>, %arg30: memref<2x1x32xf32, #tpu.memory_space<vmem>>, %arg31: memref<2x32x8xf32, #tpu.memory_space<vmem>>, %arg32: memref<2x1x8xf32, #tpu.memory_space<vmem>>, %arg33: memref<2x1x1xf32, #tpu.memory_space<vmem>>, %arg34: memref<2x2x32x32xf32, #tpu.memory_space<vmem>>, %arg35: memref<2x1x32xf32, #tpu.memory_space<vmem>>, %arg36: memref<2x32x2xf32, #tpu.memory_space<vmem>>, %arg37: memref<2x1x2xf32, #tpu.memory_space<vmem>>, %arg38: memref<2x1x1xf32, #tpu.memory_space<vmem>>, %arg39: memref<2x3x32x32xf32, #tpu.memory_space<vmem>>, %arg40: memref<2x1x32xf32, #tpu.memory_space<vmem>>, %arg41: memref<2x32x2xf32, #tpu.memory_space<vmem>>, %arg42: memref<2x1x2xf32, #tpu.memory_space<vmem>>, %arg43: memref<2x1x1xf32, #tpu.memory_space<vmem>>, %arg44: memref<2x4x32x32xf32, #tpu.memory_space<vmem>>, %arg45: memref<2x1x32xf32, #tpu.memory_space<vmem>>, %arg46: memref<2x32x2xf32, #tpu.memory_space<vmem>>, %arg47: memref<2x1x2xf32, #tpu.memory_space<vmem>>, %arg48: memref<2x1x1xf32, #tpu.memory_space<vmem>>, %arg49: memref<1x128xf32, #tpu.memory_space<vmem>>) attributes {dimension_semantics = [], scalar_prefetch = 0 : i64, scratch_operands = 0 : i64, tpu.core_type = #tpu.core_type<tc>} {
    %c0 = arith.constant 0 : index
    %c0_0 = arith.constant 0 : index
    %0 = vector.load %arg8[%c0, %c0_0] : memref<8x2xf32, #tpu.memory_space<vmem>>, vector<8x2xf32>
    %c0_1 = arith.constant 0 : index
    %c0_2 = arith.constant 0 : index
    %1 = vector.load %arg9[%c0_1, %c0_2] : memref<2x8xf32, #tpu.memory_space<vmem>>, vector<2x8xf32>
    %c0_3 = arith.constant 0 : index
    %c0_4 = arith.constant 0 : index
    %2 = vector.load %arg10[%c0_3, %c0_4] : memref<8x32xf32, #tpu.memory_space<vmem>>, vector<8x32xf32>
    %c0_5 = arith.constant 0 : index
    %c0_6 = arith.constant 0 : index
    %3 = vector.load %arg1[%c0_5, %c0_6] : memref<8x8xf32, #tpu.memory_space<vmem>>, vector<8x8xf32>
    %c0_7 = arith.constant 0 : index
    %c0_8 = arith.constant 0 : index
    %4 = vector.load %arg11[%c0_7, %c0_8] : memref<8x32xf32, #tpu.memory_space<vmem>>, vector<8x32xf32>
    %cst = arith.constant dense<0.000000e+00> : vector<8x32xf32>
    %5 = tpu.matmul %3, %4, %cst {dimension_numbers = #tpu.dot_dimension_numbers<[1], [0], [0], [1], [0, 0, 1, 1], [], []>} : vector<8x8xf32>, vector<8x32xf32>, vector<8x32xf32> -> vector<8x32xf32>
    %c0_9 = arith.constant 0 : index
    %c0_10 = arith.constant 0 : index
    %6 = vector.load %arg12[%c0_9, %c0_10] : memref<1x32xf32, #tpu.memory_space<vmem>>, vector<1x32xf32>
    %7 = vector.broadcast %6 : vector<1x32xf32> to vector<8x32xf32>
    %8 = arith.addf %5, %7 : vector<8x32xf32>
    %9 = math.tanh %8 : vector<8x32xf32>
    %c0_11 = arith.constant 0 : index
    %c0_12 = arith.constant 0 : index
    %10 = vector.load %arg0[%c0_11, %c0_12] : memref<8x32xf32, #tpu.memory_space<vmem>>, vector<8x32xf32>
    %11 = arith.addf %10, %9 : vector<8x32xf32>
    %c0_13 = arith.constant 0 : index
    %c0_14 = arith.constant 0 : index
    %12 = vector.load %arg13[%c0_13, %c0_14] : memref<32x32xf32, #tpu.memory_space<vmem>>, vector<32x32xf32>
    %cst_15 = arith.constant dense<0.000000e+00> : vector<8x32xf32>
    %13 = tpu.matmul %11, %12, %cst_15 {dimension_numbers = #tpu.dot_dimension_numbers<[1], [0], [0], [1], [0, 0, 1, 1], [], []>} : vector<8x32xf32>, vector<32x32xf32>, vector<8x32xf32> -> vector<8x32xf32>
    %c0_16 = arith.constant 0 : index
    %c0_17 = arith.constant 0 : index
    %14 = vector.load %arg14[%c0_16, %c0_17] : memref<1x32xf32, #tpu.memory_space<vmem>>, vector<1x32xf32>
    %15 = vector.broadcast %14 : vector<1x32xf32> to vector<8x32xf32>
    %16 = arith.addf %13, %15 : vector<8x32xf32>
    %cst_18 = arith.constant 0.000000e+00 : f32
    %17 = vector.broadcast %cst_18 : f32 to vector<8x32xf32>
    %18 = arith.maximumf %16, %17 : vector<8x32xf32>
    %c0_19 = arith.constant 0 : index
    %c0_20 = arith.constant 0 : index
    %19 = vector.load %arg15[%c0_19, %c0_20] : memref<32x1xf32, #tpu.memory_space<vmem>>, vector<32x1xf32>
    %cst_21 = arith.constant dense<0.000000e+00> : vector<8x1xf32>
    %20 = tpu.matmul %18, %19, %cst_21 {dimension_numbers = #tpu.dot_dimension_numbers<[1], [0], [0], [1], [0, 0, 1, 1], [], []>} : vector<8x32xf32>, vector<32x1xf32>, vector<8x1xf32> -> vector<8x1xf32>
    %c0_22 = arith.constant 0 : index
    %c0_23 = arith.constant 0 : index
    %21 = vector.load %arg16[%c0_22, %c0_23] : memref<1x1xf32, #tpu.memory_space<vmem>>, vector<1x1xf32>
    %22 = vector.broadcast %21 : vector<1x1xf32> to vector<8x1xf32>
    %23 = arith.addf %20, %22 : vector<8x1xf32>
    %24 = arith.negf %23 : vector<8x1xf32>
    %25 = math.exp %24 : vector<8x1xf32>
    %cst_24 = arith.constant 1.000000e+00 : f32
    %26 = vector.broadcast %cst_24 : f32 to vector<8x1xf32>
    %27 = arith.addf %26, %25 : vector<8x1xf32>
    %28 = arith.divf %26, %27 : vector<8x1xf32>
    %c0_25 = arith.constant 0 : index
    %c0_26 = arith.constant 0 : index
    %29 = vector.load %arg7[%c0_25, %c0_26] : memref<8x1xf32, #tpu.memory_space<vmem>>, vector<8x1xf32>
    %30 = math.log %28 : vector<8x1xf32>
    %cst_27 = arith.constant -1.000000e+02 : f32
    %31 = vector.broadcast %cst_27 : f32 to vector<8x1xf32>
    %32 = arith.maximumf %30, %31 : vector<8x1xf32>
    %cst_28 = arith.constant 1.000000e+00 : f32
    %33 = vector.broadcast %cst_28 : f32 to vector<8x1xf32>
    %34 = arith.subf %33, %28 : vector<8x1xf32>
    %35 = math.log %34 : vector<8x1xf32>
    %cst_29 = arith.constant -1.000000e+02 : f32
    %36 = vector.broadcast %cst_29 : f32 to vector<8x1xf32>
    %37 = arith.maximumf %35, %36 : vector<8x1xf32>
    %38 = arith.mulf %29, %32 : vector<8x1xf32>
    %cst_30 = arith.constant 1.000000e+00 : f32
    %39 = vector.broadcast %cst_30 : f32 to vector<8x1xf32>
    %40 = arith.subf %39, %29 : vector<8x1xf32>
    %41 = arith.mulf %40, %37 : vector<8x1xf32>
    %42 = arith.addf %38, %41 : vector<8x1xf32>
    %cst_31 = arith.constant 0.000000e+00 : f32
    %43 = vector.broadcast %cst_31 : f32 to vector<8x1xf32>
    %44 = arith.subf %43, %42 : vector<8x1xf32>
    %45 = vector.shape_cast %44 : vector<8x1xf32> to vector<1x8x1xf32>
    %cst_32 = arith.constant dense<0.000000e+00> : vector<1xf32>
    %46 = vector.multi_reduction <add>, %45, %cst_32 [1, 2] : vector<1x8x1xf32> to vector<1xf32>
    %47 = vector.shape_cast %46 : vector<1xf32> to vector<1x1x1xf32>
    %48 = vector.extract %47[0, 0, 0] : f32 from vector<1x1x1xf32>
    %cst_33 = arith.constant 8.000000e+00 : f32
    %49 = arith.divf %48, %cst_33 : f32
    %c0_34 = arith.constant 0 : index
    %c0_35 = arith.constant 0 : index
    %50 = vector.load %arg2[%c0_34, %c0_35] : memref<8x32xf32, #tpu.memory_space<vmem>>, vector<8x32xf32>
    %51 = arith.mulf %11, %50 : vector<8x32xf32>
    %c0_36 = arith.constant 0 : index
    %c0_37 = arith.constant 0 : index
    %c0_38 = arith.constant 0 : index
    %52 = vector.load %arg4[%c0_36, %c0_37, %c0_38] : memref<6x2x8xf32, #tpu.memory_space<vmem>>, vector<1x2x8xf32>
    %53 = vector.shape_cast %52 : vector<1x2x8xf32> to vector<2x8xf32>
    %cst_39 = arith.constant dense<0.000000e+00> : vector<2x32xf32>
    %54 = tpu.matmul %53, %11, %cst_39 {dimension_numbers = #tpu.dot_dimension_numbers<[1], [0], [0], [1], [0, 0, 1, 1], [], []>} : vector<2x8xf32>, vector<8x32xf32>, vector<2x32xf32> -> vector<2x32xf32>
    %c0_40 = arith.constant 0 : index
    %c0_41 = arith.constant 0 : index
    %c0_42 = arith.constant 0 : index
    %55 = vector.load %arg4[%c0_40, %c0_41, %c0_42] : memref<6x2x8xf32, #tpu.memory_space<vmem>>, vector<1x2x8xf32>
    %56 = vector.shape_cast %55 : vector<1x2x8xf32> to vector<2x8xf32>
    %cst_43 = arith.constant dense<0.000000e+00> : vector<2x32xf32>
    %57 = tpu.matmul %56, %51, %cst_43 {dimension_numbers = #tpu.dot_dimension_numbers<[1], [0], [0], [1], [0, 0, 1, 1], [], []>} : vector<2x8xf32>, vector<8x32xf32>, vector<2x32xf32> -> vector<2x32xf32>
    %c1 = arith.constant 1 : index
    %c0_44 = arith.constant 0 : index
    %c0_45 = arith.constant 0 : index
    %58 = vector.load %arg4[%c1, %c0_44, %c0_45] : memref<6x2x8xf32, #tpu.memory_space<vmem>>, vector<1x2x8xf32>
    %59 = vector.shape_cast %58 : vector<1x2x8xf32> to vector<2x8xf32>
    %cst_46 = arith.constant dense<0.000000e+00> : vector<2x32xf32>
    %60 = tpu.matmul %59, %51, %cst_46 {dimension_numbers = #tpu.dot_dimension_numbers<[1], [0], [0], [1], [0, 0, 1, 1], [], []>} : vector<2x8xf32>, vector<8x32xf32>, vector<2x32xf32> -> vector<2x32xf32>
    %c2 = arith.constant 2 : index
    %c0_47 = arith.constant 0 : index
    %c0_48 = arith.constant 0 : index
    %61 = vector.load %arg4[%c2, %c0_47, %c0_48] : memref<6x2x8xf32, #tpu.memory_space<vmem>>, vector<1x2x8xf32>
    %62 = vector.shape_cast %61 : vector<1x2x8xf32> to vector<2x8xf32>
    %cst_49 = arith.constant dense<0.000000e+00> : vector<2x32xf32>
    %63 = tpu.matmul %62, %51, %cst_49 {dimension_numbers = #tpu.dot_dimension_numbers<[1], [0], [0], [1], [0, 0, 1, 1], [], []>} : vector<2x8xf32>, vector<8x32xf32>, vector<2x32xf32> -> vector<2x32xf32>
    %c3 = arith.constant 3 : index
    %c0_50 = arith.constant 0 : index
    %c0_51 = arith.constant 0 : index
    %64 = vector.load %arg4[%c3, %c0_50, %c0_51] : memref<6x2x8xf32, #tpu.memory_space<vmem>>, vector<1x2x8xf32>
    %65 = vector.shape_cast %64 : vector<1x2x8xf32> to vector<2x8xf32>
    %cst_52 = arith.constant dense<0.000000e+00> : vector<2x32xf32>
    %66 = tpu.matmul %65, %51, %cst_52 {dimension_numbers = #tpu.dot_dimension_numbers<[1], [0], [0], [1], [0, 0, 1, 1], [], []>} : vector<2x8xf32>, vector<8x32xf32>, vector<2x32xf32> -> vector<2x32xf32>
    %c4 = arith.constant 4 : index
    %c0_53 = arith.constant 0 : index
    %c0_54 = arith.constant 0 : index
    %67 = vector.load %arg4[%c4, %c0_53, %c0_54] : memref<6x2x8xf32, #tpu.memory_space<vmem>>, vector<1x2x8xf32>
    %68 = vector.shape_cast %67 : vector<1x2x8xf32> to vector<2x8xf32>
    %cst_55 = arith.constant dense<0.000000e+00> : vector<2x32xf32>
    %69 = tpu.matmul %68, %51, %cst_55 {dimension_numbers = #tpu.dot_dimension_numbers<[1], [0], [0], [1], [0, 0, 1, 1], [], []>} : vector<2x8xf32>, vector<8x32xf32>, vector<2x32xf32> -> vector<2x32xf32>
    %c5 = arith.constant 5 : index
    %c0_56 = arith.constant 0 : index
    %c0_57 = arith.constant 0 : index
    %70 = vector.load %arg4[%c5, %c0_56, %c0_57] : memref<6x2x8xf32, #tpu.memory_space<vmem>>, vector<1x2x8xf32>
    %71 = vector.shape_cast %70 : vector<1x2x8xf32> to vector<2x8xf32>
    %cst_58 = arith.constant dense<0.000000e+00> : vector<2x32xf32>
    %72 = tpu.matmul %71, %51, %cst_58 {dimension_numbers = #tpu.dot_dimension_numbers<[1], [0], [0], [1], [0, 0, 1, 1], [], []>} : vector<2x8xf32>, vector<8x32xf32>, vector<2x32xf32> -> vector<2x32xf32>
    %c0_59 = arith.constant 0 : index
    %c0_60 = arith.constant 0 : index
    %c0_61 = arith.constant 0 : index
    %73 = vector.load %arg5[%c0_59, %c0_60, %c0_61] : memref<3x8x8xf32, #tpu.memory_space<vmem>>, vector<1x8x8xf32>
    %74 = vector.shape_cast %73 : vector<1x8x8xf32> to vector<8x8xf32>
    %c1_62 = arith.constant 1 : index
    %c0_63 = arith.constant 0 : index
    %c0_64 = arith.constant 0 : index
    %75 = vector.load %arg5[%c1_62, %c0_63, %c0_64] : memref<3x8x8xf32, #tpu.memory_space<vmem>>, vector<1x8x8xf32>
    %76 = vector.shape_cast %75 : vector<1x8x8xf32> to vector<8x8xf32>
    %c2_65 = arith.constant 2 : index
    %c0_66 = arith.constant 0 : index
    %c0_67 = arith.constant 0 : index
    %77 = vector.load %arg5[%c2_65, %c0_66, %c0_67] : memref<3x8x8xf32, #tpu.memory_space<vmem>>, vector<1x8x8xf32>
    %78 = vector.shape_cast %77 : vector<1x8x8xf32> to vector<8x8xf32>
    %c0_68 = arith.constant 0 : index
    %c0_69 = arith.constant 0 : index
    %c0_70 = arith.constant 0 : index
    %79 = vector.load %arg19[%c0_68, %c0_69, %c0_70] : memref<4x1x32xf32, #tpu.memory_space<vmem>>, vector<1x1x32xf32>
    %80 = vector.shape_cast %79 : vector<1x1x32xf32> to vector<1x32xf32>
    %c0_71 = arith.constant 0 : index
    %c0_72 = arith.constant 0 : index
    %c0_73 = arith.constant 0 : index
    %81 = vector.load %arg17[%c0_71, %c0_72, %c0_73] : memref<1x32x32xf32, #tpu.memory_space<vmem>>, vector<1x32x32xf32>
    %82 = vector.shape_cast %81 : vector<1x32x32xf32> to vector<32x32xf32>
    %cst_74 = arith.constant dense<0.000000e+00> : vector<2x32xf32>
    %83 = tpu.matmul %54, %82, %cst_74 {dimension_numbers = #tpu.dot_dimension_numbers<[1], [0], [0], [1], [0, 0, 1, 1], [], []>} : vector<2x32xf32>, vector<32x32xf32>, vector<2x32xf32> -> vector<2x32xf32>
    %84 = vector.broadcast %80 : vector<1x32xf32> to vector<2x32xf32>
    %85 = arith.addf %84, %83 : vector<2x32xf32>
    %c0_75 = arith.constant 0 : index
    %c0_76 = arith.constant 0 : index
    %c0_77 = arith.constant 0 : index
    %86 = vector.load %arg18[%c0_75, %c0_76, %c0_77] : memref<3x32x32xf32, #tpu.memory_space<vmem>>, vector<1x32x32xf32>
    %87 = vector.shape_cast %86 : vector<1x32x32xf32> to vector<32x32xf32>
    %cst_78 = arith.constant dense<0.000000e+00> : vector<8x32xf32>
    %88 = tpu.matmul %11, %87, %cst_78 {dimension_numbers = #tpu.dot_dimension_numbers<[1], [0], [0], [1], [0, 0, 1, 1], [], []>} : vector<8x32xf32>, vector<32x32xf32>, vector<8x32xf32> -> vector<8x32xf32>
    %c1_79 = arith.constant 1 : index
    %c0_80 = arith.constant 0 : index
    %c0_81 = arith.constant 0 : index
    %89 = vector.load %arg19[%c1_79, %c0_80, %c0_81] : memref<4x1x32xf32, #tpu.memory_space<vmem>>, vector<1x1x32xf32>
    %90 = vector.shape_cast %89 : vector<1x1x32xf32> to vector<1x32xf32>
    %91 = vector.broadcast %90 : vector<1x32xf32> to vector<8x32xf32>
    %92 = arith.addf %88, %91 : vector<8x32xf32>
    %c1_82 = arith.constant 1 : index
    %c0_83 = arith.constant 0 : index
    %c0_84 = arith.constant 0 : index
    %93 = vector.load %arg18[%c1_82, %c0_83, %c0_84] : memref<3x32x32xf32, #tpu.memory_space<vmem>>, vector<1x32x32xf32>
    %94 = vector.shape_cast %93 : vector<1x32x32xf32> to vector<32x32xf32>
    %cst_85 = arith.constant dense<0.000000e+00> : vector<8x32xf32>
    %95 = tpu.matmul %11, %94, %cst_85 {dimension_numbers = #tpu.dot_dimension_numbers<[1], [0], [0], [1], [0, 0, 1, 1], [], []>} : vector<8x32xf32>, vector<32x32xf32>, vector<8x32xf32> -> vector<8x32xf32>
    %c2_86 = arith.constant 2 : index
    %c0_87 = arith.constant 0 : index
    %c0_88 = arith.constant 0 : index
    %96 = vector.load %arg19[%c2_86, %c0_87, %c0_88] : memref<4x1x32xf32, #tpu.memory_space<vmem>>, vector<1x1x32xf32>
    %97 = vector.shape_cast %96 : vector<1x1x32xf32> to vector<1x32xf32>
    %98 = vector.broadcast %97 : vector<1x32xf32> to vector<8x32xf32>
    %99 = arith.addf %95, %98 : vector<8x32xf32>
    %cst_89 = arith.constant dense<0.000000e+00> : vector<8x32xf32>
    %100 = tpu.matmul %0, %85, %cst_89 {dimension_numbers = #tpu.dot_dimension_numbers<[1], [0], [0], [1], [0, 0, 1, 1], [], []>} : vector<8x2xf32>, vector<2x32xf32>, vector<8x32xf32> -> vector<8x32xf32>
    %101 = arith.mulf %100, %2 : vector<8x32xf32>
    %cst_90 = arith.constant dense<0.000000e+00> : vector<8x8xf32>
    %102 = tpu.matmul %101, %92, %cst_90 {dimension_numbers = #tpu.dot_dimension_numbers<[1], [1], [0], [0], [0, 0, 1, 0], [], []>} : vector<8x32xf32>, vector<8x32xf32>, vector<8x8xf32> -> vector<8x8xf32>
    %cst_91 = arith.constant 0.353553385 : f32
    %103 = vector.broadcast %cst_91 : f32 to vector<8x8xf32>
    %104 = arith.mulf %102, %103 : vector<8x8xf32>
    %cst_92 = arith.constant 5.000000e-01 : f32
    %105 = vector.broadcast %cst_92 : f32 to vector<8x8xf32>
    %106 = arith.cmpf ogt, %74, %105 : vector<8x8xf32>
    %cst_93 = arith.constant -1.000000e+30 : f32
    %107 = vector.broadcast %cst_93 : f32 to vector<8x8xf32>
    %108 = arith.select %106, %104, %107 : vector<8x8xi1>, vector<8x8xf32>
    %cst_94 = arith.constant dense<0xFF800000> : vector<8xf32>
    %109 = vector.multi_reduction <maximumf>, %108, %cst_94 [1] : vector<8x8xf32> to vector<8xf32>
    %110 = vector.shape_cast %109 : vector<8xf32> to vector<8x1xf32>
    %111 = vector.broadcast %110 : vector<8x1xf32> to vector<8x8xf32>
    %112 = arith.subf %108, %111 : vector<8x8xf32>
    %113 = math.exp %112 : vector<8x8xf32>
    %cst_95 = arith.constant dense<0.000000e+00> : vector<8xf32>
    %114 = vector.multi_reduction <add>, %113, %cst_95 [1] : vector<8x8xf32> to vector<8xf32>
    %115 = vector.shape_cast %114 : vector<8xf32> to vector<8x1xf32>
    %116 = vector.broadcast %115 : vector<8x1xf32> to vector<8x8xf32>
    %117 = arith.divf %113, %116 : vector<8x8xf32>
    %cst_96 = arith.constant dense<0.000000e+00> : vector<8x32xf32>
    %118 = tpu.matmul %117, %99, %cst_96 {dimension_numbers = #tpu.dot_dimension_numbers<[1], [0], [0], [1], [0, 0, 1, 1], [], []>} : vector<8x8xf32>, vector<8x32xf32>, vector<8x32xf32> -> vector<8x32xf32>
    %119 = arith.mulf %118, %2 : vector<8x32xf32>
    %cst_97 = arith.constant dense<0.000000e+00> : vector<2x32xf32>
    %120 = tpu.matmul %1, %119, %cst_97 {dimension_numbers = #tpu.dot_dimension_numbers<[1], [0], [0], [1], [0, 0, 1, 1], [], []>} : vector<2x8xf32>, vector<8x32xf32>, vector<2x32xf32> -> vector<2x32xf32>
    %c2_98 = arith.constant 2 : index
    %c0_99 = arith.constant 0 : index
    %c0_100 = arith.constant 0 : index
    %121 = vector.load %arg18[%c2_98, %c0_99, %c0_100] : memref<3x32x32xf32, #tpu.memory_space<vmem>>, vector<1x32x32xf32>
    %122 = vector.shape_cast %121 : vector<1x32x32xf32> to vector<32x32xf32>
    %cst_101 = arith.constant dense<0.000000e+00> : vector<2x32xf32>
    %123 = tpu.matmul %120, %122, %cst_101 {dimension_numbers = #tpu.dot_dimension_numbers<[1], [0], [0], [1], [0, 0, 1, 1], [], []>} : vector<2x32xf32>, vector<32x32xf32>, vector<2x32xf32> -> vector<2x32xf32>
    %c3_102 = arith.constant 3 : index
    %c0_103 = arith.constant 0 : index
    %c0_104 = arith.constant 0 : index
    %124 = vector.load %arg19[%c3_102, %c0_103, %c0_104] : memref<4x1x32xf32, #tpu.memory_space<vmem>>, vector<1x1x32xf32>
    %125 = vector.shape_cast %124 : vector<1x1x32xf32> to vector<1x32xf32>
    %126 = vector.broadcast %125 : vector<1x32xf32> to vector<2x32xf32>
    %127 = arith.addf %123, %126 : vector<2x32xf32>
    %c0_105 = arith.constant 0 : index
    %c0_106 = arith.constant 0 : index
    %c0_107 = arith.constant 0 : index
    %128 = vector.load %arg22[%c0_105, %c0_106, %c0_107] : memref<4x1x32xf32, #tpu.memory_space<vmem>>, vector<1x1x32xf32>
    %129 = vector.shape_cast %128 : vector<1x1x32xf32> to vector<1x32xf32>
    %c0_108 = arith.constant 0 : index
    %c0_109 = arith.constant 0 : index
    %c0_110 = arith.constant 0 : index
    %130 = vector.load %arg20[%c0_108, %c0_109, %c0_110] : memref<1x32x32xf32, #tpu.memory_space<vmem>>, vector<1x32x32xf32>
    %131 = vector.shape_cast %130 : vector<1x32x32xf32> to vector<32x32xf32>
    %cst_111 = arith.constant dense<0.000000e+00> : vector<2x32xf32>
    %132 = tpu.matmul %57, %131, %cst_111 {dimension_numbers = #tpu.dot_dimension_numbers<[1], [0], [0], [1], [0, 0, 1, 1], [], []>} : vector<2x32xf32>, vector<32x32xf32>, vector<2x32xf32> -> vector<2x32xf32>
    %133 = vector.broadcast %129 : vector<1x32xf32> to vector<2x32xf32>
    %134 = arith.addf %133, %132 : vector<2x32xf32>
    %c0_112 = arith.constant 0 : index
    %c0_113 = arith.constant 0 : index
    %c0_114 = arith.constant 0 : index
    %135 = vector.load %arg21[%c0_112, %c0_113, %c0_114] : memref<3x32x32xf32, #tpu.memory_space<vmem>>, vector<1x32x32xf32>
    %136 = vector.shape_cast %135 : vector<1x32x32xf32> to vector<32x32xf32>
    %cst_115 = arith.constant dense<0.000000e+00> : vector<8x32xf32>
    %137 = tpu.matmul %51, %136, %cst_115 {dimension_numbers = #tpu.dot_dimension_numbers<[1], [0], [0], [1], [0, 0, 1, 1], [], []>} : vector<8x32xf32>, vector<32x32xf32>, vector<8x32xf32> -> vector<8x32xf32>
    %c1_116 = arith.constant 1 : index
    %c0_117 = arith.constant 0 : index
    %c0_118 = arith.constant 0 : index
    %138 = vector.load %arg22[%c1_116, %c0_117, %c0_118] : memref<4x1x32xf32, #tpu.memory_space<vmem>>, vector<1x1x32xf32>
    %139 = vector.shape_cast %138 : vector<1x1x32xf32> to vector<1x32xf32>
    %140 = vector.broadcast %139 : vector<1x32xf32> to vector<8x32xf32>
    %141 = arith.addf %137, %140 : vector<8x32xf32>
    %c1_119 = arith.constant 1 : index
    %c0_120 = arith.constant 0 : index
    %c0_121 = arith.constant 0 : index
    %142 = vector.load %arg21[%c1_119, %c0_120, %c0_121] : memref<3x32x32xf32, #tpu.memory_space<vmem>>, vector<1x32x32xf32>
    %143 = vector.shape_cast %142 : vector<1x32x32xf32> to vector<32x32xf32>
    %cst_122 = arith.constant dense<0.000000e+00> : vector<8x32xf32>
    %144 = tpu.matmul %51, %143, %cst_122 {dimension_numbers = #tpu.dot_dimension_numbers<[1], [0], [0], [1], [0, 0, 1, 1], [], []>} : vector<8x32xf32>, vector<32x32xf32>, vector<8x32xf32> -> vector<8x32xf32>
    %c2_123 = arith.constant 2 : index
    %c0_124 = arith.constant 0 : index
    %c0_125 = arith.constant 0 : index
    %145 = vector.load %arg22[%c2_123, %c0_124, %c0_125] : memref<4x1x32xf32, #tpu.memory_space<vmem>>, vector<1x1x32xf32>
    %146 = vector.shape_cast %145 : vector<1x1x32xf32> to vector<1x32xf32>
    %147 = vector.broadcast %146 : vector<1x32xf32> to vector<8x32xf32>
    %148 = arith.addf %144, %147 : vector<8x32xf32>
    %cst_126 = arith.constant dense<0.000000e+00> : vector<8x32xf32>
    %149 = tpu.matmul %0, %134, %cst_126 {dimension_numbers = #tpu.dot_dimension_numbers<[1], [0], [0], [1], [0, 0, 1, 1], [], []>} : vector<8x2xf32>, vector<2x32xf32>, vector<8x32xf32> -> vector<8x32xf32>
    %150 = arith.mulf %149, %2 : vector<8x32xf32>
    %cst_127 = arith.constant dense<0.000000e+00> : vector<8x8xf32>
    %151 = tpu.matmul %150, %141, %cst_127 {dimension_numbers = #tpu.dot_dimension_numbers<[1], [1], [0], [0], [0, 0, 1, 0], [], []>} : vector<8x32xf32>, vector<8x32xf32>, vector<8x8xf32> -> vector<8x8xf32>
    %cst_128 = arith.constant 0.353553385 : f32
    %152 = vector.broadcast %cst_128 : f32 to vector<8x8xf32>
    %153 = arith.mulf %151, %152 : vector<8x8xf32>
    %cst_129 = arith.constant 5.000000e-01 : f32
    %154 = vector.broadcast %cst_129 : f32 to vector<8x8xf32>
    %155 = arith.cmpf ogt, %74, %154 : vector<8x8xf32>
    %cst_130 = arith.constant -1.000000e+30 : f32
    %156 = vector.broadcast %cst_130 : f32 to vector<8x8xf32>
    %157 = arith.select %155, %153, %156 : vector<8x8xi1>, vector<8x8xf32>
    %cst_131 = arith.constant dense<0xFF800000> : vector<8xf32>
    %158 = vector.multi_reduction <maximumf>, %157, %cst_131 [1] : vector<8x8xf32> to vector<8xf32>
    %159 = vector.shape_cast %158 : vector<8xf32> to vector<8x1xf32>
    %160 = vector.broadcast %159 : vector<8x1xf32> to vector<8x8xf32>
    %161 = arith.subf %157, %160 : vector<8x8xf32>
    %162 = math.exp %161 : vector<8x8xf32>
    %cst_132 = arith.constant dense<0.000000e+00> : vector<8xf32>
    %163 = vector.multi_reduction <add>, %162, %cst_132 [1] : vector<8x8xf32> to vector<8xf32>
    %164 = vector.shape_cast %163 : vector<8xf32> to vector<8x1xf32>
    %165 = vector.broadcast %164 : vector<8x1xf32> to vector<8x8xf32>
    %166 = arith.divf %162, %165 : vector<8x8xf32>
    %cst_133 = arith.constant dense<0.000000e+00> : vector<8x32xf32>
    %167 = tpu.matmul %166, %148, %cst_133 {dimension_numbers = #tpu.dot_dimension_numbers<[1], [0], [0], [1], [0, 0, 1, 1], [], []>} : vector<8x8xf32>, vector<8x32xf32>, vector<8x32xf32> -> vector<8x32xf32>
    %168 = arith.mulf %167, %2 : vector<8x32xf32>
    %cst_134 = arith.constant dense<0.000000e+00> : vector<2x32xf32>
    %169 = tpu.matmul %1, %168, %cst_134 {dimension_numbers = #tpu.dot_dimension_numbers<[1], [0], [0], [1], [0, 0, 1, 1], [], []>} : vector<2x8xf32>, vector<8x32xf32>, vector<2x32xf32> -> vector<2x32xf32>
    %c2_135 = arith.constant 2 : index
    %c0_136 = arith.constant 0 : index
    %c0_137 = arith.constant 0 : index
    %170 = vector.load %arg21[%c2_135, %c0_136, %c0_137] : memref<3x32x32xf32, #tpu.memory_space<vmem>>, vector<1x32x32xf32>
    %171 = vector.shape_cast %170 : vector<1x32x32xf32> to vector<32x32xf32>
    %cst_138 = arith.constant dense<0.000000e+00> : vector<2x32xf32>
    %172 = tpu.matmul %169, %171, %cst_138 {dimension_numbers = #tpu.dot_dimension_numbers<[1], [0], [0], [1], [0, 0, 1, 1], [], []>} : vector<2x32xf32>, vector<32x32xf32>, vector<2x32xf32> -> vector<2x32xf32>
    %c3_139 = arith.constant 3 : index
    %c0_140 = arith.constant 0 : index
    %c0_141 = arith.constant 0 : index
    %173 = vector.load %arg22[%c3_139, %c0_140, %c0_141] : memref<4x1x32xf32, #tpu.memory_space<vmem>>, vector<1x1x32xf32>
    %174 = vector.shape_cast %173 : vector<1x1x32xf32> to vector<1x32xf32>
    %175 = vector.broadcast %174 : vector<1x32xf32> to vector<2x32xf32>
    %176 = arith.addf %172, %175 : vector<2x32xf32>
    %c0_142 = arith.constant 0 : index
    %c0_143 = arith.constant 0 : index
    %c0_144 = arith.constant 0 : index
    %177 = vector.load %arg25[%c0_142, %c0_143, %c0_144] : memref<4x1x32xf32, #tpu.memory_space<vmem>>, vector<1x1x32xf32>
    %178 = vector.shape_cast %177 : vector<1x1x32xf32> to vector<1x32xf32>
    %c0_145 = arith.constant 0 : index
    %c0_146 = arith.constant 0 : index
    %c0_147 = arith.constant 0 : index
    %179 = vector.load %arg23[%c0_145, %c0_146, %c0_147] : memref<2x32x32xf32, #tpu.memory_space<vmem>>, vector<1x32x32xf32>
    %180 = vector.shape_cast %179 : vector<1x32x32xf32> to vector<32x32xf32>
    %cst_148 = arith.constant dense<0.000000e+00> : vector<2x32xf32>
    %181 = tpu.matmul %60, %180, %cst_148 {dimension_numbers = #tpu.dot_dimension_numbers<[1], [0], [0], [1], [0, 0, 1, 1], [], []>} : vector<2x32xf32>, vector<32x32xf32>, vector<2x32xf32> -> vector<2x32xf32>
    %182 = vector.broadcast %178 : vector<1x32xf32> to vector<2x32xf32>
    %183 = arith.addf %182, %181 : vector<2x32xf32>
    %c1_149 = arith.constant 1 : index
    %c0_150 = arith.constant 0 : index
    %c0_151 = arith.constant 0 : index
    %184 = vector.load %arg23[%c1_149, %c0_150, %c0_151] : memref<2x32x32xf32, #tpu.memory_space<vmem>>, vector<1x32x32xf32>
    %185 = vector.shape_cast %184 : vector<1x32x32xf32> to vector<32x32xf32>
    %cst_152 = arith.constant dense<0.000000e+00> : vector<2x32xf32>
    %186 = tpu.matmul %63, %185, %cst_152 {dimension_numbers = #tpu.dot_dimension_numbers<[1], [0], [0], [1], [0, 0, 1, 1], [], []>} : vector<2x32xf32>, vector<32x32xf32>, vector<2x32xf32> -> vector<2x32xf32>
    %187 = arith.addf %183, %186 : vector<2x32xf32>
    %c0_153 = arith.constant 0 : index
    %c0_154 = arith.constant 0 : index
    %c0_155 = arith.constant 0 : index
    %188 = vector.load %arg24[%c0_153, %c0_154, %c0_155] : memref<3x32x32xf32, #tpu.memory_space<vmem>>, vector<1x32x32xf32>
    %189 = vector.shape_cast %188 : vector<1x32x32xf32> to vector<32x32xf32>
    %cst_156 = arith.constant dense<0.000000e+00> : vector<8x32xf32>
    %190 = tpu.matmul %51, %189, %cst_156 {dimension_numbers = #tpu.dot_dimension_numbers<[1], [0], [0], [1], [0, 0, 1, 1], [], []>} : vector<8x32xf32>, vector<32x32xf32>, vector<8x32xf32> -> vector<8x32xf32>
    %c1_157 = arith.constant 1 : index
    %c0_158 = arith.constant 0 : index
    %c0_159 = arith.constant 0 : index
    %191 = vector.load %arg25[%c1_157, %c0_158, %c0_159] : memref<4x1x32xf32, #tpu.memory_space<vmem>>, vector<1x1x32xf32>
    %192 = vector.shape_cast %191 : vector<1x1x32xf32> to vector<1x32xf32>
    %193 = vector.broadcast %192 : vector<1x32xf32> to vector<8x32xf32>
    %194 = arith.addf %190, %193 : vector<8x32xf32>
    %c1_160 = arith.constant 1 : index
    %c0_161 = arith.constant 0 : index
    %c0_162 = arith.constant 0 : index
    %195 = vector.load %arg24[%c1_160, %c0_161, %c0_162] : memref<3x32x32xf32, #tpu.memory_space<vmem>>, vector<1x32x32xf32>
    %196 = vector.shape_cast %195 : vector<1x32x32xf32> to vector<32x32xf32>
    %cst_163 = arith.constant dense<0.000000e+00> : vector<8x32xf32>
    %197 = tpu.matmul %51, %196, %cst_163 {dimension_numbers = #tpu.dot_dimension_numbers<[1], [0], [0], [1], [0, 0, 1, 1], [], []>} : vector<8x32xf32>, vector<32x32xf32>, vector<8x32xf32> -> vector<8x32xf32>
    %c2_164 = arith.constant 2 : index
    %c0_165 = arith.constant 0 : index
    %c0_166 = arith.constant 0 : index
    %198 = vector.load %arg25[%c2_164, %c0_165, %c0_166] : memref<4x1x32xf32, #tpu.memory_space<vmem>>, vector<1x1x32xf32>
    %199 = vector.shape_cast %198 : vector<1x1x32xf32> to vector<1x32xf32>
    %200 = vector.broadcast %199 : vector<1x32xf32> to vector<8x32xf32>
    %201 = arith.addf %197, %200 : vector<8x32xf32>
    %cst_167 = arith.constant dense<0.000000e+00> : vector<8x32xf32>
    %202 = tpu.matmul %0, %187, %cst_167 {dimension_numbers = #tpu.dot_dimension_numbers<[1], [0], [0], [1], [0, 0, 1, 1], [], []>} : vector<8x2xf32>, vector<2x32xf32>, vector<8x32xf32> -> vector<8x32xf32>
    %203 = arith.mulf %202, %2 : vector<8x32xf32>
    %cst_168 = arith.constant dense<0.000000e+00> : vector<8x8xf32>
    %204 = tpu.matmul %203, %194, %cst_168 {dimension_numbers = #tpu.dot_dimension_numbers<[1], [1], [0], [0], [0, 0, 1, 0], [], []>} : vector<8x32xf32>, vector<8x32xf32>, vector<8x8xf32> -> vector<8x8xf32>
    %cst_169 = arith.constant 0.353553385 : f32
    %205 = vector.broadcast %cst_169 : f32 to vector<8x8xf32>
    %206 = arith.mulf %204, %205 : vector<8x8xf32>
    %cst_170 = arith.constant 5.000000e-01 : f32
    %207 = vector.broadcast %cst_170 : f32 to vector<8x8xf32>
    %208 = arith.cmpf ogt, %76, %207 : vector<8x8xf32>
    %cst_171 = arith.constant -1.000000e+30 : f32
    %209 = vector.broadcast %cst_171 : f32 to vector<8x8xf32>
    %210 = arith.select %208, %206, %209 : vector<8x8xi1>, vector<8x8xf32>
    %cst_172 = arith.constant dense<0xFF800000> : vector<8xf32>
    %211 = vector.multi_reduction <maximumf>, %210, %cst_172 [1] : vector<8x8xf32> to vector<8xf32>
    %212 = vector.shape_cast %211 : vector<8xf32> to vector<8x1xf32>
    %213 = vector.broadcast %212 : vector<8x1xf32> to vector<8x8xf32>
    %214 = arith.subf %210, %213 : vector<8x8xf32>
    %215 = math.exp %214 : vector<8x8xf32>
    %cst_173 = arith.constant dense<0.000000e+00> : vector<8xf32>
    %216 = vector.multi_reduction <add>, %215, %cst_173 [1] : vector<8x8xf32> to vector<8xf32>
    %217 = vector.shape_cast %216 : vector<8xf32> to vector<8x1xf32>
    %218 = vector.broadcast %217 : vector<8x1xf32> to vector<8x8xf32>
    %219 = arith.divf %215, %218 : vector<8x8xf32>
    %cst_174 = arith.constant dense<0.000000e+00> : vector<8x32xf32>
    %220 = tpu.matmul %219, %201, %cst_174 {dimension_numbers = #tpu.dot_dimension_numbers<[1], [0], [0], [1], [0, 0, 1, 1], [], []>} : vector<8x8xf32>, vector<8x32xf32>, vector<8x32xf32> -> vector<8x32xf32>
    %221 = arith.mulf %220, %2 : vector<8x32xf32>
    %cst_175 = arith.constant dense<0.000000e+00> : vector<2x32xf32>
    %222 = tpu.matmul %1, %221, %cst_175 {dimension_numbers = #tpu.dot_dimension_numbers<[1], [0], [0], [1], [0, 0, 1, 1], [], []>} : vector<2x8xf32>, vector<8x32xf32>, vector<2x32xf32> -> vector<2x32xf32>
    %c2_176 = arith.constant 2 : index
    %c0_177 = arith.constant 0 : index
    %c0_178 = arith.constant 0 : index
    %223 = vector.load %arg24[%c2_176, %c0_177, %c0_178] : memref<3x32x32xf32, #tpu.memory_space<vmem>>, vector<1x32x32xf32>
    %224 = vector.shape_cast %223 : vector<1x32x32xf32> to vector<32x32xf32>
    %cst_179 = arith.constant dense<0.000000e+00> : vector<2x32xf32>
    %225 = tpu.matmul %222, %224, %cst_179 {dimension_numbers = #tpu.dot_dimension_numbers<[1], [0], [0], [1], [0, 0, 1, 1], [], []>} : vector<2x32xf32>, vector<32x32xf32>, vector<2x32xf32> -> vector<2x32xf32>
    %c3_180 = arith.constant 3 : index
    %c0_181 = arith.constant 0 : index
    %c0_182 = arith.constant 0 : index
    %226 = vector.load %arg25[%c3_180, %c0_181, %c0_182] : memref<4x1x32xf32, #tpu.memory_space<vmem>>, vector<1x1x32xf32>
    %227 = vector.shape_cast %226 : vector<1x1x32xf32> to vector<1x32xf32>
    %228 = vector.broadcast %227 : vector<1x32xf32> to vector<2x32xf32>
    %229 = arith.addf %225, %228 : vector<2x32xf32>
    %c0_183 = arith.constant 0 : index
    %c0_184 = arith.constant 0 : index
    %c0_185 = arith.constant 0 : index
    %230 = vector.load %arg28[%c0_183, %c0_184, %c0_185] : memref<4x1x32xf32, #tpu.memory_space<vmem>>, vector<1x1x32xf32>
    %231 = vector.shape_cast %230 : vector<1x1x32xf32> to vector<1x32xf32>
    %c0_186 = arith.constant 0 : index
    %c0_187 = arith.constant 0 : index
    %c0_188 = arith.constant 0 : index
    %232 = vector.load %arg26[%c0_186, %c0_187, %c0_188] : memref<3x32x32xf32, #tpu.memory_space<vmem>>, vector<1x32x32xf32>
    %233 = vector.shape_cast %232 : vector<1x32x32xf32> to vector<32x32xf32>
    %cst_189 = arith.constant dense<0.000000e+00> : vector<2x32xf32>
    %234 = tpu.matmul %66, %233, %cst_189 {dimension_numbers = #tpu.dot_dimension_numbers<[1], [0], [0], [1], [0, 0, 1, 1], [], []>} : vector<2x32xf32>, vector<32x32xf32>, vector<2x32xf32> -> vector<2x32xf32>
    %235 = vector.broadcast %231 : vector<1x32xf32> to vector<2x32xf32>
    %236 = arith.addf %235, %234 : vector<2x32xf32>
    %c1_190 = arith.constant 1 : index
    %c0_191 = arith.constant 0 : index
    %c0_192 = arith.constant 0 : index
    %237 = vector.load %arg26[%c1_190, %c0_191, %c0_192] : memref<3x32x32xf32, #tpu.memory_space<vmem>>, vector<1x32x32xf32>
    %238 = vector.shape_cast %237 : vector<1x32x32xf32> to vector<32x32xf32>
    %cst_193 = arith.constant dense<0.000000e+00> : vector<2x32xf32>
    %239 = tpu.matmul %69, %238, %cst_193 {dimension_numbers = #tpu.dot_dimension_numbers<[1], [0], [0], [1], [0, 0, 1, 1], [], []>} : vector<2x32xf32>, vector<32x32xf32>, vector<2x32xf32> -> vector<2x32xf32>
    %240 = arith.addf %236, %239 : vector<2x32xf32>
    %c2_194 = arith.constant 2 : index
    %c0_195 = arith.constant 0 : index
    %c0_196 = arith.constant 0 : index
    %241 = vector.load %arg26[%c2_194, %c0_195, %c0_196] : memref<3x32x32xf32, #tpu.memory_space<vmem>>, vector<1x32x32xf32>
    %242 = vector.shape_cast %241 : vector<1x32x32xf32> to vector<32x32xf32>
    %cst_197 = arith.constant dense<0.000000e+00> : vector<2x32xf32>
    %243 = tpu.matmul %72, %242, %cst_197 {dimension_numbers = #tpu.dot_dimension_numbers<[1], [0], [0], [1], [0, 0, 1, 1], [], []>} : vector<2x32xf32>, vector<32x32xf32>, vector<2x32xf32> -> vector<2x32xf32>
    %244 = arith.addf %240, %243 : vector<2x32xf32>
    %c0_198 = arith.constant 0 : index
    %c0_199 = arith.constant 0 : index
    %c0_200 = arith.constant 0 : index
    %245 = vector.load %arg27[%c0_198, %c0_199, %c0_200] : memref<3x32x32xf32, #tpu.memory_space<vmem>>, vector<1x32x32xf32>
    %246 = vector.shape_cast %245 : vector<1x32x32xf32> to vector<32x32xf32>
    %cst_201 = arith.constant dense<0.000000e+00> : vector<8x32xf32>
    %247 = tpu.matmul %51, %246, %cst_201 {dimension_numbers = #tpu.dot_dimension_numbers<[1], [0], [0], [1], [0, 0, 1, 1], [], []>} : vector<8x32xf32>, vector<32x32xf32>, vector<8x32xf32> -> vector<8x32xf32>
    %c1_202 = arith.constant 1 : index
    %c0_203 = arith.constant 0 : index
    %c0_204 = arith.constant 0 : index
    %248 = vector.load %arg28[%c1_202, %c0_203, %c0_204] : memref<4x1x32xf32, #tpu.memory_space<vmem>>, vector<1x1x32xf32>
    %249 = vector.shape_cast %248 : vector<1x1x32xf32> to vector<1x32xf32>
    %250 = vector.broadcast %249 : vector<1x32xf32> to vector<8x32xf32>
    %251 = arith.addf %247, %250 : vector<8x32xf32>
    %c1_205 = arith.constant 1 : index
    %c0_206 = arith.constant 0 : index
    %c0_207 = arith.constant 0 : index
    %252 = vector.load %arg27[%c1_205, %c0_206, %c0_207] : memref<3x32x32xf32, #tpu.memory_space<vmem>>, vector<1x32x32xf32>
    %253 = vector.shape_cast %252 : vector<1x32x32xf32> to vector<32x32xf32>
    %cst_208 = arith.constant dense<0.000000e+00> : vector<8x32xf32>
    %254 = tpu.matmul %51, %253, %cst_208 {dimension_numbers = #tpu.dot_dimension_numbers<[1], [0], [0], [1], [0, 0, 1, 1], [], []>} : vector<8x32xf32>, vector<32x32xf32>, vector<8x32xf32> -> vector<8x32xf32>
    %c2_209 = arith.constant 2 : index
    %c0_210 = arith.constant 0 : index
    %c0_211 = arith.constant 0 : index
    %255 = vector.load %arg28[%c2_209, %c0_210, %c0_211] : memref<4x1x32xf32, #tpu.memory_space<vmem>>, vector<1x1x32xf32>
    %256 = vector.shape_cast %255 : vector<1x1x32xf32> to vector<1x32xf32>
    %257 = vector.broadcast %256 : vector<1x32xf32> to vector<8x32xf32>
    %258 = arith.addf %254, %257 : vector<8x32xf32>
    %cst_212 = arith.constant dense<0.000000e+00> : vector<8x32xf32>
    %259 = tpu.matmul %0, %244, %cst_212 {dimension_numbers = #tpu.dot_dimension_numbers<[1], [0], [0], [1], [0, 0, 1, 1], [], []>} : vector<8x2xf32>, vector<2x32xf32>, vector<8x32xf32> -> vector<8x32xf32>
    %260 = arith.mulf %259, %2 : vector<8x32xf32>
    %cst_213 = arith.constant dense<0.000000e+00> : vector<8x8xf32>
    %261 = tpu.matmul %260, %251, %cst_213 {dimension_numbers = #tpu.dot_dimension_numbers<[1], [1], [0], [0], [0, 0, 1, 0], [], []>} : vector<8x32xf32>, vector<8x32xf32>, vector<8x8xf32> -> vector<8x8xf32>
    %cst_214 = arith.constant 0.353553385 : f32
    %262 = vector.broadcast %cst_214 : f32 to vector<8x8xf32>
    %263 = arith.mulf %261, %262 : vector<8x8xf32>
    %cst_215 = arith.constant 5.000000e-01 : f32
    %264 = vector.broadcast %cst_215 : f32 to vector<8x8xf32>
    %265 = arith.cmpf ogt, %78, %264 : vector<8x8xf32>
    %cst_216 = arith.constant -1.000000e+30 : f32
    %266 = vector.broadcast %cst_216 : f32 to vector<8x8xf32>
    %267 = arith.select %265, %263, %266 : vector<8x8xi1>, vector<8x8xf32>
    %cst_217 = arith.constant dense<0xFF800000> : vector<8xf32>
    %268 = vector.multi_reduction <maximumf>, %267, %cst_217 [1] : vector<8x8xf32> to vector<8xf32>
    %269 = vector.shape_cast %268 : vector<8xf32> to vector<8x1xf32>
    %270 = vector.broadcast %269 : vector<8x1xf32> to vector<8x8xf32>
    %271 = arith.subf %267, %270 : vector<8x8xf32>
    %272 = math.exp %271 : vector<8x8xf32>
    %cst_218 = arith.constant dense<0.000000e+00> : vector<8xf32>
    %273 = vector.multi_reduction <add>, %272, %cst_218 [1] : vector<8x8xf32> to vector<8xf32>
    %274 = vector.shape_cast %273 : vector<8xf32> to vector<8x1xf32>
    %275 = vector.broadcast %274 : vector<8x1xf32> to vector<8x8xf32>
    %276 = arith.divf %272, %275 : vector<8x8xf32>
    %cst_219 = arith.constant dense<0.000000e+00> : vector<8x32xf32>
    %277 = tpu.matmul %276, %258, %cst_219 {dimension_numbers = #tpu.dot_dimension_numbers<[1], [0], [0], [1], [0, 0, 1, 1], [], []>} : vector<8x8xf32>, vector<8x32xf32>, vector<8x32xf32> -> vector<8x32xf32>
    %278 = arith.mulf %277, %2 : vector<8x32xf32>
    %cst_220 = arith.constant dense<0.000000e+00> : vector<2x32xf32>
    %279 = tpu.matmul %1, %278, %cst_220 {dimension_numbers = #tpu.dot_dimension_numbers<[1], [0], [0], [1], [0, 0, 1, 1], [], []>} : vector<2x8xf32>, vector<8x32xf32>, vector<2x32xf32> -> vector<2x32xf32>
    %c2_221 = arith.constant 2 : index
    %c0_222 = arith.constant 0 : index
    %c0_223 = arith.constant 0 : index
    %280 = vector.load %arg27[%c2_221, %c0_222, %c0_223] : memref<3x32x32xf32, #tpu.memory_space<vmem>>, vector<1x32x32xf32>
    %281 = vector.shape_cast %280 : vector<1x32x32xf32> to vector<32x32xf32>
    %cst_224 = arith.constant dense<0.000000e+00> : vector<2x32xf32>
    %282 = tpu.matmul %279, %281, %cst_224 {dimension_numbers = #tpu.dot_dimension_numbers<[1], [0], [0], [1], [0, 0, 1, 1], [], []>} : vector<2x32xf32>, vector<32x32xf32>, vector<2x32xf32> -> vector<2x32xf32>
    %c3_225 = arith.constant 3 : index
    %c0_226 = arith.constant 0 : index
    %c0_227 = arith.constant 0 : index
    %283 = vector.load %arg28[%c3_225, %c0_226, %c0_227] : memref<4x1x32xf32, #tpu.memory_space<vmem>>, vector<1x1x32xf32>
    %284 = vector.shape_cast %283 : vector<1x1x32xf32> to vector<1x32xf32>
    %285 = vector.broadcast %284 : vector<1x32xf32> to vector<2x32xf32>
    %286 = arith.addf %282, %285 : vector<2x32xf32>
    %c0_228 = arith.constant 0 : index
    %c0_229 = arith.constant 0 : index
    %287 = vector.load %arg3[%c0_228, %c0_229] : memref<2x4xf32, #tpu.memory_space<vmem>>, vector<2x4xf32>
    %cst_230 = arith.constant 0.000000e+00 : f32
    %288 = vector.broadcast %cst_230 : f32 to vector<2x4xf32>
    %c0_231 = arith.constant 0 : index
    %c0_232 = arith.constant 0 : index
    %c0_233 = arith.constant 0 : index
    %289 = vector.load %arg30[%c0_231, %c0_232, %c0_233] : memref<2x1x32xf32, #tpu.memory_space<vmem>>, vector<1x1x32xf32>
    %290 = vector.shape_cast %289 : vector<1x1x32xf32> to vector<1x32xf32>
    %c0_234 = arith.constant 0 : index
    %c0_235 = arith.constant 0 : index
    %c0_236 = arith.constant 0 : index
    %c0_237 = arith.constant 0 : index
    %291 = vector.load %arg29[%c0_234, %c0_235, %c0_236, %c0_237] : memref<2x2x32x32xf32, #tpu.memory_space<vmem>>, vector<1x1x32x32xf32>
    %292 = vector.shape_cast %291 : vector<1x1x32x32xf32> to vector<32x32xf32>
    %cst_238 = arith.constant dense<0.000000e+00> : vector<2x32xf32>
    %293 = tpu.matmul %54, %292, %cst_238 {dimension_numbers = #tpu.dot_dimension_numbers<[1], [0], [0], [1], [0, 0, 1, 1], [], []>} : vector<2x32xf32>, vector<32x32xf32>, vector<2x32xf32> -> vector<2x32xf32>
    %294 = vector.broadcast %290 : vector<1x32xf32> to vector<2x32xf32>
    %295 = arith.addf %294, %293 : vector<2x32xf32>
    %c0_239 = arith.constant 0 : index
    %c1_240 = arith.constant 1 : index
    %c0_241 = arith.constant 0 : index
    %c0_242 = arith.constant 0 : index
    %296 = vector.load %arg29[%c0_239, %c1_240, %c0_241, %c0_242] : memref<2x2x32x32xf32, #tpu.memory_space<vmem>>, vector<1x1x32x32xf32>
    %297 = vector.shape_cast %296 : vector<1x1x32x32xf32> to vector<32x32xf32>
    %cst_243 = arith.constant dense<0.000000e+00> : vector<2x32xf32>
    %298 = tpu.matmul %127, %297, %cst_243 {dimension_numbers = #tpu.dot_dimension_numbers<[1], [0], [0], [1], [0, 0, 1, 1], [], []>} : vector<2x32xf32>, vector<32x32xf32>, vector<2x32xf32> -> vector<2x32xf32>
    %299 = arith.addf %295, %298 : vector<2x32xf32>
    %300 = math.tanh %299 : vector<2x32xf32>
    %c0_244 = arith.constant 0 : index
    %c0_245 = arith.constant 0 : index
    %c0_246 = arith.constant 0 : index
    %301 = vector.load %arg31[%c0_244, %c0_245, %c0_246] : memref<2x32x8xf32, #tpu.memory_space<vmem>>, vector<1x32x8xf32>
    %302 = vector.shape_cast %301 : vector<1x32x8xf32> to vector<32x8xf32>
    %cst_247 = arith.constant dense<0.000000e+00> : vector<2x8xf32>
    %303 = tpu.matmul %300, %302, %cst_247 {dimension_numbers = #tpu.dot_dimension_numbers<[1], [0], [0], [1], [0, 0, 1, 1], [], []>} : vector<2x32xf32>, vector<32x8xf32>, vector<2x8xf32> -> vector<2x8xf32>
    %c0_248 = arith.constant 0 : index
    %c0_249 = arith.constant 0 : index
    %c0_250 = arith.constant 0 : index
    %304 = vector.load %arg32[%c0_248, %c0_249, %c0_250] : memref<2x1x8xf32, #tpu.memory_space<vmem>>, vector<1x1x8xf32>
    %305 = vector.shape_cast %304 : vector<1x1x8xf32> to vector<1x8xf32>
    %306 = vector.broadcast %305 : vector<1x8xf32> to vector<2x8xf32>
    %307 = arith.addf %303, %306 : vector<2x8xf32>
    %c0_251 = arith.constant 0 : index
    %c0_252 = arith.constant 0 : index
    %c0_253 = arith.constant 0 : index
    %308 = vector.load %arg33[%c0_251, %c0_252, %c0_253] : memref<2x1x1xf32, #tpu.memory_space<vmem>>, vector<1x1x1xf32>
    %309 = vector.shape_cast %308 : vector<1x1x1xf32> to vector<1x1xf32>
    %310 = math.exp %309 : vector<1x1xf32>
    %311 = vector.extract_strided_slice %307 {offsets = [0, 0], sizes = [2, 4], strides = [1, 1]} : vector<2x8xf32> to vector<2x4xf32>
    %312 = math.tanh %311 : vector<2x4xf32>
    %313 = vector.broadcast %310 : vector<1x1xf32> to vector<2x4xf32>
    %314 = arith.mulf %313, %312 : vector<2x4xf32>
    %315 = vector.extract_strided_slice %307 {offsets = [0, 4], sizes = [2, 4], strides = [1, 1]} : vector<2x8xf32> to vector<2x4xf32>
    %316 = arith.addf %287, %315 : vector<2x4xf32>
    %317 = math.exp %314 : vector<2x4xf32>
    %318 = arith.mulf %316, %317 : vector<2x4xf32>
    %319 = arith.addf %288, %314 : vector<2x4xf32>
    %c1_254 = arith.constant 1 : index
    %c0_255 = arith.constant 0 : index
    %c0_256 = arith.constant 0 : index
    %320 = vector.load %arg30[%c1_254, %c0_255, %c0_256] : memref<2x1x32xf32, #tpu.memory_space<vmem>>, vector<1x1x32xf32>
    %321 = vector.shape_cast %320 : vector<1x1x32xf32> to vector<1x32xf32>
    %c1_257 = arith.constant 1 : index
    %c0_258 = arith.constant 0 : index
    %c0_259 = arith.constant 0 : index
    %c0_260 = arith.constant 0 : index
    %322 = vector.load %arg29[%c1_257, %c0_258, %c0_259, %c0_260] : memref<2x2x32x32xf32, #tpu.memory_space<vmem>>, vector<1x1x32x32xf32>
    %323 = vector.shape_cast %322 : vector<1x1x32x32xf32> to vector<32x32xf32>
    %cst_261 = arith.constant dense<0.000000e+00> : vector<2x32xf32>
    %324 = tpu.matmul %54, %323, %cst_261 {dimension_numbers = #tpu.dot_dimension_numbers<[1], [0], [0], [1], [0, 0, 1, 1], [], []>} : vector<2x32xf32>, vector<32x32xf32>, vector<2x32xf32> -> vector<2x32xf32>
    %325 = vector.broadcast %321 : vector<1x32xf32> to vector<2x32xf32>
    %326 = arith.addf %325, %324 : vector<2x32xf32>
    %c1_262 = arith.constant 1 : index
    %c1_263 = arith.constant 1 : index
    %c0_264 = arith.constant 0 : index
    %c0_265 = arith.constant 0 : index
    %327 = vector.load %arg29[%c1_262, %c1_263, %c0_264, %c0_265] : memref<2x2x32x32xf32, #tpu.memory_space<vmem>>, vector<1x1x32x32xf32>
    %328 = vector.shape_cast %327 : vector<1x1x32x32xf32> to vector<32x32xf32>
    %cst_266 = arith.constant dense<0.000000e+00> : vector<2x32xf32>
    %329 = tpu.matmul %127, %328, %cst_266 {dimension_numbers = #tpu.dot_dimension_numbers<[1], [0], [0], [1], [0, 0, 1, 1], [], []>} : vector<2x32xf32>, vector<32x32xf32>, vector<2x32xf32> -> vector<2x32xf32>
    %330 = arith.addf %326, %329 : vector<2x32xf32>
    %331 = math.tanh %330 : vector<2x32xf32>
    %c1_267 = arith.constant 1 : index
    %c0_268 = arith.constant 0 : index
    %c0_269 = arith.constant 0 : index
    %332 = vector.load %arg31[%c1_267, %c0_268, %c0_269] : memref<2x32x8xf32, #tpu.memory_space<vmem>>, vector<1x32x8xf32>
    %333 = vector.shape_cast %332 : vector<1x32x8xf32> to vector<32x8xf32>
    %cst_270 = arith.constant dense<0.000000e+00> : vector<2x8xf32>
    %334 = tpu.matmul %331, %333, %cst_270 {dimension_numbers = #tpu.dot_dimension_numbers<[1], [0], [0], [1], [0, 0, 1, 1], [], []>} : vector<2x32xf32>, vector<32x8xf32>, vector<2x8xf32> -> vector<2x8xf32>
    %c1_271 = arith.constant 1 : index
    %c0_272 = arith.constant 0 : index
    %c0_273 = arith.constant 0 : index
    %335 = vector.load %arg32[%c1_271, %c0_272, %c0_273] : memref<2x1x8xf32, #tpu.memory_space<vmem>>, vector<1x1x8xf32>
    %336 = vector.shape_cast %335 : vector<1x1x8xf32> to vector<1x8xf32>
    %337 = vector.broadcast %336 : vector<1x8xf32> to vector<2x8xf32>
    %338 = arith.addf %334, %337 : vector<2x8xf32>
    %c1_274 = arith.constant 1 : index
    %c0_275 = arith.constant 0 : index
    %c0_276 = arith.constant 0 : index
    %339 = vector.load %arg33[%c1_274, %c0_275, %c0_276] : memref<2x1x1xf32, #tpu.memory_space<vmem>>, vector<1x1x1xf32>
    %340 = vector.shape_cast %339 : vector<1x1x1xf32> to vector<1x1xf32>
    %341 = math.exp %340 : vector<1x1xf32>
    %342 = vector.extract_strided_slice %338 {offsets = [0, 0], sizes = [2, 4], strides = [1, 1]} : vector<2x8xf32> to vector<2x4xf32>
    %343 = math.tanh %342 : vector<2x4xf32>
    %344 = vector.broadcast %341 : vector<1x1xf32> to vector<2x4xf32>
    %345 = arith.mulf %344, %343 : vector<2x4xf32>
    %346 = vector.extract_strided_slice %338 {offsets = [0, 4], sizes = [2, 4], strides = [1, 1]} : vector<2x8xf32> to vector<2x4xf32>
    %347 = arith.addf %318, %346 : vector<2x4xf32>
    %348 = math.exp %345 : vector<2x4xf32>
    %349 = arith.mulf %347, %348 : vector<2x4xf32>
    %350 = arith.addf %319, %345 : vector<2x4xf32>
    %cst_277 = arith.constant 5.000000e-01 : f32
    %351 = vector.broadcast %cst_277 : f32 to vector<2x4xf32>
    %352 = arith.mulf %351, %349 : vector<2x4xf32>
    %353 = arith.mulf %352, %349 : vector<2x4xf32>
    %354 = arith.subf %353, %350 : vector<2x4xf32>
    %355 = vector.shape_cast %354 : vector<2x4xf32> to vector<1x2x4xf32>
    %cst_278 = arith.constant dense<0.000000e+00> : vector<1xf32>
    %356 = vector.multi_reduction <add>, %355, %cst_278 [1, 2] : vector<1x2x4xf32> to vector<1xf32>
    %357 = vector.shape_cast %356 : vector<1xf32> to vector<1x1x1xf32>
    %358 = vector.extract %357[0, 0, 0] : f32 from vector<1x1x1xf32>
    %cst_279 = arith.constant 8.000000e+00 : f32
    %359 = arith.divf %358, %cst_279 : f32
    %c0_280 = arith.constant 0 : index
    %c0_281 = arith.constant 0 : index
    %c0_282 = arith.constant 0 : index
    %360 = vector.load %arg6[%c0_280, %c0_281, %c0_282] : memref<3x2x1xf32, #tpu.memory_space<vmem>>, vector<1x2x1xf32>
    %361 = vector.shape_cast %360 : vector<1x2x1xf32> to vector<2x1xf32>
    %cst_283 = arith.constant 0.000000e+00 : f32
    %362 = vector.broadcast %cst_283 : f32 to vector<2x1xf32>
    %c0_284 = arith.constant 0 : index
    %c0_285 = arith.constant 0 : index
    %c0_286 = arith.constant 0 : index
    %363 = vector.load %arg35[%c0_284, %c0_285, %c0_286] : memref<2x1x32xf32, #tpu.memory_space<vmem>>, vector<1x1x32xf32>
    %364 = vector.shape_cast %363 : vector<1x1x32xf32> to vector<1x32xf32>
    %c0_287 = arith.constant 0 : index
    %c0_288 = arith.constant 0 : index
    %c0_289 = arith.constant 0 : index
    %c0_290 = arith.constant 0 : index
    %365 = vector.load %arg34[%c0_287, %c0_288, %c0_289, %c0_290] : memref<2x2x32x32xf32, #tpu.memory_space<vmem>>, vector<1x1x32x32xf32>
    %366 = vector.shape_cast %365 : vector<1x1x32x32xf32> to vector<32x32xf32>
    %cst_291 = arith.constant dense<0.000000e+00> : vector<2x32xf32>
    %367 = tpu.matmul %57, %366, %cst_291 {dimension_numbers = #tpu.dot_dimension_numbers<[1], [0], [0], [1], [0, 0, 1, 1], [], []>} : vector<2x32xf32>, vector<32x32xf32>, vector<2x32xf32> -> vector<2x32xf32>
    %368 = vector.broadcast %364 : vector<1x32xf32> to vector<2x32xf32>
    %369 = arith.addf %368, %367 : vector<2x32xf32>
    %c0_292 = arith.constant 0 : index
    %c1_293 = arith.constant 1 : index
    %c0_294 = arith.constant 0 : index
    %c0_295 = arith.constant 0 : index
    %370 = vector.load %arg34[%c0_292, %c1_293, %c0_294, %c0_295] : memref<2x2x32x32xf32, #tpu.memory_space<vmem>>, vector<1x1x32x32xf32>
    %371 = vector.shape_cast %370 : vector<1x1x32x32xf32> to vector<32x32xf32>
    %cst_296 = arith.constant dense<0.000000e+00> : vector<2x32xf32>
    %372 = tpu.matmul %176, %371, %cst_296 {dimension_numbers = #tpu.dot_dimension_numbers<[1], [0], [0], [1], [0, 0, 1, 1], [], []>} : vector<2x32xf32>, vector<32x32xf32>, vector<2x32xf32> -> vector<2x32xf32>
    %373 = arith.addf %369, %372 : vector<2x32xf32>
    %374 = math.tanh %373 : vector<2x32xf32>
    %c0_297 = arith.constant 0 : index
    %c0_298 = arith.constant 0 : index
    %c0_299 = arith.constant 0 : index
    %375 = vector.load %arg36[%c0_297, %c0_298, %c0_299] : memref<2x32x2xf32, #tpu.memory_space<vmem>>, vector<1x32x2xf32>
    %376 = vector.shape_cast %375 : vector<1x32x2xf32> to vector<32x2xf32>
    %cst_300 = arith.constant dense<0.000000e+00> : vector<2x2xf32>
    %377 = tpu.matmul %374, %376, %cst_300 {dimension_numbers = #tpu.dot_dimension_numbers<[1], [0], [0], [1], [0, 0, 1, 1], [], []>} : vector<2x32xf32>, vector<32x2xf32>, vector<2x2xf32> -> vector<2x2xf32>
    %c0_301 = arith.constant 0 : index
    %c0_302 = arith.constant 0 : index
    %c0_303 = arith.constant 0 : index
    %378 = vector.load %arg37[%c0_301, %c0_302, %c0_303] : memref<2x1x2xf32, #tpu.memory_space<vmem>>, vector<1x1x2xf32>
    %379 = vector.shape_cast %378 : vector<1x1x2xf32> to vector<1x2xf32>
    %380 = vector.broadcast %379 : vector<1x2xf32> to vector<2x2xf32>
    %381 = arith.addf %377, %380 : vector<2x2xf32>
    %c0_304 = arith.constant 0 : index
    %c0_305 = arith.constant 0 : index
    %c0_306 = arith.constant 0 : index
    %382 = vector.load %arg38[%c0_304, %c0_305, %c0_306] : memref<2x1x1xf32, #tpu.memory_space<vmem>>, vector<1x1x1xf32>
    %383 = vector.shape_cast %382 : vector<1x1x1xf32> to vector<1x1xf32>
    %384 = math.exp %383 : vector<1x1xf32>
    %385 = vector.extract_strided_slice %381 {offsets = [0, 0], sizes = [2, 1], strides = [1, 1]} : vector<2x2xf32> to vector<2x1xf32>
    %386 = math.tanh %385 : vector<2x1xf32>
    %387 = vector.broadcast %384 : vector<1x1xf32> to vector<2x1xf32>
    %388 = arith.mulf %387, %386 : vector<2x1xf32>
    %389 = vector.extract_strided_slice %381 {offsets = [0, 1], sizes = [2, 1], strides = [1, 1]} : vector<2x2xf32> to vector<2x1xf32>
    %390 = arith.addf %361, %389 : vector<2x1xf32>
    %391 = math.exp %388 : vector<2x1xf32>
    %392 = arith.mulf %390, %391 : vector<2x1xf32>
    %393 = arith.addf %362, %388 : vector<2x1xf32>
    %c1_307 = arith.constant 1 : index
    %c0_308 = arith.constant 0 : index
    %c0_309 = arith.constant 0 : index
    %394 = vector.load %arg35[%c1_307, %c0_308, %c0_309] : memref<2x1x32xf32, #tpu.memory_space<vmem>>, vector<1x1x32xf32>
    %395 = vector.shape_cast %394 : vector<1x1x32xf32> to vector<1x32xf32>
    %c1_310 = arith.constant 1 : index
    %c0_311 = arith.constant 0 : index
    %c0_312 = arith.constant 0 : index
    %c0_313 = arith.constant 0 : index
    %396 = vector.load %arg34[%c1_310, %c0_311, %c0_312, %c0_313] : memref<2x2x32x32xf32, #tpu.memory_space<vmem>>, vector<1x1x32x32xf32>
    %397 = vector.shape_cast %396 : vector<1x1x32x32xf32> to vector<32x32xf32>
    %cst_314 = arith.constant dense<0.000000e+00> : vector<2x32xf32>
    %398 = tpu.matmul %57, %397, %cst_314 {dimension_numbers = #tpu.dot_dimension_numbers<[1], [0], [0], [1], [0, 0, 1, 1], [], []>} : vector<2x32xf32>, vector<32x32xf32>, vector<2x32xf32> -> vector<2x32xf32>
    %399 = vector.broadcast %395 : vector<1x32xf32> to vector<2x32xf32>
    %400 = arith.addf %399, %398 : vector<2x32xf32>
    %c1_315 = arith.constant 1 : index
    %c1_316 = arith.constant 1 : index
    %c0_317 = arith.constant 0 : index
    %c0_318 = arith.constant 0 : index
    %401 = vector.load %arg34[%c1_315, %c1_316, %c0_317, %c0_318] : memref<2x2x32x32xf32, #tpu.memory_space<vmem>>, vector<1x1x32x32xf32>
    %402 = vector.shape_cast %401 : vector<1x1x32x32xf32> to vector<32x32xf32>
    %cst_319 = arith.constant dense<0.000000e+00> : vector<2x32xf32>
    %403 = tpu.matmul %176, %402, %cst_319 {dimension_numbers = #tpu.dot_dimension_numbers<[1], [0], [0], [1], [0, 0, 1, 1], [], []>} : vector<2x32xf32>, vector<32x32xf32>, vector<2x32xf32> -> vector<2x32xf32>
    %404 = arith.addf %400, %403 : vector<2x32xf32>
    %405 = math.tanh %404 : vector<2x32xf32>
    %c1_320 = arith.constant 1 : index
    %c0_321 = arith.constant 0 : index
    %c0_322 = arith.constant 0 : index
    %406 = vector.load %arg36[%c1_320, %c0_321, %c0_322] : memref<2x32x2xf32, #tpu.memory_space<vmem>>, vector<1x32x2xf32>
    %407 = vector.shape_cast %406 : vector<1x32x2xf32> to vector<32x2xf32>
    %cst_323 = arith.constant dense<0.000000e+00> : vector<2x2xf32>
    %408 = tpu.matmul %405, %407, %cst_323 {dimension_numbers = #tpu.dot_dimension_numbers<[1], [0], [0], [1], [0, 0, 1, 1], [], []>} : vector<2x32xf32>, vector<32x2xf32>, vector<2x2xf32> -> vector<2x2xf32>
    %c1_324 = arith.constant 1 : index
    %c0_325 = arith.constant 0 : index
    %c0_326 = arith.constant 0 : index
    %409 = vector.load %arg37[%c1_324, %c0_325, %c0_326] : memref<2x1x2xf32, #tpu.memory_space<vmem>>, vector<1x1x2xf32>
    %410 = vector.shape_cast %409 : vector<1x1x2xf32> to vector<1x2xf32>
    %411 = vector.broadcast %410 : vector<1x2xf32> to vector<2x2xf32>
    %412 = arith.addf %408, %411 : vector<2x2xf32>
    %c1_327 = arith.constant 1 : index
    %c0_328 = arith.constant 0 : index
    %c0_329 = arith.constant 0 : index
    %413 = vector.load %arg38[%c1_327, %c0_328, %c0_329] : memref<2x1x1xf32, #tpu.memory_space<vmem>>, vector<1x1x1xf32>
    %414 = vector.shape_cast %413 : vector<1x1x1xf32> to vector<1x1xf32>
    %415 = math.exp %414 : vector<1x1xf32>
    %416 = vector.extract_strided_slice %412 {offsets = [0, 0], sizes = [2, 1], strides = [1, 1]} : vector<2x2xf32> to vector<2x1xf32>
    %417 = math.tanh %416 : vector<2x1xf32>
    %418 = vector.broadcast %415 : vector<1x1xf32> to vector<2x1xf32>
    %419 = arith.mulf %418, %417 : vector<2x1xf32>
    %420 = vector.extract_strided_slice %412 {offsets = [0, 1], sizes = [2, 1], strides = [1, 1]} : vector<2x2xf32> to vector<2x1xf32>
    %421 = arith.addf %392, %420 : vector<2x1xf32>
    %422 = math.exp %419 : vector<2x1xf32>
    %423 = arith.mulf %421, %422 : vector<2x1xf32>
    %424 = arith.addf %393, %419 : vector<2x1xf32>
    %cst_330 = arith.constant 5.000000e-01 : f32
    %425 = vector.broadcast %cst_330 : f32 to vector<2x1xf32>
    %426 = arith.mulf %425, %423 : vector<2x1xf32>
    %427 = arith.mulf %426, %423 : vector<2x1xf32>
    %428 = arith.subf %427, %424 : vector<2x1xf32>
    %429 = vector.shape_cast %428 : vector<2x1xf32> to vector<1x2x1xf32>
    %cst_331 = arith.constant dense<0.000000e+00> : vector<1xf32>
    %430 = vector.multi_reduction <add>, %429, %cst_331 [1, 2] : vector<1x2x1xf32> to vector<1xf32>
    %431 = vector.shape_cast %430 : vector<1xf32> to vector<1x1x1xf32>
    %432 = vector.extract %431[0, 0, 0] : f32 from vector<1x1x1xf32>
    %cst_332 = arith.constant 2.000000e+00 : f32
    %433 = arith.divf %432, %cst_332 : f32
    %c1_333 = arith.constant 1 : index
    %c0_334 = arith.constant 0 : index
    %c0_335 = arith.constant 0 : index
    %434 = vector.load %arg6[%c1_333, %c0_334, %c0_335] : memref<3x2x1xf32, #tpu.memory_space<vmem>>, vector<1x2x1xf32>
    %435 = vector.shape_cast %434 : vector<1x2x1xf32> to vector<2x1xf32>
    %cst_336 = arith.constant 0.000000e+00 : f32
    %436 = vector.broadcast %cst_336 : f32 to vector<2x1xf32>
    %c0_337 = arith.constant 0 : index
    %c0_338 = arith.constant 0 : index
    %c0_339 = arith.constant 0 : index
    %437 = vector.load %arg40[%c0_337, %c0_338, %c0_339] : memref<2x1x32xf32, #tpu.memory_space<vmem>>, vector<1x1x32xf32>
    %438 = vector.shape_cast %437 : vector<1x1x32xf32> to vector<1x32xf32>
    %c0_340 = arith.constant 0 : index
    %c0_341 = arith.constant 0 : index
    %c0_342 = arith.constant 0 : index
    %c0_343 = arith.constant 0 : index
    %439 = vector.load %arg39[%c0_340, %c0_341, %c0_342, %c0_343] : memref<2x3x32x32xf32, #tpu.memory_space<vmem>>, vector<1x1x32x32xf32>
    %440 = vector.shape_cast %439 : vector<1x1x32x32xf32> to vector<32x32xf32>
    %cst_344 = arith.constant dense<0.000000e+00> : vector<2x32xf32>
    %441 = tpu.matmul %60, %440, %cst_344 {dimension_numbers = #tpu.dot_dimension_numbers<[1], [0], [0], [1], [0, 0, 1, 1], [], []>} : vector<2x32xf32>, vector<32x32xf32>, vector<2x32xf32> -> vector<2x32xf32>
    %442 = vector.broadcast %438 : vector<1x32xf32> to vector<2x32xf32>
    %443 = arith.addf %442, %441 : vector<2x32xf32>
    %c0_345 = arith.constant 0 : index
    %c1_346 = arith.constant 1 : index
    %c0_347 = arith.constant 0 : index
    %c0_348 = arith.constant 0 : index
    %444 = vector.load %arg39[%c0_345, %c1_346, %c0_347, %c0_348] : memref<2x3x32x32xf32, #tpu.memory_space<vmem>>, vector<1x1x32x32xf32>
    %445 = vector.shape_cast %444 : vector<1x1x32x32xf32> to vector<32x32xf32>
    %cst_349 = arith.constant dense<0.000000e+00> : vector<2x32xf32>
    %446 = tpu.matmul %63, %445, %cst_349 {dimension_numbers = #tpu.dot_dimension_numbers<[1], [0], [0], [1], [0, 0, 1, 1], [], []>} : vector<2x32xf32>, vector<32x32xf32>, vector<2x32xf32> -> vector<2x32xf32>
    %447 = arith.addf %443, %446 : vector<2x32xf32>
    %c0_350 = arith.constant 0 : index
    %c2_351 = arith.constant 2 : index
    %c0_352 = arith.constant 0 : index
    %c0_353 = arith.constant 0 : index
    %448 = vector.load %arg39[%c0_350, %c2_351, %c0_352, %c0_353] : memref<2x3x32x32xf32, #tpu.memory_space<vmem>>, vector<1x1x32x32xf32>
    %449 = vector.shape_cast %448 : vector<1x1x32x32xf32> to vector<32x32xf32>
    %cst_354 = arith.constant dense<0.000000e+00> : vector<2x32xf32>
    %450 = tpu.matmul %229, %449, %cst_354 {dimension_numbers = #tpu.dot_dimension_numbers<[1], [0], [0], [1], [0, 0, 1, 1], [], []>} : vector<2x32xf32>, vector<32x32xf32>, vector<2x32xf32> -> vector<2x32xf32>
    %451 = arith.addf %447, %450 : vector<2x32xf32>
    %452 = math.tanh %451 : vector<2x32xf32>
    %c0_355 = arith.constant 0 : index
    %c0_356 = arith.constant 0 : index
    %c0_357 = arith.constant 0 : index
    %453 = vector.load %arg41[%c0_355, %c0_356, %c0_357] : memref<2x32x2xf32, #tpu.memory_space<vmem>>, vector<1x32x2xf32>
    %454 = vector.shape_cast %453 : vector<1x32x2xf32> to vector<32x2xf32>
    %cst_358 = arith.constant dense<0.000000e+00> : vector<2x2xf32>
    %455 = tpu.matmul %452, %454, %cst_358 {dimension_numbers = #tpu.dot_dimension_numbers<[1], [0], [0], [1], [0, 0, 1, 1], [], []>} : vector<2x32xf32>, vector<32x2xf32>, vector<2x2xf32> -> vector<2x2xf32>
    %c0_359 = arith.constant 0 : index
    %c0_360 = arith.constant 0 : index
    %c0_361 = arith.constant 0 : index
    %456 = vector.load %arg42[%c0_359, %c0_360, %c0_361] : memref<2x1x2xf32, #tpu.memory_space<vmem>>, vector<1x1x2xf32>
    %457 = vector.shape_cast %456 : vector<1x1x2xf32> to vector<1x2xf32>
    %458 = vector.broadcast %457 : vector<1x2xf32> to vector<2x2xf32>
    %459 = arith.addf %455, %458 : vector<2x2xf32>
    %c0_362 = arith.constant 0 : index
    %c0_363 = arith.constant 0 : index
    %c0_364 = arith.constant 0 : index
    %460 = vector.load %arg43[%c0_362, %c0_363, %c0_364] : memref<2x1x1xf32, #tpu.memory_space<vmem>>, vector<1x1x1xf32>
    %461 = vector.shape_cast %460 : vector<1x1x1xf32> to vector<1x1xf32>
    %462 = math.exp %461 : vector<1x1xf32>
    %463 = vector.extract_strided_slice %459 {offsets = [0, 0], sizes = [2, 1], strides = [1, 1]} : vector<2x2xf32> to vector<2x1xf32>
    %464 = math.tanh %463 : vector<2x1xf32>
    %465 = vector.broadcast %462 : vector<1x1xf32> to vector<2x1xf32>
    %466 = arith.mulf %465, %464 : vector<2x1xf32>
    %467 = vector.extract_strided_slice %459 {offsets = [0, 1], sizes = [2, 1], strides = [1, 1]} : vector<2x2xf32> to vector<2x1xf32>
    %468 = arith.addf %435, %467 : vector<2x1xf32>
    %469 = math.exp %466 : vector<2x1xf32>
    %470 = arith.mulf %468, %469 : vector<2x1xf32>
    %471 = arith.addf %436, %466 : vector<2x1xf32>
    %c1_365 = arith.constant 1 : index
    %c0_366 = arith.constant 0 : index
    %c0_367 = arith.constant 0 : index
    %472 = vector.load %arg40[%c1_365, %c0_366, %c0_367] : memref<2x1x32xf32, #tpu.memory_space<vmem>>, vector<1x1x32xf32>
    %473 = vector.shape_cast %472 : vector<1x1x32xf32> to vector<1x32xf32>
    %c1_368 = arith.constant 1 : index
    %c0_369 = arith.constant 0 : index
    %c0_370 = arith.constant 0 : index
    %c0_371 = arith.constant 0 : index
    %474 = vector.load %arg39[%c1_368, %c0_369, %c0_370, %c0_371] : memref<2x3x32x32xf32, #tpu.memory_space<vmem>>, vector<1x1x32x32xf32>
    %475 = vector.shape_cast %474 : vector<1x1x32x32xf32> to vector<32x32xf32>
    %cst_372 = arith.constant dense<0.000000e+00> : vector<2x32xf32>
    %476 = tpu.matmul %60, %475, %cst_372 {dimension_numbers = #tpu.dot_dimension_numbers<[1], [0], [0], [1], [0, 0, 1, 1], [], []>} : vector<2x32xf32>, vector<32x32xf32>, vector<2x32xf32> -> vector<2x32xf32>
    %477 = vector.broadcast %473 : vector<1x32xf32> to vector<2x32xf32>
    %478 = arith.addf %477, %476 : vector<2x32xf32>
    %c1_373 = arith.constant 1 : index
    %c1_374 = arith.constant 1 : index
    %c0_375 = arith.constant 0 : index
    %c0_376 = arith.constant 0 : index
    %479 = vector.load %arg39[%c1_373, %c1_374, %c0_375, %c0_376] : memref<2x3x32x32xf32, #tpu.memory_space<vmem>>, vector<1x1x32x32xf32>
    %480 = vector.shape_cast %479 : vector<1x1x32x32xf32> to vector<32x32xf32>
    %cst_377 = arith.constant dense<0.000000e+00> : vector<2x32xf32>
    %481 = tpu.matmul %63, %480, %cst_377 {dimension_numbers = #tpu.dot_dimension_numbers<[1], [0], [0], [1], [0, 0, 1, 1], [], []>} : vector<2x32xf32>, vector<32x32xf32>, vector<2x32xf32> -> vector<2x32xf32>
    %482 = arith.addf %478, %481 : vector<2x32xf32>
    %c1_378 = arith.constant 1 : index
    %c2_379 = arith.constant 2 : index
    %c0_380 = arith.constant 0 : index
    %c0_381 = arith.constant 0 : index
    %483 = vector.load %arg39[%c1_378, %c2_379, %c0_380, %c0_381] : memref<2x3x32x32xf32, #tpu.memory_space<vmem>>, vector<1x1x32x32xf32>
    %484 = vector.shape_cast %483 : vector<1x1x32x32xf32> to vector<32x32xf32>
    %cst_382 = arith.constant dense<0.000000e+00> : vector<2x32xf32>
    %485 = tpu.matmul %229, %484, %cst_382 {dimension_numbers = #tpu.dot_dimension_numbers<[1], [0], [0], [1], [0, 0, 1, 1], [], []>} : vector<2x32xf32>, vector<32x32xf32>, vector<2x32xf32> -> vector<2x32xf32>
    %486 = arith.addf %482, %485 : vector<2x32xf32>
    %487 = math.tanh %486 : vector<2x32xf32>
    %c1_383 = arith.constant 1 : index
    %c0_384 = arith.constant 0 : index
    %c0_385 = arith.constant 0 : index
    %488 = vector.load %arg41[%c1_383, %c0_384, %c0_385] : memref<2x32x2xf32, #tpu.memory_space<vmem>>, vector<1x32x2xf32>
    %489 = vector.shape_cast %488 : vector<1x32x2xf32> to vector<32x2xf32>
    %cst_386 = arith.constant dense<0.000000e+00> : vector<2x2xf32>
    %490 = tpu.matmul %487, %489, %cst_386 {dimension_numbers = #tpu.dot_dimension_numbers<[1], [0], [0], [1], [0, 0, 1, 1], [], []>} : vector<2x32xf32>, vector<32x2xf32>, vector<2x2xf32> -> vector<2x2xf32>
    %c1_387 = arith.constant 1 : index
    %c0_388 = arith.constant 0 : index
    %c0_389 = arith.constant 0 : index
    %491 = vector.load %arg42[%c1_387, %c0_388, %c0_389] : memref<2x1x2xf32, #tpu.memory_space<vmem>>, vector<1x1x2xf32>
    %492 = vector.shape_cast %491 : vector<1x1x2xf32> to vector<1x2xf32>
    %493 = vector.broadcast %492 : vector<1x2xf32> to vector<2x2xf32>
    %494 = arith.addf %490, %493 : vector<2x2xf32>
    %c1_390 = arith.constant 1 : index
    %c0_391 = arith.constant 0 : index
    %c0_392 = arith.constant 0 : index
    %495 = vector.load %arg43[%c1_390, %c0_391, %c0_392] : memref<2x1x1xf32, #tpu.memory_space<vmem>>, vector<1x1x1xf32>
    %496 = vector.shape_cast %495 : vector<1x1x1xf32> to vector<1x1xf32>
    %497 = math.exp %496 : vector<1x1xf32>
    %498 = vector.extract_strided_slice %494 {offsets = [0, 0], sizes = [2, 1], strides = [1, 1]} : vector<2x2xf32> to vector<2x1xf32>
    %499 = math.tanh %498 : vector<2x1xf32>
    %500 = vector.broadcast %497 : vector<1x1xf32> to vector<2x1xf32>
    %501 = arith.mulf %500, %499 : vector<2x1xf32>
    %502 = vector.extract_strided_slice %494 {offsets = [0, 1], sizes = [2, 1], strides = [1, 1]} : vector<2x2xf32> to vector<2x1xf32>
    %503 = arith.addf %470, %502 : vector<2x1xf32>
    %504 = math.exp %501 : vector<2x1xf32>
    %505 = arith.mulf %503, %504 : vector<2x1xf32>
    %506 = arith.addf %471, %501 : vector<2x1xf32>
    %cst_393 = arith.constant 5.000000e-01 : f32
    %507 = vector.broadcast %cst_393 : f32 to vector<2x1xf32>
    %508 = arith.mulf %507, %505 : vector<2x1xf32>
    %509 = arith.mulf %508, %505 : vector<2x1xf32>
    %510 = arith.subf %509, %506 : vector<2x1xf32>
    %511 = vector.shape_cast %510 : vector<2x1xf32> to vector<1x2x1xf32>
    %cst_394 = arith.constant dense<0.000000e+00> : vector<1xf32>
    %512 = vector.multi_reduction <add>, %511, %cst_394 [1, 2] : vector<1x2x1xf32> to vector<1xf32>
    %513 = vector.shape_cast %512 : vector<1xf32> to vector<1x1x1xf32>
    %514 = vector.extract %513[0, 0, 0] : f32 from vector<1x1x1xf32>
    %cst_395 = arith.constant 2.000000e+00 : f32
    %515 = arith.divf %514, %cst_395 : f32
    %c2_396 = arith.constant 2 : index
    %c0_397 = arith.constant 0 : index
    %c0_398 = arith.constant 0 : index
    %516 = vector.load %arg6[%c2_396, %c0_397, %c0_398] : memref<3x2x1xf32, #tpu.memory_space<vmem>>, vector<1x2x1xf32>
    %517 = vector.shape_cast %516 : vector<1x2x1xf32> to vector<2x1xf32>
    %cst_399 = arith.constant 0.000000e+00 : f32
    %518 = vector.broadcast %cst_399 : f32 to vector<2x1xf32>
    %c0_400 = arith.constant 0 : index
    %c0_401 = arith.constant 0 : index
    %c0_402 = arith.constant 0 : index
    %519 = vector.load %arg45[%c0_400, %c0_401, %c0_402] : memref<2x1x32xf32, #tpu.memory_space<vmem>>, vector<1x1x32xf32>
    %520 = vector.shape_cast %519 : vector<1x1x32xf32> to vector<1x32xf32>
    %c0_403 = arith.constant 0 : index
    %c0_404 = arith.constant 0 : index
    %c0_405 = arith.constant 0 : index
    %c0_406 = arith.constant 0 : index
    %521 = vector.load %arg44[%c0_403, %c0_404, %c0_405, %c0_406] : memref<2x4x32x32xf32, #tpu.memory_space<vmem>>, vector<1x1x32x32xf32>
    %522 = vector.shape_cast %521 : vector<1x1x32x32xf32> to vector<32x32xf32>
    %cst_407 = arith.constant dense<0.000000e+00> : vector<2x32xf32>
    %523 = tpu.matmul %66, %522, %cst_407 {dimension_numbers = #tpu.dot_dimension_numbers<[1], [0], [0], [1], [0, 0, 1, 1], [], []>} : vector<2x32xf32>, vector<32x32xf32>, vector<2x32xf32> -> vector<2x32xf32>
    %524 = vector.broadcast %520 : vector<1x32xf32> to vector<2x32xf32>
    %525 = arith.addf %524, %523 : vector<2x32xf32>
    %c0_408 = arith.constant 0 : index
    %c1_409 = arith.constant 1 : index
    %c0_410 = arith.constant 0 : index
    %c0_411 = arith.constant 0 : index
    %526 = vector.load %arg44[%c0_408, %c1_409, %c0_410, %c0_411] : memref<2x4x32x32xf32, #tpu.memory_space<vmem>>, vector<1x1x32x32xf32>
    %527 = vector.shape_cast %526 : vector<1x1x32x32xf32> to vector<32x32xf32>
    %cst_412 = arith.constant dense<0.000000e+00> : vector<2x32xf32>
    %528 = tpu.matmul %69, %527, %cst_412 {dimension_numbers = #tpu.dot_dimension_numbers<[1], [0], [0], [1], [0, 0, 1, 1], [], []>} : vector<2x32xf32>, vector<32x32xf32>, vector<2x32xf32> -> vector<2x32xf32>
    %529 = arith.addf %525, %528 : vector<2x32xf32>
    %c0_413 = arith.constant 0 : index
    %c2_414 = arith.constant 2 : index
    %c0_415 = arith.constant 0 : index
    %c0_416 = arith.constant 0 : index
    %530 = vector.load %arg44[%c0_413, %c2_414, %c0_415, %c0_416] : memref<2x4x32x32xf32, #tpu.memory_space<vmem>>, vector<1x1x32x32xf32>
    %531 = vector.shape_cast %530 : vector<1x1x32x32xf32> to vector<32x32xf32>
    %cst_417 = arith.constant dense<0.000000e+00> : vector<2x32xf32>
    %532 = tpu.matmul %72, %531, %cst_417 {dimension_numbers = #tpu.dot_dimension_numbers<[1], [0], [0], [1], [0, 0, 1, 1], [], []>} : vector<2x32xf32>, vector<32x32xf32>, vector<2x32xf32> -> vector<2x32xf32>
    %533 = arith.addf %529, %532 : vector<2x32xf32>
    %c0_418 = arith.constant 0 : index
    %c3_419 = arith.constant 3 : index
    %c0_420 = arith.constant 0 : index
    %c0_421 = arith.constant 0 : index
    %534 = vector.load %arg44[%c0_418, %c3_419, %c0_420, %c0_421] : memref<2x4x32x32xf32, #tpu.memory_space<vmem>>, vector<1x1x32x32xf32>
    %535 = vector.shape_cast %534 : vector<1x1x32x32xf32> to vector<32x32xf32>
    %cst_422 = arith.constant dense<0.000000e+00> : vector<2x32xf32>
    %536 = tpu.matmul %286, %535, %cst_422 {dimension_numbers = #tpu.dot_dimension_numbers<[1], [0], [0], [1], [0, 0, 1, 1], [], []>} : vector<2x32xf32>, vector<32x32xf32>, vector<2x32xf32> -> vector<2x32xf32>
    %537 = arith.addf %533, %536 : vector<2x32xf32>
    %538 = math.tanh %537 : vector<2x32xf32>
    %c0_423 = arith.constant 0 : index
    %c0_424 = arith.constant 0 : index
    %c0_425 = arith.constant 0 : index
    %539 = vector.load %arg46[%c0_423, %c0_424, %c0_425] : memref<2x32x2xf32, #tpu.memory_space<vmem>>, vector<1x32x2xf32>
    %540 = vector.shape_cast %539 : vector<1x32x2xf32> to vector<32x2xf32>
    %cst_426 = arith.constant dense<0.000000e+00> : vector<2x2xf32>
    %541 = tpu.matmul %538, %540, %cst_426 {dimension_numbers = #tpu.dot_dimension_numbers<[1], [0], [0], [1], [0, 0, 1, 1], [], []>} : vector<2x32xf32>, vector<32x2xf32>, vector<2x2xf32> -> vector<2x2xf32>
    %c0_427 = arith.constant 0 : index
    %c0_428 = arith.constant 0 : index
    %c0_429 = arith.constant 0 : index
    %542 = vector.load %arg47[%c0_427, %c0_428, %c0_429] : memref<2x1x2xf32, #tpu.memory_space<vmem>>, vector<1x1x2xf32>
    %543 = vector.shape_cast %542 : vector<1x1x2xf32> to vector<1x2xf32>
    %544 = vector.broadcast %543 : vector<1x2xf32> to vector<2x2xf32>
    %545 = arith.addf %541, %544 : vector<2x2xf32>
    %c0_430 = arith.constant 0 : index
    %c0_431 = arith.constant 0 : index
    %c0_432 = arith.constant 0 : index
    %546 = vector.load %arg48[%c0_430, %c0_431, %c0_432] : memref<2x1x1xf32, #tpu.memory_space<vmem>>, vector<1x1x1xf32>
    %547 = vector.shape_cast %546 : vector<1x1x1xf32> to vector<1x1xf32>
    %548 = math.exp %547 : vector<1x1xf32>
    %549 = vector.extract_strided_slice %545 {offsets = [0, 0], sizes = [2, 1], strides = [1, 1]} : vector<2x2xf32> to vector<2x1xf32>
    %550 = math.tanh %549 : vector<2x1xf32>
    %551 = vector.broadcast %548 : vector<1x1xf32> to vector<2x1xf32>
    %552 = arith.mulf %551, %550 : vector<2x1xf32>
    %553 = vector.extract_strided_slice %545 {offsets = [0, 1], sizes = [2, 1], strides = [1, 1]} : vector<2x2xf32> to vector<2x1xf32>
    %554 = arith.addf %517, %553 : vector<2x1xf32>
    %555 = math.exp %552 : vector<2x1xf32>
    %556 = arith.mulf %554, %555 : vector<2x1xf32>
    %557 = arith.addf %518, %552 : vector<2x1xf32>
    %c1_433 = arith.constant 1 : index
    %c0_434 = arith.constant 0 : index
    %c0_435 = arith.constant 0 : index
    %558 = vector.load %arg45[%c1_433, %c0_434, %c0_435] : memref<2x1x32xf32, #tpu.memory_space<vmem>>, vector<1x1x32xf32>
    %559 = vector.shape_cast %558 : vector<1x1x32xf32> to vector<1x32xf32>
    %c1_436 = arith.constant 1 : index
    %c0_437 = arith.constant 0 : index
    %c0_438 = arith.constant 0 : index
    %c0_439 = arith.constant 0 : index
    %560 = vector.load %arg44[%c1_436, %c0_437, %c0_438, %c0_439] : memref<2x4x32x32xf32, #tpu.memory_space<vmem>>, vector<1x1x32x32xf32>
    %561 = vector.shape_cast %560 : vector<1x1x32x32xf32> to vector<32x32xf32>
    %cst_440 = arith.constant dense<0.000000e+00> : vector<2x32xf32>
    %562 = tpu.matmul %66, %561, %cst_440 {dimension_numbers = #tpu.dot_dimension_numbers<[1], [0], [0], [1], [0, 0, 1, 1], [], []>} : vector<2x32xf32>, vector<32x32xf32>, vector<2x32xf32> -> vector<2x32xf32>
    %563 = vector.broadcast %559 : vector<1x32xf32> to vector<2x32xf32>
    %564 = arith.addf %563, %562 : vector<2x32xf32>
    %c1_441 = arith.constant 1 : index
    %c1_442 = arith.constant 1 : index
    %c0_443 = arith.constant 0 : index
    %c0_444 = arith.constant 0 : index
    %565 = vector.load %arg44[%c1_441, %c1_442, %c0_443, %c0_444] : memref<2x4x32x32xf32, #tpu.memory_space<vmem>>, vector<1x1x32x32xf32>
    %566 = vector.shape_cast %565 : vector<1x1x32x32xf32> to vector<32x32xf32>
    %cst_445 = arith.constant dense<0.000000e+00> : vector<2x32xf32>
    %567 = tpu.matmul %69, %566, %cst_445 {dimension_numbers = #tpu.dot_dimension_numbers<[1], [0], [0], [1], [0, 0, 1, 1], [], []>} : vector<2x32xf32>, vector<32x32xf32>, vector<2x32xf32> -> vector<2x32xf32>
    %568 = arith.addf %564, %567 : vector<2x32xf32>
    %c1_446 = arith.constant 1 : index
    %c2_447 = arith.constant 2 : index
    %c0_448 = arith.constant 0 : index
    %c0_449 = arith.constant 0 : index
    %569 = vector.load %arg44[%c1_446, %c2_447, %c0_448, %c0_449] : memref<2x4x32x32xf32, #tpu.memory_space<vmem>>, vector<1x1x32x32xf32>
    %570 = vector.shape_cast %569 : vector<1x1x32x32xf32> to vector<32x32xf32>
    %cst_450 = arith.constant dense<0.000000e+00> : vector<2x32xf32>
    %571 = tpu.matmul %72, %570, %cst_450 {dimension_numbers = #tpu.dot_dimension_numbers<[1], [0], [0], [1], [0, 0, 1, 1], [], []>} : vector<2x32xf32>, vector<32x32xf32>, vector<2x32xf32> -> vector<2x32xf32>
    %572 = arith.addf %568, %571 : vector<2x32xf32>
    %c1_451 = arith.constant 1 : index
    %c3_452 = arith.constant 3 : index
    %c0_453 = arith.constant 0 : index
    %c0_454 = arith.constant 0 : index
    %573 = vector.load %arg44[%c1_451, %c3_452, %c0_453, %c0_454] : memref<2x4x32x32xf32, #tpu.memory_space<vmem>>, vector<1x1x32x32xf32>
    %574 = vector.shape_cast %573 : vector<1x1x32x32xf32> to vector<32x32xf32>
    %cst_455 = arith.constant dense<0.000000e+00> : vector<2x32xf32>
    %575 = tpu.matmul %286, %574, %cst_455 {dimension_numbers = #tpu.dot_dimension_numbers<[1], [0], [0], [1], [0, 0, 1, 1], [], []>} : vector<2x32xf32>, vector<32x32xf32>, vector<2x32xf32> -> vector<2x32xf32>
    %576 = arith.addf %572, %575 : vector<2x32xf32>
    %577 = math.tanh %576 : vector<2x32xf32>
    %c1_456 = arith.constant 1 : index
    %c0_457 = arith.constant 0 : index
    %c0_458 = arith.constant 0 : index
    %578 = vector.load %arg46[%c1_456, %c0_457, %c0_458] : memref<2x32x2xf32, #tpu.memory_space<vmem>>, vector<1x32x2xf32>
    %579 = vector.shape_cast %578 : vector<1x32x2xf32> to vector<32x2xf32>
    %cst_459 = arith.constant dense<0.000000e+00> : vector<2x2xf32>
    %580 = tpu.matmul %577, %579, %cst_459 {dimension_numbers = #tpu.dot_dimension_numbers<[1], [0], [0], [1], [0, 0, 1, 1], [], []>} : vector<2x32xf32>, vector<32x2xf32>, vector<2x2xf32> -> vector<2x2xf32>
    %c1_460 = arith.constant 1 : index
    %c0_461 = arith.constant 0 : index
    %c0_462 = arith.constant 0 : index
    %581 = vector.load %arg47[%c1_460, %c0_461, %c0_462] : memref<2x1x2xf32, #tpu.memory_space<vmem>>, vector<1x1x2xf32>
    %582 = vector.shape_cast %581 : vector<1x1x2xf32> to vector<1x2xf32>
    %583 = vector.broadcast %582 : vector<1x2xf32> to vector<2x2xf32>
    %584 = arith.addf %580, %583 : vector<2x2xf32>
    %c1_463 = arith.constant 1 : index
    %c0_464 = arith.constant 0 : index
    %c0_465 = arith.constant 0 : index
    %585 = vector.load %arg48[%c1_463, %c0_464, %c0_465] : memref<2x1x1xf32, #tpu.memory_space<vmem>>, vector<1x1x1xf32>
    %586 = vector.shape_cast %585 : vector<1x1x1xf32> to vector<1x1xf32>
    %587 = math.exp %586 : vector<1x1xf32>
    %588 = vector.extract_strided_slice %584 {offsets = [0, 0], sizes = [2, 1], strides = [1, 1]} : vector<2x2xf32> to vector<2x1xf32>
    %589 = math.tanh %588 : vector<2x1xf32>
    %590 = vector.broadcast %587 : vector<1x1xf32> to vector<2x1xf32>
    %591 = arith.mulf %590, %589 : vector<2x1xf32>
    %592 = vector.extract_strided_slice %584 {offsets = [0, 1], sizes = [2, 1], strides = [1, 1]} : vector<2x2xf32> to vector<2x1xf32>
    %593 = arith.addf %556, %592 : vector<2x1xf32>
    %594 = math.exp %591 : vector<2x1xf32>
    %595 = arith.mulf %593, %594 : vector<2x1xf32>
    %596 = arith.addf %557, %591 : vector<2x1xf32>
    %cst_466 = arith.constant 5.000000e-01 : f32
    %597 = vector.broadcast %cst_466 : f32 to vector<2x1xf32>
    %598 = arith.mulf %597, %595 : vector<2x1xf32>
    %599 = arith.mulf %598, %595 : vector<2x1xf32>
    %600 = arith.subf %599, %596 : vector<2x1xf32>
    %601 = vector.shape_cast %600 : vector<2x1xf32> to vector<1x2x1xf32>
    %cst_467 = arith.constant dense<0.000000e+00> : vector<1xf32>
    %602 = vector.multi_reduction <add>, %601, %cst_467 [1, 2] : vector<1x2x1xf32> to vector<1xf32>
    %603 = vector.shape_cast %602 : vector<1xf32> to vector<1x1x1xf32>
    %604 = vector.extract %603[0, 0, 0] : f32 from vector<1x1x1xf32>
    %cst_468 = arith.constant 2.000000e+00 : f32
    %605 = arith.divf %604, %cst_468 : f32
    %cst_469 = arith.constant 1.000000e+00 : f32
    %606 = arith.mulf %359, %cst_469 : f32
    %cst_470 = arith.constant 1.000000e+00 : f32
    %607 = arith.mulf %433, %cst_470 : f32
    %608 = arith.addf %606, %607 : f32
    %cst_471 = arith.constant 1.000000e+00 : f32
    %609 = arith.mulf %515, %cst_471 : f32
    %610 = arith.addf %608, %609 : f32
    %cst_472 = arith.constant 1.000000e+00 : f32
    %611 = arith.mulf %605, %cst_472 : f32
    %612 = arith.addf %610, %611 : f32
    %cst_473 = arith.constant 1.000000e+00 : f32
    %613 = arith.mulf %49, %cst_473 : f32
    %614 = arith.addf %612, %613 : f32
    %615 = tpu.iota {dimensions = array<i32: 1>} : vector<1x128xi32>
    %cst_474 = arith.constant 0.000000e+00 : f32
    %616 = vector.broadcast %cst_474 : f32 to vector<1x128xf32>
    %c0_i32 = arith.constant 0 : i32
    %617 = vector.broadcast %c0_i32 : i32 to vector<1x128xi32>
    %618 = arith.cmpi eq, %615, %617 : vector<1x128xi32>
    %cst_475 = arith.constant 0.000000e+00 : f32
    %619 = vector.broadcast %614 : f32 to vector<1x128xf32>
    %620 = vector.broadcast %cst_475 : f32 to vector<1x128xf32>
    %621 = arith.select %618, %619, %620 : vector<1x128xi1>, vector<1x128xf32>
    %622 = arith.addf %616, %621 : vector<1x128xf32>
    %c1_i32 = arith.constant 1 : i32
    %623 = vector.broadcast %c1_i32 : i32 to vector<1x128xi32>
    %624 = arith.cmpi eq, %615, %623 : vector<1x128xi32>
    %cst_476 = arith.constant 0.000000e+00 : f32
    %625 = vector.broadcast %359 : f32 to vector<1x128xf32>
    %626 = vector.broadcast %cst_476 : f32 to vector<1x128xf32>
    %627 = arith.select %624, %625, %626 : vector<1x128xi1>, vector<1x128xf32>
    %628 = arith.addf %622, %627 : vector<1x128xf32>
    %c2_i32 = arith.constant 2 : i32
    %629 = vector.broadcast %c2_i32 : i32 to vector<1x128xi32>
    %630 = arith.cmpi eq, %615, %629 : vector<1x128xi32>
    %cst_477 = arith.constant 0.000000e+00 : f32
    %631 = vector.broadcast %49 : f32 to vector<1x128xf32>
    %632 = vector.broadcast %cst_477 : f32 to vector<1x128xf32>
    %633 = arith.select %630, %631, %632 : vector<1x128xi1>, vector<1x128xf32>
    %634 = arith.addf %628, %633 : vector<1x128xf32>
    %c3_i32 = arith.constant 3 : i32
    %635 = vector.broadcast %c3_i32 : i32 to vector<1x128xi32>
    %636 = arith.cmpi eq, %615, %635 : vector<1x128xi32>
    %cst_478 = arith.constant 0.000000e+00 : f32
    %637 = vector.broadcast %433 : f32 to vector<1x128xf32>
    %638 = vector.broadcast %cst_478 : f32 to vector<1x128xf32>
    %639 = arith.select %636, %637, %638 : vector<1x128xi1>, vector<1x128xf32>
    %640 = arith.addf %634, %639 : vector<1x128xf32>
    %c4_i32 = arith.constant 4 : i32
    %641 = vector.broadcast %c4_i32 : i32 to vector<1x128xi32>
    %642 = arith.cmpi eq, %615, %641 : vector<1x128xi32>
    %cst_479 = arith.constant 0.000000e+00 : f32
    %643 = vector.broadcast %515 : f32 to vector<1x128xf32>
    %644 = vector.broadcast %cst_479 : f32 to vector<1x128xf32>
    %645 = arith.select %642, %643, %644 : vector<1x128xi1>, vector<1x128xf32>
    %646 = arith.addf %640, %645 : vector<1x128xf32>
    %c5_i32 = arith.constant 5 : i32
    %647 = vector.broadcast %c5_i32 : i32 to vector<1x128xi32>
    %648 = arith.cmpi eq, %615, %647 : vector<1x128xi32>
    %cst_480 = arith.constant 0.000000e+00 : f32
    %649 = vector.broadcast %605 : f32 to vector<1x128xf32>
    %650 = vector.broadcast %cst_480 : f32 to vector<1x128xf32>
    %651 = arith.select %648, %649, %650 : vector<1x128xi1>, vector<1x128xf32>
    %652 = arith.addf %646, %651 : vector<1x128xf32>
    %c0_481 = arith.constant 0 : index
    %c0_482 = arith.constant 0 : index
    %653 = vector.load %arg49[%c0_481, %c0_482] : memref<1x128xf32, #tpu.memory_space<vmem>>, vector<1x128xf32>
    tpu.vector_store %arg49[%c0_481, %c0_482], %652 {strides = array<i32>} : memref<1x128xf32, #tpu.memory_space<vmem>>, vector<1x128xf32>,
    return
  }
}

</mosaic_0001>

<bundles_post_ra>
// kernel: eq.80
= control target key start
LH: loop header
LB: loop body
LE: loop exit
PB: predicated region body
PF: predicated region fallthrough
CT: control target
= control target key end

     0   :  { %vm7_vm0 = vcmask 15360   ;;  %s37_s8 = smov 2   ;;  %s38_s9 = smov 4   ;;  %vm13_vm1 = vcmask 64560   ;;  %vm19_vm2 = vcmask 48160   ;;  %vm25_vm3 = vcmask 31760   ;;  %s55_s0 = inlined_call_operand.vmem [shape: s32[4,2], index: 0, kind: input, shape index: {}]   ;;  %s56_s1 = inlined_call_operand.vmem [shape: s32[8], index: 1, kind: output, shape index: {}]  }
   0x1   :  { %v4_v0 = vld [vmem:[%s55_s0] sm:$0xf]  ;;  %s36_s0 = smov 6  }
   0x2   :  { %5 = vst [vmem:[#allocation1] sm:$0xf] %v4_v0 }
   0x9   :  { %v10_v1 = vld [vmem:[#allocation1 + $0x3] sm:$0x1]   ;;  %v22_v2 = vld [vmem:[#allocation1 + $0x1] sm:$0x1]   ;;  %v6_v3 = vld [vmem:[#allocation1] sm:$0x1]  }
   0xa   :  { %11 = vrot.lane.b32.xlu0 %v10_v1, %s36_s0  ;;  %23 = vrot.lane.b32.xlu1 %v22_v2, %s37_s8  ;;  %v16_v4 = vld [vmem:[#allocation1 + $0x2] sm:$0x1]   ;;  %8 = vst.msk [vmem:[#allocation0] sm:$0x1] %vm7_vm0, %v6_v3  }
   0xe   :  { %17 = vrot.lane.b32.xlu0 %v16_v4, %s38_s9 }
  0x7c   :  { %v12_v5 = vpop.permute.xlu0 %11   ;;  %v24_v6 = vpop.permute.xlu1 %23  }
  0x7d   :  { %14 = vst.msk [vmem:[#allocation0] sm:$0x1] %vm13_vm1, %v12_v5  }
  0x80   :  { %v18_v7 = vpop.permute.xlu0 %17  }
  0x81   :  { %20 = vst.msk [vmem:[#allocation0] sm:$0x1] %vm19_vm2, %v18_v7  }
  0x82   :  { %26 = vst.msk [vmem:[#allocation0] sm:$0x1] %vm25_vm3, %v24_v6  }
  0x89   :  { %v30_v8 = vld [vmem:[#allocation0] sm:$0x1] }
  0x8a   :  { %32 = vst [vmem:[%s56_s1] sm:$0x1] %v30_v8 }

// kernel: tile.39
= control target key start
LH: loop header
LB: loop body
LE: loop exit
PB: predicated region body
PF: predicated region fallthrough
CT: control target
= control target key end

     0   :  { %s29_s10 = smov 3  ;;  %s10_s11 = smov 3  ;;  %vm12_vm0 = vcmask 15360   ;;  %vm19_vm1 = vcmask 64560   ;;  %vm26_vm2 = vcmask 48160   ;;  %vm33_vm3 = vcmask 31760   ;;  %s67_s0 = inlined_call_operand.vmem [shape: f32[4,2,2], index: 0, kind: input, shape index: {}]   ;;  %s68_s1 = inlined_call_operand.vmem [shape: f32[8,2], index: 1, kind: output, shape index: {}]  }
   0x1   :  { %v41_v0 = vld [vmem:[%s67_s0 + $0x4] sm:$0xf]  ;;  %v8_v1 = vld [vmem:[%s67_s0] sm:$0xf]  ;;  %s15_s0 = smov 3  ;;  %s22_s12 = smov 3 }
   0x2   :  { %7 = vst [vmem:[#allocation1 + $0x8] sm:$0xf] %v41_v0  ;;  %9 = vst [vmem:[#allocation1] sm:$0xf] %v8_v1  ;;  %s45_s13 = smov 6   ;;  %s46_s14 = smov 2  }
   0x3   :  { %s47_s15 = smov 4  }
   0x9   :  { %v16_v2 = vld [vmem:[#allocation1 + $0x3] ss:$8 sm:%s15_s0]   ;;  %v30_v3 = vld [vmem:[#allocation1 + $0x1] ss:$8 sm:%s29_s10]   ;;  %v11_v4 = vld [vmem:[#allocation1] ss:$8 sm:%s10_s11]  }
   0xa   :  { %17 = vrot.lane.b32.xlu0 %v16_v2, %s45_s13  ;;  %31 = vrot.lane.b32.xlu1 %v30_v3, %s46_s14  ;;  %v23_v5 = vld [vmem:[#allocation1 + $0x2] ss:$8 sm:%s22_s12]   ;;  %13 = vst.msk [vmem:[#allocation0] sm:$0x3] %vm12_vm0, %v11_v4  }
   0xe   :  { %24 = vrot.lane.b32.xlu0 %v23_v5, %s47_s15 }
  0x7c   :  { %v18_v6 = vpop.permute.xlu0 %17   ;;  %v32_v7 = vpop.permute.xlu1 %31  }
  0x7d   :  { %20 = vst.msk [vmem:[#allocation0] sm:$0x3] %vm19_vm1, %v18_v6  }
  0x80   :  { %v25_v8 = vpop.permute.xlu0 %24  }
  0x81   :  { %27 = vst.msk [vmem:[#allocation0] sm:$0x3] %vm26_vm2, %v25_v8  }
  0x82   :  { %34 = vst.msk [vmem:[#allocation0] sm:$0x3] %vm33_vm3, %v32_v7  }
  0x89   :  { %v38_v9 = vld [vmem:[#allocation0] sm:$0x3] }
  0x8a   :  { %40 = vst [vmem:[%s68_s1] sm:$0x3] %v38_v9 }

// kernel: sphgen_forward.1
= control target key start
LH: loop header
LB: loop body
LE: loop exit
PB: predicated region body
PF: predicated region fallthrough
CT: control target
= control target key end

     0   :  { %v8374_v0 = vmov 0.0   ;;  %s8375_s3 = smov 11   ;;  %vm8376_vm0 = vmmov 0   ;;  %s8377_s7 = smov 1   ;;  %vm216_vm1 = vcmask 64512   ;;  %v8379_v3 = vmov 0.0|0.0   ;;  %s9409_s0 = inlined_call_operand.smem [shape: u32[50], index: -1, kind: input, shape index: {}] }
   0x1   :  { %7186 = vmatprep.subr.mxu1 %v8374_v0  ;;  %s6560_s6 = sld [smem:[%s9409_s0 + %s8375_s3]]   ;;  %7188 = vmatprep.mubr.msk.f32.mxu1 %vm8376_vm0, %v8374_v0  ;;  %s8378_s11 = smov 13   ;;  %vm304_vm2 = vcmask 261120   ;;  %vm1276_vm3 = vcmask 1041408   ;;  %vm1272_vm4 = vcmask 15360   ;;  %vm482_vm8 = vcmask 7168  }
   0x2   :  { %s6550_s10 = sld [smem:[%s9409_s0 + %s8377_s7]]   ;;  %7210 = vmatprep.mubr.msk.f32.mxu0 %vm8376_vm0, %v8374_v0  ;;  %7873 = vmatprep.subr.bf16.mxu0 %v8379_v3  ;;  %s8380_s15 = smov 15   ;;  %vm4941_vm9 = vcmask 1024   ;;  %vm4389_vm10 = vcmask 25600  }
   0x3   :  { %s6562_s14 = sld [smem:[%s9409_s0 + %s8378_s11]]   ;;  %s8381_s19 = smov 12  }
   0x4   :  { %s8458_s18 = sld [smem:[%s9409_s0 + %s8380_s15]]   ;;  %s8382_s26 = smov 2  }
   0x5   :  { %s6561_s22 = sld [smem:[%s9409_s0 + %s8381_s19]]   ;;  %s8383_s30 = smov 4  }
   0x6   :  { %s1_s25 = sld [smem:[%s9409_s0]]   ;;  %s8384_s4 = smov 18  }
   0x7   :  { %v208_v1 = vld [vmem:[%s6560_s6] sm:$0xff]  ;;  %s6551_s29 = sld [smem:[%s9409_s0 + %s8382_s26]]   ;;  %s8385_s8 = smov 16  }
   0x8   :  { %v207_v2 = vld [vmem:[%s6550_s10] sm:$0xff]  ;;  %7187 = vmatpush3.msra.mxu1 %v208_v1  ;;  %s8475_s3 = sld [smem:[%s9409_s0 + %s8383_s30]]   ;;  %s8386_s12 = smov 14  }
   0x9   :  { %7189 = vmatmul.mubr.msk.f32.vlgmr.msra.gmra.mrb[0].mxu1 %vm216_vm1, %v207_v2  ;;  %7867 = vmatprep.subr.bf16.mxu1 %v8379_v3  ;;  %v293_v4 = vld [vmem:[%s6562_s14] sm:$0xff]  ;;  %v294_v5 = vld [vmem:[%s6562_s14 + $0x8] sm:$0xff]  ;;  %v295_v6 = vld [vmem:[%s6562_s14 + $0x10] sm:$0xff]  ;;  %s8489_s7 = sld [smem:[%s9409_s0 + %s8384_s4]]   ;;  %s8387_s16 = smov 17  }
   0xa   :  { %7199 = vmatprep.mubr.msk.f32.mxu1 %vm8376_vm0, %v8374_v0  ;;  %v7868_v7 = vpack.c.bf16 %v294_v5, %v293_v4  ;;  %v296_v8 = vld [vmem:[%s6562_s14 + $0x18] sm:$0xff]  ;;  %v379_v10 = vld [vmem:[%s8458_s18] sm:$0xff]  ;;  %v380_v11 = vld [vmem:[%s8458_s18 + $0x8] sm:$0xff]  ;;  %s6565_s11 = sld [smem:[%s9409_s0 + %s8385_s8]]   ;;  %s8388_s20 = smov 19  }
   0xb   :  { %v7871_v9 = vpack.c.bf16 %v296_v8, %v295_v6  ;;  %v7874_v12 = vpack.c.bf16 %v380_v11, %v379_v10  ;;  %v6599_v13 = vld [vmem:[%s6561_s22] ss:$0 sm:$0xff]  ;;  %v381_v32 = vld [vmem:[%s8458_s18 + $0x10] sm:$0xff]  ;;  %v382_v33 = vld [vmem:[%s8458_s18 + $0x18] sm:$0xff]  ;;  %s6563_s15 = sld [smem:[%s9409_s0 + %s8386_s12]]   ;;  %s8389_s24 = smov 8  }
   0xc   :  { %7869 = vmatpush3.bf16.msra.mxu1 %v7868_v7  ;;  %v291_v17 = vld [vmem:[%s1_s25] sm:$0xff]  ;;  %v7877_v34 = vpack.c.bf16 %v382_v33, %v381_v32  ;;  %s6566_s19 = sld [smem:[%s9409_s0 + %s8387_s16]]   ;;  %s8390_s28 = smov 10  }
   0xd   :  { %7870 = vmatprep.subr.bf16.mxu1 %v8379_v3  ;;  %7875 = vmatpush3.bf16.msra.mxu0 %v7874_v12  ;;  %v496_v20 = vld [vmem:[%s6551_s29] sm:$0xff]  ;;  %s8590_s23 = sld [smem:[%s9409_s0 + %s8388_s20]]   ;;  %s8391_s2 = smov 5  }
   0xe   :  { %7876 = vmatprep.subr.bf16.mxu0 %v8379_v3  ;;  %v498_v21 = vld [vmem:[%s8475_s3] sm:$0x3]  ;;  %v6608_v23 = vld [vmem:[%s8475_s3 + $0x2] sm:$0x3]  ;;  %v6612_v24 = vld [vmem:[%s8475_s3 + $0x6] sm:$0x3]  ;;  %s6557_s27 = sld [smem:[%s9409_s0 + %s8389_s24]]  }
   0xf   :  { %v1107_v25 = vld [vmem:[%s8489_s7] sm:$0xff]  ;;  %v1108_v26 = vld [vmem:[%s8489_s7 + $0x8] sm:$0xff]  ;;  %v1109_v29 = vld [vmem:[%s8489_s7 + $0x10] sm:$0xff]  ;;  %s6559_s1 = sld [smem:[%s9409_s0 + %s8390_s28]]   ;;  %s8392_s6 = smov 20  }
  0x10   :  { %7872 = vmatpush3.bf16.msra.mxu1 %v7871_v9  ;;  %v6616_v27 = vld [vmem:[%s8475_s3 + $0xa] sm:$0x3]  ;;  %v7886_v28 = vpack.c.bf16 %v1108_v26, %v1107_v25  ;;  %v1110_v30 = vld [vmem:[%s8489_s7 + $0x18] sm:$0xff]  ;;  %v104_v35 = vstv %s6565_s11  ;;  %v6610_v45 = vld [vmem:[%s8475_s3 + $0x4] sm:$0x3]  ;;  %s8623_s5 = sld [smem:[%s9409_s0 + %s8391_s2]]   ;;  %s8393_s11 = smov 9  }
  0x11   :  { %7213 = vmatprep.subr.mxu1 %v8374_v0  ;;  %v7889_v31 = vpack.c.bf16 %v1110_v30, %v1109_v29  ;;  %7878 = vmatpush3.bf16.msra.mxu0 %v7877_v34  ;;  %105 = vst [vmem:[#allocation2] sm:$0x1] %v104_v35  ;;  %v6601_v36 = vld [vmem:[%s6563_s15] ss:$0 sm:$0xff]  ;;  %v6614_v50 = vld [vmem:[%s8475_s3 + $0x8] sm:$0x3]  ;;  %s6569_s10 = sld [smem:[%s9409_s0 + %s8392_s6]]  }
  0x12   :  { %7218 = vmatprep.subr.mxu0 %v8374_v0  ;;  %v1023_v46 = vld [vmem:[%s6566_s19] sm:$0xff]  ;;  %v1024_v47 = vld [vmem:[%s6566_s19 + $0x8] sm:$0xff]  ;;  %v1025_v52 = vld [vmem:[%s6566_s19 + $0x10] sm:$0xff]  ;;  %s6558_s14 = sld [smem:[%s9409_s0 + %s8393_s11]]   ;;  %s8395_s18 = smov 22  }
  0x13   :  { %v7880_v51 = vpack.c.bf16 %v1024_v47, %v1023_v46  ;;  %v1026_v53 = vld [vmem:[%s6566_s19 + $0x18] sm:$0xff]  ;;  %v6625_v57 = vld [vmem:[%s8489_s7 + $0x20] sm:$0xff]  ;;  %v6626_v58 = vld [vmem:[%s8489_s7 + $0x28] sm:$0xff]  ;;  %s8682_s21 = sld [smem:[%s9409_s0 + %s8395_s18]]   ;;  %s8396_s22 = smov 23  }
  0x14   :  { %v7883_v56 = vpack.c.bf16 %v1026_v53, %v1025_v52  ;;  %v7892_v59 = vpack.c.bf16 %v6626_v58, %v6625_v57  ;;  %v6627_v60 = vld [vmem:[%s8489_s7 + $0x30] sm:$0xff]  ;;  %v6628_v61 = vld [vmem:[%s8489_s7 + $0x38] sm:$0xff]  ;;  %v6621_v11 = vld [vmem:[%s8590_s23] ss:$0 sm:$0xff]  ;;  %s6572_s26 = sld [smem:[%s9409_s0 + %s8396_s22]]   ;;  %s8399_s6 = smov 26  }
  0x15   :  { %v7895_v1 = vpack.c.bf16 %v6628_v61, %v6627_v60  ;;  %v6641_v47 = vld [vmem:[%s8489_s7 + $0x58] sm:$0xff]  ;;  %s8400_s11 = smov 27   ;;  %s8404_s22 = smov 33  }
  0x16   :  { %s8409_s12 = smov 34   ;;  %s8410_s15 = smov 36  }
  0x17   :  { %v1677_v58 = vld [vmem:[%s6569_s10 + $0x10] sm:$0xff]  ;;  %s9052_s18 = sld [smem:[%s9409_s0 + %s8410_s15]]   ;;  %s8412_s24 = smov 3  }
  0x18   :  { %s8415_s2 = smov 39   ;;  %s8416_s9 = smov 41  }
  0x19   :  { %s9119_s8 = sld [smem:[%s9409_s0 + %s8415_s2]]   ;;  %s8418_s15 = smov 40  }
  0x1a   :  { %s8422_s2 = smov 46  }
  0xdc   :  { %v286_v14 = vpop.f32.mrb[0].mxu1 }
  0xdd   :  { %v287_v15 = vadd.f32 %v6599_v13, %v286_v14  ;;  %v7190_v16 = vpop.f32.mrb[1].mxu1 }
  0xde   :  { %v6623_v16 = vld [vmem:[%s8590_s23 + $0x1] ss:$0 sm:$0xff] }
  0xdf   :  { %8284 = vtanh.f32 %v287_v15  ;;  %v8598_v15 = vld [vmem:[%s6557_s27] sm:$0xff]  ;;  %s8397_s27 = smov 24  }
  0xe0   :  { %s8750_s30 = sld [smem:[%s9409_s0 + %s8397_s27]]   ;;  %s8413_s27 = smov 37  }
  0xe9   :  { %v8285_v18 = vpop.eup %8284 }
  0xea   :  { %v8477_v19 = vadd.f32 %v8285_v18, %v291_v17  ;;  %v6630_v17 = vld [vmem:[%s8590_s23 + $0x2] ss:$0 sm:$0xff] }
  0xec   :  { %7200 = vmatmul.mubr.msk.f32.vlgmr.msra.gmra.mrb[2].mxu1 %vm304_vm2, %v8477_v19  ;;  %v8492_v22 = vmul.f32 %v496_v20, %v8477_v19 }
  0xed   :  { %7214 = vmatpush3.msra.mxu1 %v8477_v19  ;;  %7215 = vmatprep.mubr.msk.f32.mxu1 %vm8376_vm0, %v8374_v0 }
  0xee   :  { %7223 = vmatprep.subr.mxu1 %v8374_v0 }
  0xf0   :  { %7216 = vmatmul.mubr.msk.f32.vlgmr.msra.gmra.mrb[4].mxu1 %vm216_vm1, %v498_v21 }
  0xf1   :  { %7224 = vmatpush3.msra.mxu1 %v8492_v22  ;;  %7225 = vmatprep.mubr.msk.f32.mxu1 %vm8376_vm0, %v8374_v0 }
  0xf2   :  { %7233 = vmatprep.subr.mxu1 %v8374_v0 }
  0xf4   :  { %7226 = vmatmul.mubr.msk.f32.vlgmr.msra.gmra.mrb[6].mxu1 %vm216_vm1, %v6608_v23  ;;  %v8614_v23 = vld [vmem:[%s6559_s1] sm:$0xff]  ;;  %s8398_s1 = smov 25  }
  0xf5   :  { %7234 = vmatpush3.msra.mxu1 %v8492_v22  ;;  %7235 = vmatprep.mubr.msk.f32.mxu1 %vm8376_vm0, %v8374_v0  ;;  %s8765_s4 = sld [smem:[%s9409_s0 + %s8398_s1]]   ;;  %s8414_s1 = smov 127  }
  0xf6   :  { %7243 = vmatprep.subr.mxu1 %v8374_v0 }
  0xf8   :  { %7236 = vmatmul.mubr.msk.f32.vlgmr.msra.gmra.mrb[8].mxu1 %vm216_vm1, %v6612_v24 }
  0xf9   :  { %7244 = vmatpush3.msra.mxu1 %v8492_v22  ;;  %7245 = vmatprep.mubr.msk.f32.mxu1 %vm8376_vm0, %v8374_v0 }
  0xfa   :  { %7885 = vmatprep.subr.bf16.mxu1 %v8379_v3 }
  0xfc   :  { %7246 = vmatmul.mubr.msk.f32.vlgmr.msra.gmra.mrb[10].mxu1 %vm216_vm1, %v6616_v27  ;;  %v8626_v27 = vld [vmem:[%s8623_s5] sm:$0xff] }
  0xfd   :  { %7887 = vmatpush3.bf16.msra.mxu1 %v7886_v28  ;;  %7267 = vmatprep.mubr.msk.f32.mxu1 %vm8376_vm0, %v8374_v0  ;;  %vm1428_vm5 = vcmp.gt.f32.partialorder %v8626_v27, 0.5 }
  0xfe   :  { %7888 = vmatprep.subr.bf16.mxu1 %v8379_v3 }
 0x101   :  { %7890 = vmatpush3.bf16.msra.mxu1 %v7889_v31 }
 0x102   :  { %7281 = vmatprep.subr.mxu1 %v8374_v0 }
 0x104   :  { %7268 = vmatmul.mubr.msk.f32.vlgmr.msra.gmra.mrb[12].mxu1 %vm304_vm2, %v8477_v19 }
 0x105   :  { %7283 = vmatprep.mubr.msk.f32.mxu1 %vm8376_vm0, %v8374_v0 }
 0x1bf   :  { %v374_v37 = vpop.f32.mrb[2].mxu1 }
 0x1c0   :  { %v375_v38 = vadd.f32 %v6601_v36, %v374_v37  ;;  %v7201_v39 = vpop.f32.mrb[3].mxu1 }
 0x1c2   :  { %v378_v40 = vmax.f32 %v375_v38, 0.0 }
 0x1c3   :  { %v8537_v41 = vpop.f32.mrb[4].mxu1 }
 0x1c4   :  { %7211 = vmatmul.mubr.msk.f32.vlgmr.msra.gmra.mrb[0].mxu0 %vm304_vm2, %v378_v40  ;;  %v7217_v42 = vpop.f32.mrb[5].mxu1 }
 0x1c5   :  { %7219 = vmatpush3.msra.mxu0 %v8492_v22  ;;  %7220 = vmatprep.mubr.msk.f32.mxu0 %vm8376_vm0, %v8374_v0  ;;  %v6638_v42 = vld [vmem:[%s8489_s7 + $0x40] sm:$0xff] }
 0x1c6   :  { %7228 = vmatprep.subr.mxu0 %v8374_v0 }
 0x1c7   :  { %v8544_v43 = vpop.f32.mrb[6].mxu1 }
 0x1c8   :  { %7221 = vmatmul.mubr.msk.f32.vlgmr.msra.gmra.mrb[2].mxu0 %vm216_vm1, %v498_v21  ;;  %v7227_v44 = vpop.f32.mrb[7].mxu1 }
 0x1c9   :  { %7229 = vmatpush3.msra.mxu0 %v8492_v22  ;;  %7230 = vmatprep.mubr.msk.f32.mxu0 %vm8376_vm0, %v8374_v0  ;;  %v6639_v44 = vld [vmem:[%s8489_s7 + $0x48] sm:$0xff] }
 0x1ca   :  { %7238 = vmatprep.subr.mxu0 %v8374_v0  ;;  %v7898_v46 = vpack.c.bf16 %v6639_v44, %v6638_v42 }
 0x1cb   :  { %v8552_v48 = vpop.f32.mrb[8].mxu1 }
 0x1cc   :  { %7231 = vmatmul.mubr.msk.f32.vlgmr.msra.gmra.mrb[4].mxu0 %vm216_vm1, %v6610_v45  ;;  %v7237_v49 = vpop.f32.mrb[9].mxu1  ;;  %v6640_v45 = vld [vmem:[%s8489_s7 + $0x50] sm:$0xff]  ;;  %s8394_s7 = smov 21  }
 0x1cd   :  { %7239 = vmatpush3.msra.mxu0 %v8492_v22  ;;  %7240 = vmatprep.mubr.msk.f32.mxu0 %vm8376_vm0, %v8374_v0  ;;  %v7901_v49 = vpack.c.bf16 %v6641_v47, %v6640_v45  ;;  %s8651_s17 = sld [smem:[%s9409_s0 + %s8394_s7]]   ;;  %s8401_s7 = smov 28  }
 0x1ce   :  { %7879 = vmatprep.subr.bf16.mxu0 %v8379_v3 }
 0x1cf   :  { %v8560_v54 = vpop.f32.mrb[10].mxu1 }
 0x1d0   :  { %7241 = vmatmul.mubr.msk.f32.vlgmr.msra.gmra.mrb[6].mxu0 %vm216_vm1, %v6614_v50  ;;  %v7247_v55 = vpop.f32.mrb[11].mxu1  ;;  %v1675_v50 = vld [vmem:[%s6569_s10] sm:$0xff] }
 0x1d1   :  { %7881 = vmatpush3.bf16.msra.mxu0 %v7880_v51  ;;  %7256 = vmatprep.mubr.msk.f32.mxu0 %vm8376_vm0, %v8374_v0  ;;  %v1676_v51 = vld [vmem:[%s6569_s10 + $0x8] sm:$0xff] }
 0x1d2   :  { %7882 = vmatprep.subr.bf16.mxu0 %v8379_v3  ;;  %v7904_v57 = vpack.c.bf16 %v1676_v51, %v1675_v50 }
 0x1d3   :  { %v6650_v61 = vld [vmem:[%s8651_s17 + $0x20] sm:$0xff] }
 0x1d5   :  { %7884 = vmatpush3.bf16.msra.mxu0 %v7883_v56  ;;  %v8654_v56 = vld [vmem:[%s6558_s14] sm:$0x3]  ;;  %s8854_s14 = sld [smem:[%s9409_s0 + %s8400_s11]]   ;;  %s8408_s11 = smov 124  }
 0x1d6   :  { %7891 = vmatprep.subr.bf16.mxu0 %v8379_v3 }
 0x1d7   :  { %v1185_v62 = vpop.f32.mrb[12].mxu1 }
 0x1d8   :  { %7257 = vmatmul.mubr.msk.f32.vlgmr.msra.gmra.mrb[8].mxu0 %vm304_vm2, %v8537_v41  ;;  %v7269_v63 = vpop.f32.mrb[13].mxu1  ;;  %v1186_v18 = vadd.f32 %v6623_v16, %v1185_v62  ;;  %v6651_v62 = vld [vmem:[%s8651_s17 + $0x28] sm:$0xff] }
 0x1d9   :  { %7893 = vmatpush3.bf16.msra.mxu0 %v7892_v59  ;;  %7278 = vmatprep.mubr.msk.f32.mxu0 %vm8376_vm0, %v8374_v0  ;;  %v1678_v59 = vld [vmem:[%s6569_s10 + $0x18] sm:$0xff]  ;;  %v7916_v63 = vpack.c.bf16 %v6651_v62, %v6650_v61  ;;  %v2321_v61 = vld [vmem:[%s6572_s26] sm:$0xff]  ;;  %v2322_v62 = vld [vmem:[%s6572_s26 + $0x8] sm:$0xff]  ;;  %s8813_s10 = sld [smem:[%s9409_s0 + %s8399_s6]]   ;;  %s8407_s6 = smov 32  }
 0x1da   :  { %7894 = vmatprep.subr.bf16.mxu0 %v8379_v3  ;;  %v7907_v60 = vpack.c.bf16 %v1678_v59, %v1677_v58  ;;  %v6666_v59 = vld [vmem:[%s8651_s17 + $0x58] sm:$0xff] }
 0x1dd   :  { %7896 = vmatpush3.bf16.msra.mxu0 %v7895_v1  ;;  %v6652_v1 = vld [vmem:[%s8651_s17 + $0x30] sm:$0xff] }
 0x1de   :  { %7291 = vmatprep.subr.mxu0 %v8374_v0 }
 0x1e0   :  { %7279 = vmatmul.mubr.msk.f32.vlgmr.msra.gmra.mrb[10].mxu0 %vm304_vm2, %v8477_v19 }
 0x1e1   :  { %7293 = vmatprep.mubr.msk.f32.mxu0 %vm8376_vm0, %v8374_v0 }
 0x297   :  { %v8581_v2 = vpop.f32.mrb[0].mxu0 }
 0x298   :  { %v7212_v4 = vpop.f32.mrb[1].mxu0 }
 0x299   :  { %v6653_v4 = vld [vmem:[%s8651_s17 + $0x38] sm:$0xff] }
 0x29b   :  { %v8583_v5 = vpop.f32.mrb[2].mxu0 }
 0x29c   :  { %v7222_v6 = vpop.f32.mrb[3].mxu0 }
 0x29d   :  { %v7919_v6 = vpack.c.bf16 %v6653_v4, %v6652_v1 }
 0x29f   :  { %v8585_v7 = vpop.f32.mrb[4].mxu0 }
 0x2a0   :  { %v7232_v8 = vpop.f32.mrb[5].mxu0 }
 0x2a1   :  { %v1759_v8 = vld [vmem:[%s8651_s17] sm:$0xff] }
 0x2a3   :  { %v8592_v9 = vpop.f32.mrb[6].mxu0 }
 0x2a4   :  { %v7242_v10 = vpop.f32.mrb[7].mxu0 }
 0x2a5   :  { %v1760_v10 = vld [vmem:[%s8651_s17 + $0x8] sm:$0xff] }
 0x2ab   :  { %v1096_v12 = vpop.f32.mrb[8].mxu0 }
 0x2ac   :  { %v1106_v13 = vadd.f32 %v6621_v11, %v1096_v12  ;;  %v7258_v14 = vpop.f32.mrb[9].mxu0  ;;  %v7910_v11 = vpack.c.bf16 %v1760_v10, %v1759_v8  ;;  %v1761_v12 = vld [vmem:[%s8651_s17 + $0x10] sm:$0xff]  ;;  %v2324_v10 = vld [vmem:[%s6572_s26 + $0x18] sm:$0xff] }
 0x2ad   :  { %v2323_v8 = vld [vmem:[%s6572_s26 + $0x10] sm:$0xff] }
 0x2ae   :  { %7282 = vmatpush3.msk.msra.mxu1 %vm1276_vm3, %v1106_v13  ;;  %v1762_v13 = vld [vmem:[%s8651_s17 + $0x18] sm:$0xff] }
 0x2af   :  { %7284 = vmatmul.mubr.msk.f32.vlgmr.msra.gmra.mrb[14].mxu1 %vm1272_vm4, %v8598_v15  ;;  %7286 = vmatprep.subr.mxu1 %v8374_v0 }
 0x2b0   :  { %7288 = vmatprep.mubr.msk.f32.mxu1 %vm8376_vm0, %v8374_v0 }
 0x2b3   :  { %v1268_v19 = vpop.f32.mrb[10].mxu0 }
 0x2b4   :  { %v1269_v20 = vadd.f32 %v6630_v17, %v1268_v19  ;;  %v7280_v21 = vpop.f32.mrb[11].mxu0  ;;  %v7913_v17 = vpack.c.bf16 %v1762_v13, %v1761_v12  ;;  %v6672_v12 = vld [vmem:[%s6572_s26 + $0x20] sm:$0xff]  ;;  %v6673_v13 = vld [vmem:[%s6572_s26 + $0x28] sm:$0xff] }
 0x2b5   :  { %7287 = vmatpush3.xpose.msk.msra.mxu1 %vm304_vm2, %v1186_v18  ;;  %v6646_v18 = vld [vmem:[%s8682_s21] ss:$0 sm:$0xff] }
 0x2b6   :  { %7292 = vmatpush3.msra.mxu0 %v1269_v20  ;;  %7296 = vmatprep.subr.mxu1 %v8374_v0 }
 0x2b7   :  { %7897 = vmatprep.subr.bf16.mxu0 %v8379_v3 }
 0x382   :  { %v1346_v24 = vpop.f32.mrb[14].mxu1 }
 0x383   :  { %v1350_v25 = vmul.f32 %v1346_v24, %v8614_v23  ;;  %v7285_v26 = vpop.f32.mrb[15].mxu1  ;;  %v6655_v24 = vld [vmem:[%s8682_s21 + $0x2] ss:$0 sm:$0xff] }
 0x385   :  { %7289 = vmatmul.mubr.msk.f32.vlgmr.msra.gmra.mrb[16].mxu1 %vm304_vm2, %v1350_v25 }
 0x386   :  { %7298 = vmatprep.mubr.msk.f32.mxu1 %vm8376_vm0, %v8374_v0 }
 0x458   :  { %v1423_v28 = vpop.f32.mrb[16].mxu1 }
 0x459   :  { %v1427_v29 = vmul.f32 0.35355338, %v1423_v28  ;;  %v7290_v30 = vpop.f32.mrb[17].mxu1 }
 0x45b   :  { %v1429_v31 = vsel %vm1428_vm5, %v1427_v29, -1e+30 }
 0x45c   :  { %v1430_v32 = vsel %vm216_vm1, %v1429_v31, -inf }
 0x45d   :  { %1431 = vmax.xlane.f32.xlu0 %v1430_v32 }
 0x4ea   :  { %v1432_v33 = vpop.xlane.xlu0 %1431 }
 0x4eb   :  { %v1433_v34 = vsub.f32 %v1429_v31, %v1432_v33  ;;  %v6648_v31 = vld [vmem:[%s8682_s21 + $0x1] ss:$0 sm:$0xff] }
 0x4ed   :  { %v1434_v35 = vmul.f32 1.442695, %v1433_v34 }
 0x4ef   :  { %8286 = vpow2.f32 %v1434_v35 }
 0x4f9   :  { %v8287_v36 = vpop.eup %8286 }
 0x4fa   :  { %v1436_v37 = vsel %vm216_vm1, %v8287_v36, 0.0 }
 0x4fb   :  { %1437 = vadd.xlane.f32.xlu0 %v1436_v37 }
 0x588   :  { %v1438_v38 = vpop.xlane.xlu0 %1437 }
 0x589   :  { %8288 = vrcp.f32 %v1438_v38 }
 0x593   :  { %v8289_v39 = vpop.eup %8288 }
 0x594   :  { %v1440_v40 = vmul.f32 %v8289_v39, %v8287_v36 }
 0x596   :  { %7294 = vmatmul.mubr.msk.f32.vlgmr.msra.gmra.mrb[12].mxu0 %vm216_vm1, %v1440_v40 }
 0x597   :  { %7309 = vmatprep.mubr.msk.f32.mxu0 %vm8376_vm0, %v8374_v0  ;;  %7899 = vmatpush3.bf16.msra.mxu0 %v7898_v46 }
 0x598   :  { %7900 = vmatprep.subr.bf16.mxu0 %v8379_v3 }
 0x59b   :  { %7902 = vmatpush3.bf16.msra.mxu0 %v7901_v49 }
 0x59c   :  { %7909 = vmatprep.subr.bf16.mxu0 %v8379_v3 }
 0x669   :  { %v1510_v52 = vpop.f32.mrb[12].mxu0 }
 0x66a   :  { %v1514_v53 = vmul.f32 %v1510_v52, %v8614_v23  ;;  %v7295_v55 = vpop.f32.mrb[13].mxu0 }
 0x66b   :  { %v6664_v55 = vld [vmem:[%s8651_s17 + $0x48] sm:$0xff] }
 0x66c   :  { %7297 = vmatpush3.msra.mxu1 %v1514_v53  ;;  %v6663_v53 = vld [vmem:[%s8651_s17 + $0x40] sm:$0xff] }
 0x66d   :  { %7299 = vmatmul.mubr.msk.f32.vlgmr.msra.gmra.mrb[18].mxu1 %vm216_vm1, %v8654_v56  ;;  %7903 = vmatprep.subr.bf16.mxu1 %v8379_v3  ;;  %v7922_v58 = vpack.c.bf16 %v6664_v55, %v6663_v53 }
 0x66e   :  { %7905 = vmatpush3.bf16.msra.mxu1 %v7904_v57  ;;  %7320 = vmatprep.mubr.msk.f32.mxu1 %vm8376_vm0, %v8374_v0  ;;  %v6665_v57 = vld [vmem:[%s8651_s17 + $0x50] sm:$0xff]  ;;  %s8877_s17 = sld [smem:[%s9409_s0 + %s8401_s7]]  }
 0x66f   :  { %7906 = vmatprep.subr.bf16.mxu1 %v8379_v3  ;;  %s9023_s7 = sld [smem:[%s9409_s0 + %s8409_s12]]  }
 0x670   :  { %s9161_s12 = sld [smem:[%s9409_s0 + %s8416_s9]]  }
 0x672   :  { %7908 = vmatpush3.bf16.msra.mxu1 %v7907_v60  ;;  %v7925_v60 = vpack.c.bf16 %v6666_v59, %v6665_v57 }
 0x673   :  { %7915 = vmatprep.subr.bf16.mxu1 %v8379_v3 }
 0x675   :  { %7321 = vmatmul.mubr.msk.f32.vlgmr.msra.gmra.mrb[20].mxu1 %vm304_vm2, %v8583_v5 }
 0x676   :  { %7917 = vmatpush3.bf16.msra.mxu1 %v7916_v63  ;;  %7342 = vmatprep.mubr.msk.f32.mxu1 %vm8376_vm0, %v8374_v0 }
 0x677   :  { %7918 = vmatprep.subr.bf16.mxu1 %v8379_v3 }
 0x67a   :  { %7920 = vmatpush3.bf16.msra.mxu1 %v7919_v6  ;;  %v7928_v6 = vpack.c.bf16 %v2322_v62, %v2321_v61 }
 0x67b   :  { %7350 = vmatprep.subr.mxu1 %v8374_v0 }
 0x67d   :  { %7343 = vmatmul.mubr.msk.f32.vlgmr.msra.gmra.mrb[22].mxu1 %vm304_vm2, %v8492_v22 }
 0x67e   :  { %7352 = vmatprep.mubr.msk.f32.mxu1 %vm8376_vm0, %v8374_v0 }
 0x740   :  { %v1584_v14 = vpop.f32.mrb[18].mxu1 }
 0x741   :  { %v7300_v16 = vpop.f32.mrb[19].mxu1  ;;  %7310 = vmatmul.mubr.msk.f32.vlgmr.msra.gmra.mrb[14].mxu0 %vm304_vm2, %v1584_v14  ;;  %v7934_v14 = vpack.c.bf16 %v6673_v13, %v6672_v12 }
 0x742   :  { %7911 = vmatpush3.bf16.msra.mxu0 %v7910_v11  ;;  %7331 = vmatprep.mubr.msk.f32.mxu0 %vm8376_vm0, %v8374_v0  ;;  %v7931_v11 = vpack.c.bf16 %v2324_v10, %v2323_v8  ;;  %v6674_v16 = vld [vmem:[%s6572_s26 + $0x30] sm:$0xff] }
 0x743   :  { %7912 = vmatprep.subr.bf16.mxu0 %v8379_v3 }
 0x746   :  { %7914 = vmatpush3.bf16.msra.mxu0 %v7913_v17  ;;  %v6675_v17 = vld [vmem:[%s6572_s26 + $0x38] sm:$0xff]  ;;  %s8952_s26 = sld [smem:[%s9409_s0 + %s8404_s22]]  }
 0x747   :  { %7345 = vmatprep.subr.mxu0 %v8374_v0 }
 0x748   :  { %v1748_v19 = vpop.f32.mrb[20].mxu1 }
 0x749   :  { %v1758_v20 = vadd.f32 %v6646_v18, %v1748_v19  ;;  %7332 = vmatmul.mubr.msk.f32.vlgmr.msra.gmra.mrb[16].mxu0 %vm304_vm2, %v8492_v22  ;;  %v7322_v21 = vpop.f32.mrb[21].mxu1  ;;  %v7937_v18 = vpack.c.bf16 %v6675_v17, %v6674_v16  ;;  %v2484_v19 = vld [vmem:[%s8750_s30] sm:$0xff]  ;;  %v6694_v16 = vld [vmem:[%s8750_s30 + $0x48] sm:$0xff]  ;;  %v6695_v17 = vld [vmem:[%s8750_s30 + $0x50] sm:$0xff] }
 0x74a   :  { %7347 = vmatprep.mubr.msk.f32.mxu0 %vm8376_vm0, %v8374_v0 }
 0x74b   :  { %7346 = vmatpush3.msk.msra.mxu0 %vm1276_vm3, %v1758_v20  ;;  %v2485_v20 = vld [vmem:[%s8750_s30 + $0x8] sm:$0xff] }
 0x74c   :  { %7355 = vmatprep.subr.mxu0 %v8374_v0  ;;  %v7940_v21 = vpack.c.bf16 %v2485_v20, %v2484_v19  ;;  %v6696_v19 = vld [vmem:[%s8750_s30 + $0x58] sm:$0xff] }
 0x74d   :  { %7348 = vmatmul.mubr.msk.f32.vlgmr.msra.gmra.mrb[18].mxu0 %vm1272_vm4, %v8598_v15  ;;  %v7955_v20 = vpack.c.bf16 %v6696_v19, %v6695_v17  ;;  %v6720_v17 = vld [vmem:[%s8877_s17 + $0x2] ss:$0 sm:$0xff] }
 0x74e   :  { %7357 = vmatprep.mubr.msk.f32.mxu0 %vm8376_vm0, %v8374_v0 }
 0x750   :  { %v1923_v25 = vpop.f32.mrb[22].mxu1 }
 0x751   :  { %v1924_v26 = vadd.f32 %v6655_v24, %v1923_v25  ;;  %v7344_v28 = vpop.f32.mrb[23].mxu1  ;;  %v2486_v24 = vld [vmem:[%s8750_s30 + $0x10] sm:$0xff]  ;;  %v2487_v25 = vld [vmem:[%s8750_s30 + $0x18] sm:$0xff] }
 0x753   :  { %7356 = vmatpush3.msra.mxu0 %v1924_v26 }
 0x754   :  { %7921 = vmatprep.subr.bf16.mxu0 %v8379_v3 }
 0x814   :  { %v8704_v29 = vpop.f32.mrb[14].mxu0 }
 0x815   :  { %v7311_v30 = vpop.f32.mrb[15].mxu0 }
 0x816   :  { %v7943_v30 = vpack.c.bf16 %v2487_v25, %v2486_v24  ;;  %v3045_v24 = vld [vmem:[%s8813_s10 + $0x8] sm:$0xff] }
 0x81c   :  { %v1840_v32 = vpop.f32.mrb[16].mxu0 }
 0x81d   :  { %v1841_v33 = vadd.f32 %v6648_v31, %v1840_v32  ;;  %v7333_v34 = vpop.f32.mrb[17].mxu0  ;;  %v6680_v31 = vld [vmem:[%s8750_s30 + $0x20] sm:$0xff]  ;;  %v6681_v32 = vld [vmem:[%s8750_s30 + $0x28] sm:$0xff] }
 0x81e   :  { %v6682_v34 = vld [vmem:[%s8750_s30 + $0x30] sm:$0xff] }
 0x81f   :  { %7351 = vmatpush3.xpose.msk.msra.mxu1 %vm304_vm2, %v1841_v33  ;;  %v7946_v33 = vpack.c.bf16 %v6681_v32, %v6680_v31  ;;  %v3046_v31 = vld [vmem:[%s8813_s10 + $0x10] sm:$0xff]  ;;  %v3047_v32 = vld [vmem:[%s8813_s10 + $0x18] sm:$0xff] }
 0x820   :  { %v1996_v35 = vpop.f32.mrb[18].mxu0  ;;  %7360 = vmatprep.subr.mxu1 %v8374_v0 }
 0x821   :  { %v2000_v36 = vmul.f32 %v1996_v35, %v8614_v23  ;;  %v7349_v37 = vpop.f32.mrb[19].mxu0  ;;  %v6683_v35 = vld [vmem:[%s8750_s30 + $0x38] sm:$0xff] }
 0x822   :  { %v6671_v37 = vld [vmem:[%s8765_s4] ss:$0 sm:$0xff] }
 0x823   :  { %7353 = vmatmul.mubr.msk.f32.vlgmr.msra.gmra.mrb[24].mxu1 %vm304_vm2, %v2000_v36  ;;  %v7949_v36 = vpack.c.bf16 %v6683_v35, %v6682_v34  ;;  %v6702_v34 = vld [vmem:[%s8813_s10 + $0x20] sm:$0xff]  ;;  %v6703_v35 = vld [vmem:[%s8813_s10 + $0x28] sm:$0xff] }
 0x824   :  { %7362 = vmatprep.mubr.msk.f32.mxu1 %vm8376_vm0, %v8374_v0 }
 0x8f6   :  { %v2073_v38 = vpop.f32.mrb[24].mxu1 }
 0x8f7   :  { %v2077_v39 = vmul.f32 0.35355338, %v2073_v38  ;;  %v7354_v40 = vpop.f32.mrb[25].mxu1 }
 0x8f9   :  { %v2078_v42 = vsel %vm1428_vm5, %v2077_v39, -1e+30 }
 0x8fa   :  { %v2079_v44 = vsel %vm216_vm1, %v2078_v42, -inf }
 0x8fb   :  { %2080 = vmax.xlane.f32.xlu1 %v2079_v44 }
 0x988   :  { %v2081_v45 = vpop.xlane.xlu1 %2080 }
 0x989   :  { %v2082_v46 = vsub.f32 %v2078_v42, %v2081_v45  ;;  %v6678_v45 = vld [vmem:[%s8765_s4 + $0x1] ss:$0 sm:$0xff] }
 0x98b   :  { %v2083_v47 = vmul.f32 1.442695, %v2082_v46 }
 0x98d   :  { %8290 = vpow2.f32 %v2083_v47 }
 0x997   :  { %v8291_v49 = vpop.eup %8290 }
 0x998   :  { %v2085_v50 = vsel %vm216_vm1, %v8291_v49, 0.0 }
 0x999   :  { %2086 = vadd.xlane.f32.xlu1 %v2085_v50  ;;  %v6685_v50 = vld [vmem:[%s8765_s4 + $0x2] ss:$0 sm:$0xff] }
 0xa26   :  { %v2087_v51 = vpop.xlane.xlu1 %2086 }
 0xa27   :  { %8292 = vrcp.f32 %v2087_v51 }
 0xa31   :  { %v8293_v52 = vpop.eup %8292 }
 0xa32   :  { %v2089_v27 = vmul.f32 %v8293_v52, %v8291_v49 }
 0xa34   :  { %7358 = vmatmul.mubr.msk.f32.vlgmr.msra.gmra.mrb[20].mxu0 %vm216_vm1, %v2089_v27 }
 0xa35   :  { %7373 = vmatprep.mubr.msk.f32.mxu0 %vm8376_vm0, %v8374_v0  ;;  %7923 = vmatpush3.bf16.msra.mxu0 %v7922_v58  ;;  %v6618_v58 = vld [vmem:[%s8623_s5 + $0x8] sm:$0xff] }
 0xa36   :  { %7924 = vmatprep.subr.bf16.mxu0 %v8379_v3  ;;  %vm2800_vm6 = vcmp.gt.f32.partialorder %v6618_v58, 0.5 }
 0xa39   :  { %7926 = vmatpush3.bf16.msra.mxu0 %v7925_v60 }
 0xa3a   :  { %7939 = vmatprep.subr.bf16.mxu0 %v8379_v3 }
 0xb07   :  { %v2159_v63 = vpop.f32.mrb[20].mxu0 }
 0xb08   :  { %v2163_v1 = vmul.f32 %v2159_v63, %v8614_v23  ;;  %v7359_v4 = vpop.f32.mrb[21].mxu0 }
 0xb0a   :  { %7361 = vmatpush3.msra.mxu1 %v2163_v1 }
 0xb0b   :  { %7363 = vmatmul.mubr.msk.f32.vlgmr.msra.gmra.mrb[26].mxu1 %vm216_vm1, %v8654_v56  ;;  %7927 = vmatprep.subr.bf16.mxu1 %v8379_v3 }
 0xb0c   :  { %7929 = vmatpush3.bf16.msra.mxu1 %v7928_v6  ;;  %7384 = vmatprep.mubr.msk.f32.mxu1 %vm8376_vm0, %v8374_v0 }
 0xb0d   :  { %7930 = vmatprep.subr.bf16.mxu1 %v8379_v3 }
 0xb10   :  { %7932 = vmatpush3.bf16.msra.mxu1 %v7931_v11 }
 0xb11   :  { %7933 = vmatprep.subr.bf16.mxu1 %v8379_v3 }
 0xb13   :  { %7385 = vmatmul.mubr.msk.f32.vlgmr.msra.gmra.mrb[28].mxu1 %vm304_vm2, %v8544_v43 }
 0xb14   :  { %7935 = vmatpush3.bf16.msra.mxu1 %v7934_v14  ;;  %7395 = vmatprep.mubr.msk.f32.mxu1 %vm8376_vm0, %v8374_v0  ;;  %v6693_v14 = vld [vmem:[%s8750_s30 + $0x40] sm:$0xff]  ;;  %s8406_s30 = smov 30  }
 0xb15   :  { %7936 = vmatprep.subr.bf16.mxu1 %v8379_v3  ;;  %s8975_s3 = sld [smem:[%s9409_s0 + %s8406_s30]]  }
 0xb16   :  { %s9108_s30 = sld [smem:[%s9409_s0 + %s8413_s27]]   ;;  %s8421_s27 = smov 44  }
 0xb18   :  { %7938 = vmatpush3.bf16.msra.mxu1 %v7937_v18  ;;  %v7952_v18 = vpack.c.bf16 %v6694_v16, %v6693_v14 }
 0xb19   :  { %7420 = vmatprep.subr.mxu1 %v8374_v0 }
 0xb1b   :  { %7396 = vmatmul.mubr.msk.f32.vlgmr.msra.gmra.mrb[28].mxu1 %vm304_vm2, %v8585_v7 }
 0xb1c   :  { %7422 = vmatprep.mubr.msk.f32.mxu1 %vm8376_vm0, %v8374_v0 }
 0xbde   :  { %v2230_v26 = vpop.f32.mrb[26].mxu1 }
 0xbdf   :  { %v7364_v28 = vpop.f32.mrb[27].mxu1  ;;  %7374 = vmatmul.mubr.msk.f32.vlgmr.msra.gmra.mrb[22].mxu0 %vm304_vm2, %v2230_v26 }
 0xbe0   :  { %7941 = vmatpush3.bf16.msra.mxu0 %v7940_v21  ;;  %7406 = vmatprep.mubr.msk.f32.mxu0 %vm8376_vm0, %v8374_v0  ;;  %v3044_v21 = vld [vmem:[%s8813_s10] sm:$0xff] }
 0xbe1   :  { %7942 = vmatprep.subr.bf16.mxu0 %v8379_v3 }
 0xbe4   :  { %7944 = vmatpush3.bf16.msra.mxu0 %v7943_v30  ;;  %v7958_v30 = vpack.c.bf16 %v3045_v24, %v3044_v21 }
 0xbe5   :  { %7945 = vmatprep.subr.bf16.mxu0 %v8379_v3 }
 0xbe7   :  { %7407 = vmatmul.mubr.msk.f32.vlgmr.msra.gmra.mrb[24].mxu0 %vm304_vm2, %v8492_v22 }
 0xbe8   :  { %7947 = vmatpush3.bf16.msra.mxu0 %v7946_v33  ;;  %7417 = vmatprep.mubr.msk.f32.mxu0 %vm8376_vm0, %v8374_v0  ;;  %v7961_v33 = vpack.c.bf16 %v3047_v32, %v3046_v31 }
 0xbe9   :  { %7948 = vmatprep.subr.bf16.mxu0 %v8379_v3 }
 0xbec   :  { %7950 = vmatpush3.bf16.msra.mxu0 %v7949_v36  ;;  %v7964_v36 = vpack.c.bf16 %v6703_v35, %v6702_v34 }
 0xbed   :  { %7430 = vmatprep.subr.mxu0 %v8374_v0 }
 0xbee   :  { %v2479_v38 = vpop.f32.mrb[28].mxu1 }
 0xbef   :  { %v8173_v39 = vadd.f32 %v6671_v37, %v2479_v38  ;;  %7418 = vmatmul.mubr.msk.f32.vlgmr.msra.gmra.mrb[26].mxu0 %vm304_vm2, %v8492_v22  ;;  %v7397_v40 = vpop.f32.mrb[29].mxu1  ;;  %v6704_v37 = vld [vmem:[%s8813_s10 + $0x30] sm:$0xff]  ;;  %v6705_v38 = vld [vmem:[%s8813_s10 + $0x38] sm:$0xff] }
 0xbf0   :  { %7432 = vmatprep.mubr.msk.f32.mxu0 %vm8376_vm0, %v8374_v0  ;;  %v6707_v40 = vld [vmem:[%s8813_s10 + $0x40] sm:$0xff] }
 0xbf1   :  { %7421 = vmatpush3.msk.msra.mxu1 %vm1276_vm3, %v8173_v39  ;;  %v7967_v39 = vpack.c.bf16 %v6705_v38, %v6704_v37 }
 0xbf2   :  { %7423 = vmatmul.mubr.msk.f32.vlgmr.msra.gmra.mrb[30].mxu1 %vm1272_vm4, %v8598_v15  ;;  %7425 = vmatprep.subr.mxu1 %v8374_v0 }
 0xbf3   :  { %7427 = vmatprep.mubr.msk.f32.mxu1 %vm8376_vm0, %v8374_v0 }
 0xcb2   :  { %v8787_v42 = vpop.f32.mrb[22].mxu0 }
 0xcb3   :  { %v7375_v44 = vpop.f32.mrb[23].mxu0 }
 0xcb4   :  { %v6708_v44 = vld [vmem:[%s8813_s10 + $0x48] sm:$0xff] }
 0xcba   :  { %v2562_v46 = vpop.f32.mrb[24].mxu0 }
 0xcbb   :  { %v2563_v47 = vadd.f32 %v6678_v45, %v2562_v46  ;;  %v7408_v49 = vpop.f32.mrb[25].mxu0  ;;  %v7970_v45 = vpack.c.bf16 %v6708_v44, %v6707_v40  ;;  %v6709_v46 = vld [vmem:[%s8813_s10 + $0x50] sm:$0xff]  ;;  %v6728_v44 = vld [vmem:[%s8854_s14 + $0x40] sm:$0xff] }
 0xcbd   :  { %7426 = vmatpush3.xpose.msk.msra.mxu1 %vm304_vm2, %v2563_v47  ;;  %v6710_v47 = vld [vmem:[%s8813_s10 + $0x58] sm:$0xff]  ;;  %s9015_s10 = sld [smem:[%s9409_s0 + %s8407_s6]]  }
 0xcbe   :  { %7435 = vmatprep.subr.mxu1 %v8374_v0  ;;  %v7973_v49 = vpack.c.bf16 %v6710_v47, %v6709_v46  ;;  %v6730_v46 = vld [vmem:[%s8854_s14 + $0x50] sm:$0xff] }
 0xcc2   :  { %v2645_v51 = vpop.f32.mrb[26].mxu0 }
 0xcc3   :  { %v2646_v52 = vadd.f32 %v6685_v50, %v2645_v51  ;;  %v7419_v27 = vpop.f32.mrb[27].mxu0  ;;  %v3286_v50 = vld [vmem:[%s8854_s14] sm:$0xff]  ;;  %v3287_v51 = vld [vmem:[%s8854_s14 + $0x8] sm:$0xff] }
 0xcc4   :  { %v3288_v27 = vld [vmem:[%s8854_s14 + $0x10] sm:$0xff] }
 0xcc5   :  { %7431 = vmatpush3.msra.mxu0 %v2646_v52  ;;  %v2718_v53 = vpop.f32.mrb[30].mxu1  ;;  %v7976_v52 = vpack.c.bf16 %v3287_v51, %v3286_v50 }
 0xcc6   :  { %v2722_v55 = vmul.f32 %v2718_v53, %v8614_v23  ;;  %v7424_v57 = vpop.f32.mrb[31].mxu1  ;;  %7951 = vmatprep.subr.bf16.mxu0 %v8379_v3  ;;  %v3289_v53 = vld [vmem:[%s8854_s14 + $0x18] sm:$0xff] }
 0xcc7   :  { %v7979_v58 = vpack.c.bf16 %v3289_v53, %v3288_v27 }
 0xcc8   :  { %7428 = vmatmul.mubr.msk.f32.vlgmr.msra.gmra.mrb[32].mxu1 %vm304_vm2, %v2722_v55 }
 0xcc9   :  { %7437 = vmatprep.mubr.msk.f32.mxu1 %vm8376_vm0, %v8374_v0 }
 0xd9b   :  { %v2795_v59 = vpop.f32.mrb[32].mxu1 }
 0xd9c   :  { %v2799_v60 = vmul.f32 0.35355338, %v2795_v59  ;;  %v7429_v61 = vpop.f32.mrb[33].mxu1  ;;  %v6715_v59 = vld [vmem:[%s8854_s14 + $0x20] sm:$0xff] }
 0xd9e   :  { %v2801_v62 = vsel %vm2800_vm6, %v2799_v60, -1e+30  ;;  %v6716_v60 = vld [vmem:[%s8854_s14 + $0x28] sm:$0xff] }
 0xd9f   :  { %v2802_v63 = vsel %vm216_vm1, %v2801_v62, -inf  ;;  %v7982_v61 = vpack.c.bf16 %v6716_v60, %v6715_v59 }
 0xda0   :  { %2803 = vmax.xlane.f32.xlu0 %v2802_v63  ;;  %v6718_v63 = vld [vmem:[%s8854_s14 + $0x38] sm:$0xff] }
 0xe2d   :  { %v2804_v1 = vpop.xlane.xlu0 %2803 }
 0xe2e   :  { %v2805_v4 = vsub.f32 %v2801_v62, %v2804_v1  ;;  %v6717_v62 = vld [vmem:[%s8854_s14 + $0x30] sm:$0xff] }
 0xe2f   :  { %v7985_v1 = vpack.c.bf16 %v6718_v63, %v6717_v62 }
 0xe30   :  { %v2806_v6 = vmul.f32 1.442695, %v2805_v4  ;;  %v6701_v4 = vld [vmem:[%s8877_s17] ss:$0 sm:$0xff] }
 0xe32   :  { %8294 = vpow2.f32 %v2806_v6 }
 0xe3c   :  { %v8295_v8 = vpop.eup %8294 }
 0xe3d   :  { %v2808_v10 = vsel %vm216_vm1, %v8295_v8, 0.0 }
 0xe3e   :  { %2809 = vadd.xlane.f32.xlu1 %v2808_v10 }
 0xecb   :  { %v2810_v11 = vpop.xlane.xlu1 %2809 }
 0xecc   :  { %8296 = vrcp.f32 %v2810_v11 }
 0xed6   :  { %v8297_v12 = vpop.eup %8296 }
 0xed7   :  { %v2812_v13 = vmul.f32 %v8297_v12, %v8295_v8  ;;  %v6713_v12 = vld [vmem:[%s8877_s17 + $0x1] ss:$0 sm:$0xff] }
 0xed9   :  { %7433 = vmatmul.mubr.msk.f32.vlgmr.msra.gmra.mrb[28].mxu0 %vm216_vm1, %v2812_v13 }
 0xeda   :  { %7448 = vmatprep.mubr.msk.f32.mxu0 %vm8376_vm0, %v8374_v0  ;;  %7953 = vmatpush3.bf16.msra.mxu0 %v7952_v18 }
 0xedb   :  { %7954 = vmatprep.subr.bf16.mxu0 %v8379_v3 }
 0xede   :  { %7956 = vmatpush3.bf16.msra.mxu0 %v7955_v20 }
 0xedf   :  { %7975 = vmatprep.subr.bf16.mxu0 %v8379_v3 }
 0xfac   :  { %v2882_v25 = vpop.f32.mrb[28].mxu0 }
 0xfad   :  { %v2886_v26 = vmul.f32 %v2882_v25, %v8614_v23  ;;  %v7434_v28 = vpop.f32.mrb[29].mxu0  ;;  %v6619_v25 = vld [vmem:[%s8623_s5 + $0x10] sm:$0xff]  ;;  %s8402_s5 = smov 29  }
 0xfae   :  { %vm3602_vm7 = vcmp.gt.f32.partialorder %v6619_v25, 0.5  ;;  %s8917_s20 = sld [smem:[%s9409_s0 + %s8402_s5]]  }
 0xfaf   :  { %7436 = vmatpush3.msra.mxu1 %v2886_v26 }
 0xfb0   :  { %7438 = vmatmul.mubr.msk.f32.vlgmr.msra.gmra.mrb[34].mxu1 %vm216_vm1, %v8654_v56  ;;  %7957 = vmatprep.subr.bf16.mxu1 %v8379_v3 }
 0xfb1   :  { %7959 = vmatpush3.bf16.msra.mxu1 %v7958_v30  ;;  %7459 = vmatprep.mubr.msk.f32.mxu1 %vm8376_vm0, %v8374_v0 }
 0xfb2   :  { %7960 = vmatprep.subr.bf16.mxu1 %v8379_v3 }
 0xfb4   :  { %v3847_v51 = vld [vmem:[%s8917_s20] sm:$0xff]  ;;  %v3850_v59 = vld [vmem:[%s8917_s20 + $0x18] sm:$0xff]  ;;  %v6739_v63 = vld [vmem:[%s8917_s20 + $0x30] sm:$0xff] }
 0xfb5   :  { %7962 = vmatpush3.bf16.msra.mxu1 %v7961_v33 }
 0xfb6   :  { %7963 = vmatprep.subr.bf16.mxu1 %v8379_v3 }
 0xfb8   :  { %7460 = vmatmul.mubr.msk.f32.vlgmr.msra.gmra.mrb[36].mxu1 %vm304_vm2, %v8552_v48 }
 0xfb9   :  { %7965 = vmatpush3.bf16.msra.mxu1 %v7964_v36  ;;  %7470 = vmatprep.mubr.msk.f32.mxu1 %vm8376_vm0, %v8374_v0 }
 0xfba   :  { %7966 = vmatprep.subr.bf16.mxu1 %v8379_v3 }
 0xfbd   :  { %7968 = vmatpush3.bf16.msra.mxu1 %v7967_v39 }
 0xfbe   :  { %7969 = vmatprep.subr.bf16.mxu1 %v8379_v3 }
 0xfc0   :  { %7471 = vmatmul.mubr.msk.f32.vlgmr.msra.gmra.mrb[36].mxu1 %vm304_vm2, %v8592_v9 }
 0xfc1   :  { %7971 = vmatpush3.bf16.msra.mxu1 %v7970_v45  ;;  %7481 = vmatprep.mubr.msk.f32.mxu1 %vm8376_vm0, %v8374_v0  ;;  %v6729_v45 = vld [vmem:[%s8854_s14 + $0x48] sm:$0xff] }
 0xfc2   :  { %7972 = vmatprep.subr.bf16.mxu1 %v8379_v3  ;;  %v7988_v47 = vpack.c.bf16 %v6729_v45, %v6728_v44  ;;  %v6753_v45 = vld [vmem:[%s8917_s20 + $0x70] sm:$0xff] }
 0xfc5   :  { %7974 = vmatpush3.bf16.msra.mxu1 %v7973_v49  ;;  %v6731_v49 = vld [vmem:[%s8854_s14 + $0x58] sm:$0xff] }
 0xfc6   :  { %7511 = vmatprep.subr.mxu1 %v8374_v0  ;;  %v7991_v50 = vpack.c.bf16 %v6731_v49, %v6730_v46  ;;  %v6754_v46 = vld [vmem:[%s8917_s20 + $0x78] sm:$0xff] }
 0xfc8   :  { %7482 = vmatmul.mubr.msk.f32.vlgmr.msra.gmra.mrb[36].mxu1 %vm304_vm2, %v8560_v54 }
 0xfc9   :  { %7513 = vmatprep.mubr.msk.f32.mxu1 %vm8376_vm0, %v8374_v0 }
0x1083   :  { %v2953_v55 = vpop.f32.mrb[34].mxu1 }
0x1084   :  { %v7439_v57 = vpop.f32.mrb[35].mxu1  ;;  %7449 = vmatmul.mubr.msk.f32.vlgmr.msra.gmra.mrb[30].mxu0 %vm304_vm2, %v2953_v55 }
0x1085   :  { %7977 = vmatpush3.bf16.msra.mxu0 %v7976_v52  ;;  %7492 = vmatprep.mubr.msk.f32.mxu0 %vm8376_vm0, %v8374_v0  ;;  %v3848_v52 = vld [vmem:[%s8917_s20 + $0x8] sm:$0xff] }
0x1086   :  { %7978 = vmatprep.subr.bf16.mxu0 %v8379_v3  ;;  %v7994_v57 = vpack.c.bf16 %v3848_v52, %v3847_v51 }
0x1089   :  { %7980 = vmatpush3.bf16.msra.mxu0 %v7979_v58  ;;  %v3849_v58 = vld [vmem:[%s8917_s20 + $0x10] sm:$0xff] }
0x108a   :  { %7981 = vmatprep.subr.bf16.mxu0 %v8379_v3  ;;  %v7997_v60 = vpack.c.bf16 %v3850_v59, %v3849_v58 }
0x108c   :  { %7493 = vmatmul.mubr.msk.f32.vlgmr.msra.gmra.mrb[32].mxu0 %vm304_vm2, %v8492_v22 }
0x108d   :  { %7983 = vmatpush3.bf16.msra.mxu0 %v7982_v61  ;;  %7503 = vmatprep.mubr.msk.f32.mxu0 %vm8376_vm0, %v8374_v0  ;;  %v6738_v61 = vld [vmem:[%s8917_s20 + $0x28] sm:$0xff] }
0x108e   :  { %7984 = vmatprep.subr.bf16.mxu0 %v8379_v3 }
0x1091   :  { %7986 = vmatpush3.bf16.msra.mxu0 %v7985_v1  ;;  %v6740_v1 = vld [vmem:[%s8917_s20 + $0x38] sm:$0xff] }
0x1092   :  { %7506 = vmatprep.subr.mxu0 %v8374_v0 }
0x1094   :  { %7504 = vmatmul.mubr.msk.f32.vlgmr.msra.gmra.mrb[34].mxu0 %vm304_vm2, %v8492_v22 }
0x1095   :  { %7508 = vmatprep.mubr.msk.f32.mxu0 %vm8376_vm0, %v8374_v0 }
0x109b   :  { %v3281_v6 = vpop.f32.mrb[36].mxu1 }
0x109c   :  { %v8174_v8 = vadd.f32 %v6701_v4, %v3281_v6  ;;  %v7483_v10 = vpop.f32.mrb[37].mxu1  ;;  %v6643_v4 = vld [vmem:[%s8590_s23 + $0x3] ss:$0 sm:$0xff]  ;;  %s8405_s23 = smov 31  }
0x109d   :  { %v8942_v6 = vadd.f32 %v6643_v4, %v8704_v29  ;;  %v4092_v29 = vld [vmem:[%s8952_s26] sm:$0x1]  ;;  %s8962_s29 = sld [smem:[%s9409_s0 + %s8405_s23]]  }
0x109e   :  { %7507 = vmatpush3.msk.msra.mxu0 %vm1276_vm3, %v8174_v8  ;;  %v8403_v8 = vmov 0   ;;  %v4093_v10 = vmul.f32 1.442695, %v4092_v29  ;;  %v4406_v29 = vld [vmem:[%s9023_s7 + $0x8] sm:$0xff]  ;;  %s6552_s23 = sld [smem:[%s9409_s0 + %s8412_s24]]   ;;  %s8420_s24 = smov 42  }
0x109f   :  { %7509 = vmatmul.mubr.msk.f32.vlgmr.msra.gmra.mrb[36].mxu0 %vm1272_vm4, %v8598_v15  ;;  %7516 = vmatprep.subr.mxu0 %v8374_v0 }
0x10a0   :  { %7518 = vmatprep.mubr.msk.f32.mxu0 %vm8376_vm0, %v8374_v0  ;;  %8282 = vset.pattern.permute.xlu0 %v8403_v8 }
0x10a1   :  { %8283 = vset.pattern.permute.xlu1 %v8403_v8  ;;  %v4405_v8 = vld [vmem:[%s9023_s7] sm:$0xff] }
0x10a3   :  { %v6756_v52 = vld [vmem:[%s8962_s29 + $0x20] sm:$0xff] }
0x1157   :  { %v8891_v11 = vpop.f32.mrb[30].mxu0 }
0x1158   :  { %v7450_v22 = vpop.f32.mrb[31].mxu0 }
0x1159   :  { %v4097_v22 = vlaneseq }
0x115f   :  { %v3364_v13 = vpop.f32.mrb[32].mxu0 }
0x1160   :  { %v3365_v14 = vadd.f32 %v6713_v12, %v3364_v13  ;;  %v7494_v16 = vpop.f32.mrb[33].mxu0  ;;  %v4098_v12 = vshrl.u32 %v4097_v22, 7 }
0x1162   :  { %7512 = vmatpush3.xpose.msk.msra.mxu1 %vm304_vm2, %v3365_v14  ;;  %v8956_v13 = vsub.s32 0, %v4098_v12  ;;  %v4407_v12 = vld [vmem:[%s9023_s7 + $0x10] sm:$0xff] }
0x1163   :  { %7521 = vmatprep.subr.mxu1 %v8374_v0 }
0x1167   :  { %v3447_v18 = vpop.f32.mrb[34].mxu0 }
0x1168   :  { %v3448_v15 = vadd.f32 %v6720_v17, %v3447_v18  ;;  %v7505_v19 = vpop.f32.mrb[35].mxu0  ;;  %v4008_v17 = vld [vmem:[%s8962_s29] sm:$0xff]  ;;  %v4009_v18 = vld [vmem:[%s8962_s29 + $0x8] sm:$0xff] }
0x1169   :  { %v4010_v19 = vld [vmem:[%s8962_s29 + $0x10] sm:$0xff] }
0x116a   :  { %7517 = vmatpush3.msra.mxu0 %v3448_v15  ;;  %v8006_v15 = vpack.c.bf16 %v4009_v18, %v4008_v17  ;;  %v6766_v18 = vld [vmem:[%s9023_s7 + $0x20] sm:$0xff] }
0x116b   :  { %7987 = vmatprep.subr.bf16.mxu0 %v8379_v3 }
0x1172   :  { %v3520_v20 = vpop.f32.mrb[36].mxu0 }
0x1173   :  { %v3524_v21 = vmul.f32 %v3520_v20, %v8614_v23  ;;  %v7510_v24 = vpop.f32.mrb[37].mxu0  ;;  %v4011_v20 = vld [vmem:[%s8962_s29 + $0x18] sm:$0xff] }
0x1174   :  { %v8009_v25 = vpack.c.bf16 %v4011_v20, %v4010_v19  ;;  %v6768_v20 = vld [vmem:[%s9023_s7 + $0x30] sm:$0xff] }
0x1175   :  { %7514 = vmatmul.mubr.msk.f32.vlgmr.msra.gmra.mrb[38].mxu1 %vm304_vm2, %v3524_v21 }
0x1176   :  { %7523 = vmatprep.mubr.msk.f32.mxu1 %vm8376_vm0, %v8374_v0 }
0x1248   :  { %v3597_v26 = vpop.f32.mrb[38].mxu1 }
0x1249   :  { %v3601_v28 = vmul.f32 0.35355338, %v3597_v26  ;;  %v7515_v30 = vpop.f32.mrb[39].mxu1  ;;  %v6736_v26 = vld [vmem:[%s8975_s3] ss:$0 sm:$0xff] }
0x124b   :  { %v3603_v31 = vsel %vm3602_vm7, %v3601_v28, -1e+30 }
0x124c   :  { %v3604_v32 = vsel %vm216_vm1, %v3603_v31, -inf }
0x124d   :  { %3605 = vmax.xlane.f32.xlu0 %v3604_v32  ;;  %v6745_v32 = vld [vmem:[%s8917_s20 + $0x40] sm:$0xff] }
0x12da   :  { %v3606_v33 = vpop.xlane.xlu0 %3605 }
0x12db   :  { %v3607_v34 = vsub.f32 %v3603_v31, %v3606_v33  ;;  %v6746_v33 = vld [vmem:[%s8917_s20 + $0x48] sm:$0xff] }
0x12dd   :  { %v3608_v35 = vmul.f32 1.442695, %v3607_v34  ;;  %v8012_v34 = vpack.c.bf16 %v6746_v33, %v6745_v32  ;;  %v4569_v32 = vld [vmem:[%s9052_s18 + $0x18] sm:$0xff] }
0x12df   :  { %8298 = vpow2.f32 %v3608_v35  ;;  %v6747_v35 = vld [vmem:[%s8917_s20 + $0x50] sm:$0xff] }
0x12e9   :  { %v8299_v36 = vpop.eup %8298 }
0x12ea   :  { %v3610_v37 = vsel %vm216_vm1, %v8299_v36, 0.0 }
0x12eb   :  { %3611 = vadd.xlane.f32.xlu1 %v3610_v37 }
0x1378   :  { %v3612_v38 = vpop.xlane.xlu1 %3611 }
0x1379   :  { %8300 = vrcp.f32 %v3612_v38 }
0x137a   :  { %8302 = vpow2.f32 %v4093_v10  ;;  %v8030_v10 = vpack.c.bf16 %v4406_v29, %v4405_v8 }
0x1383   :  { %v8301_v39 = vpop.eup %8300 }
0x1384   :  { %v3614_v40 = vmul.f32 %v8301_v39, %v8299_v36  ;;  %v8303_v14 = vpop.eup %8302  ;;  %v6748_v36 = vld [vmem:[%s8917_s20 + $0x58] sm:$0xff]  ;;  %v6751_v39 = vld [vmem:[%s8917_s20 + $0x60] sm:$0xff] }
0x1385   :  { %v4100_v16 = vrot.slane %v8303_v14, %v8956_v13  ;;  %v8015_v38 = vpack.c.bf16 %v6748_v36, %v6747_v35  ;;  %v4408_v14 = vld [vmem:[%s9023_s7 + $0x18] sm:$0xff] }
0x1386   :  { %7519 = vmatmul.mubr.msk.f32.vlgmr.msra.gmra.mrb[38].mxu0 %vm216_vm1, %v3614_v40  ;;  %v6752_v40 = vld [vmem:[%s8917_s20 + $0x68] sm:$0xff]  ;;  %v8033_v17 = vpack.c.bf16 %v4408_v14, %v4407_v12 }
0x1387   :  { %7534 = vmatprep.mubr.msk.f32.mxu0 %vm8376_vm0, %v8374_v0  ;;  %7989 = vmatpush3.bf16.msra.mxu0 %v7988_v47  ;;  %v8018_v44 = vpack.c.bf16 %v6752_v40, %v6751_v39  ;;  %v8021_v47 = vpack.c.bf16 %v6754_v46, %v6753_v45 }
0x1388   :  { %7990 = vmatprep.subr.bf16.mxu0 %v8379_v3  ;;  %4102 = vperm.xlu0 %8282, %v4100_v16  }
0x138b   :  { %7992 = vmatpush3.bf16.msra.mxu0 %v7991_v50 }
0x138c   :  { %8005 = vmatprep.subr.bf16.mxu0 %v8379_v3 }
0x1407   :  { %v4103_v39 = vpop.permute.xlu0 %4102 }
0x1459   :  { %v3684_v27 = vpop.f32.mrb[38].mxu0 }
0x145a   :  { %v3688_v53 = vmul.f32 %v3684_v27, %v8614_v23  ;;  %v7520_v55 = vpop.f32.mrb[39].mxu0  ;;  %v6737_v23 = vld [vmem:[%s8917_s20 + $0x20] sm:$0xff]  ;;  %v6757_v27 = vld [vmem:[%s8962_s29 + $0x28] sm:$0xff] }
0x145b   :  { %v8000_v62 = vpack.c.bf16 %v6738_v61, %v6737_v23  ;;  %v8024_v55 = vpack.c.bf16 %v6757_v27, %v6756_v52  ;;  %v6742_v23 = vld [vmem:[%s9015_s10] ss:$0 sm:$0xff]  ;;  %v6775_v27 = vld [vmem:[%s9023_s7 + $0x48] sm:$0xff] }
0x145c   :  { %7522 = vmatpush3.msra.mxu1 %v3688_v53  ;;  %v6758_v53 = vld [vmem:[%s8962_s29 + $0x30] sm:$0xff]  ;;  %v6774_v52 = vld [vmem:[%s9023_s7 + $0x40] sm:$0xff] }
0x145d   :  { %7993 = vmatprep.subr.bf16.mxu1 %v8379_v3  ;;  %7524 = vmatmul.mubr.msk.f32.vlgmr.msra.gmra.mrb[40].mxu1 %vm216_vm1, %v8654_v56  ;;  %v8003_v56 = vpack.c.bf16 %v6740_v1, %v6739_v63  ;;  %v6750_v1 = vld [vmem:[%s8975_s3 + $0x1] ss:$0 sm:$0xff] }
0x145e   :  { %7995 = vmatpush3.bf16.msra.mxu1 %v7994_v57  ;;  %7545 = vmatprep.mubr.msk.f32.mxu1 %vm8376_vm0, %v8374_v0  ;;  %v6759_v57 = vld [vmem:[%s8962_s29 + $0x38] sm:$0xff] }
0x145f   :  { %7996 = vmatprep.subr.bf16.mxu1 %v8379_v3  ;;  %v8027_v58 = vpack.c.bf16 %v6759_v57, %v6758_v53  ;;  %v8048_v53 = vpack.c.bf16 %v6775_v27, %v6774_v52  ;;  %v6777_v57 = vld [vmem:[%s9023_s7 + $0x58] sm:$0xff]  ;;  %v6798_v52 = vld [vmem:[%s9119_s8 + $0x30] sm:$0xff] }
0x1460   :  { %v6799_v27 = vld [vmem:[%s9119_s8 + $0x38] sm:$0xff] }
0x1462   :  { %7998 = vmatpush3.bf16.msra.mxu1 %v7997_v60 }
0x1463   :  { %7999 = vmatprep.subr.bf16.mxu1 %v8379_v3 }
0x1465   :  { %7546 = vmatmul.mubr.msk.f32.vlgmr.msra.gmra.mrb[42].mxu1 %vm304_vm2, %v8537_v41 }
0x1466   :  { %8001 = vmatpush3.bf16.msra.mxu1 %v8000_v62  ;;  %7556 = vmatprep.mubr.msk.f32.mxu1 %vm8376_vm0, %v8374_v0 }
0x1467   :  { %8002 = vmatprep.subr.bf16.mxu1 %v8379_v3 }
0x146a   :  { %8004 = vmatpush3.bf16.msra.mxu1 %v8003_v56 }
0x146b   :  { %8023 = vmatprep.subr.bf16.mxu1 %v8379_v3 }
0x146d   :  { %7557 = vmatmul.mubr.msk.f32.vlgmr.msra.gmra.mrb[42].mxu1 %vm304_vm2, %v8942_v6 }
0x146e   :  { %7600 = vmatprep.mubr.msk.f32.mxu1 %vm8376_vm0, %v8374_v0  ;;  %8025 = vmatpush3.bf16.msra.mxu1 %v8024_v55  ;;  %v6776_v55 = vld [vmem:[%s9023_s7 + $0x50] sm:$0xff] }
0x146f   :  { %8026 = vmatprep.subr.bf16.mxu1 %v8379_v3 }
0x1472   :  { %8028 = vmatpush3.bf16.msra.mxu1 %v8027_v58 }
0x1473   :  { %8029 = vmatprep.subr.bf16.mxu1 %v8379_v3 }
0x1530   :  { %v3755_v21 = vpop.f32.mrb[40].mxu1 }
0x1531   :  { %v7525_v24 = vpop.f32.mrb[41].mxu1  ;;  %7535 = vmatmul.mubr.msk.f32.vlgmr.msra.gmra.mrb[40].mxu0 %vm304_vm2, %v3755_v21  ;;  %v6769_v21 = vld [vmem:[%s9023_s7 + $0x38] sm:$0xff] }
0x1532   :  { %8007 = vmatpush3.bf16.msra.mxu0 %v8006_v15  ;;  %7567 = vmatprep.mubr.msk.f32.mxu0 %vm8376_vm0, %v8374_v0  ;;  %v6767_v15 = vld [vmem:[%s9023_s7 + $0x28] sm:$0xff]  ;;  %v8039_v24 = vpack.c.bf16 %v6769_v21, %v6768_v20  ;;  %v6785_v21 = vld [vmem:[%s9052_s18 + $0x20] sm:$0xff] }
0x1533   :  { %8008 = vmatprep.subr.bf16.mxu0 %v8379_v3  ;;  %v8036_v19 = vpack.c.bf16 %v6767_v15, %v6766_v18 }
0x1536   :  { %8010 = vmatpush3.bf16.msra.mxu0 %v8009_v25  ;;  %v6668_v25 = vld [vmem:[%s8682_s21 + $0x3] ss:$0 sm:$0xff]  ;;  %s8411_s21 = smov 35  }
0x1537   :  { %8011 = vmatprep.subr.bf16.mxu0 %v8379_v3  ;;  %s9065_s22 = sld [smem:[%s9409_s0 + %s8411_s21]]   ;;  %s8419_s21 = smov 6  }
0x1540   :  { %v4002_v28 = vpop.f32.mrb[42].mxu1 }
0x1541   :  { %v8175_v30 = vadd.f32 %v6736_v26, %v4002_v28  ;;  %v7558_v31 = vpop.f32.mrb[43].mxu1  ;;  %v2317_v26 = vadd.f32 %v6668_v25, %v8787_v42  ;;  %v4566_v28 = vld [vmem:[%s9052_s18] sm:$0xff]  ;;  %v4567_v42 = vld [vmem:[%s9052_s18 + $0x8] sm:$0xff]  ;;  %v6787_v25 = vld [vmem:[%s9052_s18 + $0x30] sm:$0xff] }
0x1542   :  { %v8042_v31 = vpack.c.bf16 %v4567_v42, %v4566_v28  ;;  %v6788_v28 = vld [vmem:[%s9052_s18 + $0x38] sm:$0xff] }
0x1543   :  { %8304 = vtanh.f32 %v8175_v30  ;;  %v4568_v30 = vld [vmem:[%s9052_s18 + $0x10] sm:$0xff]  ;;  %v8063_v42 = vpack.c.bf16 %v6788_v28, %v6787_v25 }
0x1544   :  { %v8045_v33 = vpack.c.bf16 %v4569_v32, %v4568_v30  ;;  %v6771_v30 = vld [vmem:[%s9108_s30] ss:$0 sm:$0xff] }
0x154d   :  { %v8305_v37 = vpop.eup %8304 }
0x154e   :  { %7568 = vmatmul.mubr.msk.f32.vlgmr.msra.gmra.mrb[42].mxu0 %vm304_vm2, %v8305_v37 }
0x154f   :  { %8013 = vmatpush3.bf16.msra.mxu0 %v8012_v34  ;;  %7578 = vmatprep.mubr.msk.f32.mxu0 %vm8376_vm0, %v8374_v0  ;;  %v6761_v34 = vld [vmem:[%s9015_s10 + $0x1] ss:$0 sm:$0xff] }
0x1550   :  { %8014 = vmatprep.subr.bf16.mxu0 %v8379_v3 }
0x1553   :  { %8016 = vmatpush3.bf16.msra.mxu0 %v8015_v38 }
0x1554   :  { %8017 = vmatprep.subr.bf16.mxu0 %v8379_v3 }
0x1556   :  { %7579 = vmatmul.mubr.msk.f32.vlgmr.msra.gmra.mrb[44].mxu0 %vm304_vm2, %v8537_v41  ;;  %v6763_v41 = vld [vmem:[%s8952_s26 + $0x1] sm:$0x1] }
0x1557   :  { %8019 = vmatpush3.bf16.msra.mxu0 %v8018_v44  ;;  %7589 = vmatprep.mubr.msk.f32.mxu0 %vm8376_vm0, %v8374_v0  ;;  %v4364_v49 = vmul.f32 1.442695, %v6763_v41 }
0x1558   :  { %8020 = vmatprep.subr.bf16.mxu0 %v8379_v3 }
0x1559   :  { %8306 = vpow2.f32 %v4364_v49 }
0x155b   :  { %8022 = vmatpush3.bf16.msra.mxu0 %v8021_v47  ;;  %v6765_v47 = vld [vmem:[%s9065_s22] ss:$0 sm:$0xff] }
0x155c   :  { %8041 = vmatprep.subr.bf16.mxu0 %v8379_v3 }
0x155e   :  { %7590 = vmatmul.mubr.msk.f32.vlgmr.msra.gmra.mrb[44].mxu0 %vm304_vm2, %v8942_v6 }
0x155f   :  { %7633 = vmatprep.mubr.msk.f32.mxu0 %vm8376_vm0, %v8374_v0  ;;  %8043 = vmatpush3.bf16.msra.mxu0 %v8042_v31 }
0x1560   :  { %8044 = vmatprep.subr.bf16.mxu0 %v8379_v3 }
0x1563   :  { %v8307_v50 = vpop.eup %8306  ;;  %8046 = vmatpush3.bf16.msra.mxu0 %v8045_v33 }
0x1564   :  { %v4371_v51 = vrot.slane %v8307_v50, %v8956_v13  ;;  %8047 = vmatprep.subr.bf16.mxu0 %v8379_v3 }
0x1566   :  { %4373 = vperm.xlu1 %8283, %v4371_v51  }
0x15e5   :  { %v4374_v44 = vpop.permute.xlu1 %4373 }
0x1604   :  { %v9010_v59 = vpop.f32.mrb[40].mxu0 }
0x1605   :  { %v7536_v60 = vpop.f32.mrb[41].mxu0 }
0x1606   :  { %v8051_v60 = vpack.c.bf16 %v6777_v57, %v6776_v55  ;;  %v6801_v55 = vld [vmem:[%s9119_s8 + $0x40] sm:$0xff]  ;;  %v6802_v57 = vld [vmem:[%s9119_s8 + $0x48] sm:$0xff] }
0x1621   :  { %v4088_v61 = vpop.f32.mrb[42].mxu0 }
0x1622   :  { %v4089_v62 = vadd.f32 %v6742_v23, %v4088_v61  ;;  %v7569_v63 = vpop.f32.mrb[43].mxu0  ;;  %v6780_v23 = vld [vmem:[%s9023_s7 + $0x60] sm:$0xff]  ;;  %v6781_v61 = vld [vmem:[%s9023_s7 + $0x68] sm:$0xff] }
0x1623   :  { %v6782_v63 = vld [vmem:[%s9023_s7 + $0x70] sm:$0xff] }
0x1624   :  { %4107 = vrot.lane.b32.xlu1 %v4089_v62, %s8408_s11 }
0x1631   :  { %v4270_v56 = vpop.f32.mrb[44].mxu0 }
0x1632   :  { %v8176_v4 = vadd.f32 %v6750_v1, %v4270_v56  ;;  %v7591_v6 = vpop.f32.mrb[45].mxu0  ;;  %v6783_v1 = vld [vmem:[%s9023_s7 + $0x78] sm:$0xff] }
0x1633   :  { %v8057_v56 = vpack.c.bf16 %v6783_v1, %v6782_v63  ;;  %v3845_v6 = vld [vmem:[%s6552_s23] sm:$0x3]  ;;  %v5196_v1 = vld [vmem:[%s9161_s12 + $0x8] sm:$0xff]  ;;  %s9237_s23 = sld [smem:[%s9409_s0 + %s8420_s24]]   ;;  %s8427_s24 = smov 48  }
0x1634   :  { %8308 = vtanh.f32 %v8176_v4 }
0x1635   :  { %8310 = vtanh.f32 %v4089_v62  ;;  %v8054_v62 = vpack.c.bf16 %v6781_v61, %v6780_v23  ;;  %v6804_v23 = vld [vmem:[%s9119_s8 + $0x58] sm:$0xff] }
0x163e   :  { %v8309_v16 = vpop.eup %8308 }
0x163f   :  { %7601 = vmatmul.mubr.msk.f32.vlgmr.msra.gmra.mrb[44].mxu1 %vm304_vm2, %v8309_v16  ;;  %v8311_v38 = vpop.eup %8310 }
0x1640   :  { %8031 = vmatpush3.bf16.msra.mxu1 %v8030_v10  ;;  %7611 = vmatprep.mubr.msk.f32.mxu1 %vm8376_vm0, %v8374_v0  ;;  %v4105_v45 = vmul.f32 %v8311_v38, %v4103_v39  ;;  %v4958_v38 = vld [vmem:[%s9119_s8] sm:$0xff]  ;;  %v4959_v39 = vld [vmem:[%s9119_s8 + $0x8] sm:$0xff] }
0x1641   :  { %8032 = vmatprep.subr.bf16.mxu1 %v8379_v3 }
0x1642   :  { %v4111_v4 = vmul.f32 1.442695, %v4105_v45 }
0x1644   :  { %8034 = vmatpush3.bf16.msra.mxu1 %v8033_v17 }
0x1645   :  { %8035 = vmatprep.subr.bf16.mxu1 %v8379_v3 }
0x1647   :  { %7612 = vmatmul.mubr.msk.f32.vlgmr.msra.gmra.mrb[46].mxu1 %vm304_vm2, %v8583_v5 }
0x1648   :  { %8037 = vmatpush3.bf16.msra.mxu1 %v8036_v19  ;;  %7622 = vmatprep.mubr.msk.f32.mxu1 %vm8376_vm0, %v8374_v0 }
0x1649   :  { %8038 = vmatprep.subr.bf16.mxu1 %v8379_v3 }
0x164c   :  { %8040 = vmatpush3.bf16.msra.mxu1 %v8039_v24  ;;  %v6786_v24 = vld [vmem:[%s9052_s18 + $0x28] sm:$0xff]  ;;  %s9180_s18 = sld [smem:[%s9409_s0 + %s8418_s15]]  }
0x164d   :  { %8059 = vmatprep.subr.bf16.mxu1 %v8379_v3 }
0x164f   :  { %7623 = vmatmul.mubr.msk.f32.vlgmr.msra.gmra.mrb[46].mxu1 %vm304_vm2, %v2317_v26 }
0x1650   :  { %7666 = vmatprep.mubr.msk.f32.mxu1 %vm8376_vm0, %v8374_v0 }
0x1696   :  { %v4108_v8 = vpop.permute.xlu1 %4107 }
0x1697   :  { %v4110_v29 = vadd.f32 %v4108_v8, %v3845_v6 }
0x1712   :  { %v4358_v35 = vpop.f32.mrb[44].mxu1 }
0x1713   :  { %v4359_v36 = vadd.f32 %v6761_v34, %v4358_v35  ;;  %v7602_v37 = vpop.f32.mrb[45].mxu1  ;;  %v6779_v34 = vld [vmem:[%s9065_s22 + $0x1] ss:$0 sm:$0xff]  ;;  %s9221_s22 = sld [smem:[%s9409_s0 + %s8419_s21]]  }
0x1715   :  { %8312 = vtanh.f32 %v4359_v36  ;;  %4378 = vrot.lane.b32.xlu1 %v4359_v36, %s8408_s11 }
0x171f   :  { %v8313_v40 = vpop.eup %8312 }
0x1720   :  { %v4376_v46 = vmul.f32 %v8313_v40, %v4374_v44  ;;  %v8066_v40 = vpack.c.bf16 %v4959_v39, %v4958_v38  ;;  %v4960_v44 = vld [vmem:[%s9119_s8 + $0x10] sm:$0xff] }
0x1721   :  { %v6811_v39 = vld [vmem:[%s9119_s8 + $0x70] sm:$0xff] }
0x1722   :  { %v4560_v41 = vpop.f32.mrb[46].mxu1  ;;  %v9068_v49 = vadd.f32 %v4376_v46, %v4105_v45  ;;  %v4961_v45 = vld [vmem:[%s9119_s8 + $0x18] sm:$0xff] }
0x1723   :  { %v8177_v50 = vadd.f32 %v6765_v47, %v4560_v41  ;;  %v7624_v51 = vpop.f32.mrb[47].mxu1  ;;  %v8069_v47 = vpack.c.bf16 %v4961_v45, %v4960_v44  ;;  %v6796_v41 = vld [vmem:[%s9119_s8 + $0x20] sm:$0xff] }
0x1725   :  { %8314 = vtanh.f32 %v8177_v50  ;;  %v6797_v50 = vld [vmem:[%s9119_s8 + $0x28] sm:$0xff] }
0x1726   :  { %8316 = vpow2.f32 %v4111_v4  ;;  %v8072_v51 = vpack.c.bf16 %v6797_v50, %v6796_v41  ;;  %v6817_v50 = vld [vmem:[%s9119_s8 + $0x90] sm:$0xff] }
0x172f   :  { %v8315_v58 = vpop.eup %8314 }
0x1730   :  { %7634 = vmatmul.mubr.msk.f32.vlgmr.msra.gmra.mrb[46].mxu0 %vm304_vm2, %v8315_v58  ;;  %v8317_v10 = vpop.eup %8316  ;;  %v8078_v58 = vpack.c.bf16 %v6802_v57, %v6801_v55  ;;  %v6822_v57 = vld [vmem:[%s9119_s8 + $0xb0] sm:$0xff] }
0x1731   :  { %8049 = vmatpush3.bf16.msra.mxu0 %v8048_v53  ;;  %7644 = vmatprep.mubr.msk.f32.mxu0 %vm8376_vm0, %v8374_v0  ;;  %v4113_v12 = vmul.f32 %v8317_v10, %v4110_v29  ;;  %v8075_v53 = vpack.c.bf16 %v6799_v27, %v6798_v52  ;;  %v6820_v27 = vld [vmem:[%s9119_s8 + $0xa0] sm:$0xff] }
0x1732   :  { %8050 = vmatprep.subr.bf16.mxu0 %v8379_v3 }
0x1735   :  { %8052 = vmatpush3.bf16.msra.mxu0 %v8051_v60  ;;  %v6803_v60 = vld [vmem:[%s9119_s8 + $0x50] sm:$0xff] }
0x1736   :  { %8053 = vmatprep.subr.bf16.mxu0 %v8379_v3  ;;  %v8081_v61 = vpack.c.bf16 %v6804_v23, %v6803_v60  ;;  %v4403_v23 = vld [vmem:[%s9221_s22] sm:$0x3] }
0x1738   :  { %7645 = vmatmul.mubr.msk.f32.vlgmr.msra.gmra.mrb[48].mxu0 %vm304_vm2, %v8583_v5  ;;  %v4382_v5 = vmul.f32 1.442695, %v4376_v46 }
0x1739   :  { %8055 = vmatpush3.bf16.msra.mxu0 %v8054_v62  ;;  %7655 = vmatprep.mubr.msk.f32.mxu0 %vm8376_vm0, %v8374_v0  ;;  %v6698_v62 = vld [vmem:[%s8765_s4 + $0x3] ss:$0 sm:$0xff]  ;;  %s8417_s4 = smov 38  }
0x173a   :  { %8056 = vmatprep.subr.bf16.mxu0 %v8379_v3  ;;  %8318 = vpow2.f32 %v4382_v5  ;;  %v9151_v63 = vadd.f32 %v6698_v62, %v8891_v11  ;;  %v5195_v11 = vld [vmem:[%s9161_s12] sm:$0xff]  ;;  %v5198_v5 = vld [vmem:[%s9161_s12 + $0x18] sm:$0xff]  ;;  %s6587_s7 = sld [smem:[%s9409_s0 + %s8417_s4]]  }
0x173b   :  { %v8084_v4 = vpack.c.bf16 %v5196_v1, %v5195_v11 }
0x173d   :  { %8058 = vmatpush3.bf16.msra.mxu0 %v8057_v56  ;;  %v5197_v56 = vld [vmem:[%s9161_s12 + $0x10] sm:$0xff] }
0x173e   :  { %8083 = vmatprep.subr.bf16.mxu0 %v8379_v3  ;;  %v8087_v6 = vpack.c.bf16 %v5198_v5, %v5197_v56 }
0x1740   :  { %7656 = vmatmul.mubr.msk.f32.vlgmr.msra.gmra.mrb[48].mxu0 %vm304_vm2, %v2317_v26  ;;  %v8060_v26 = vpack.c.bf16 %v6786_v24, %v6785_v21  ;;  %v4650_v8 = vld [vmem:[%s6587_s7] sm:$0x1]  ;;  %v6792_v29 = vld [vmem:[%s6587_s7 + $0x1] sm:$0x1]  ;;  %s8425_s7 = smov 7  }
0x1741   :  { %7710 = vmatprep.mubr.msk.f32.mxu0 %vm8376_vm0, %v8374_v0  ;;  %8085 = vmatpush3.bf16.msra.mxu0 %v8084_v4  ;;  %v4651_v10 = vmul.f32 1.442695, %v4650_v8  ;;  %s6556_s5 = sld [smem:[%s9409_s0 + %s8425_s7]]  }
0x1742   :  { %8061 = vmatpush3.bf16.msra.mxu1 %v8060_v26  ;;  %8086 = vmatprep.subr.bf16.mxu0 %v8379_v3 }
0x1743   :  { %8062 = vmatprep.subr.bf16.mxu1 %v8379_v3 }
0x1744   :  { %v8319_v17 = vpop.eup %8318 }
0x1745   :  { %8088 = vmatpush3.bf16.msra.mxu0 %v8087_v6 }
0x1746   :  { %8064 = vmatpush3.bf16.msra.mxu1 %v8063_v42  ;;  %8089 = vmatprep.subr.bf16.mxu0 %v8379_v3 }
0x1747   :  { %8065 = vmatprep.subr.bf16.mxu1 %v8379_v3 }
0x1787   :  { %v4379_v14 = vpop.permute.xlu1 %4378 }
0x1788   :  { %v4381_v16 = vadd.f32 %v4379_v14, %v4113_v12  ;;  %v4919_v12 = vmul.f32 1.442695, %v6792_v29  ;;  %v6790_v14 = vld [vmem:[%s9108_s30 + $0x1] ss:$0 sm:$0xff]  ;;  %s9248_s30 = sld [smem:[%s9409_s0 + %s8421_s27]]  }
0x178a   :  { %v4384_v18 = vmul.f32 %v8319_v17, %v4381_v16 }
0x178c   :  { %v4386_v15 = vmul.f32 0.5, %v4384_v18 }
0x178e   :  { %v9095_v19 = vmul.f32 %v4386_v15, %v4384_v18 }
0x1790   :  { %v4388_v20 = vsub.f32 %v9095_v19, %v9068_v49 }
0x1803   :  { %v4646_v31 = vpop.f32.mrb[46].mxu0 }
0x1804   :  { %v9111_v32 = vadd.f32 %v6771_v30, %v4646_v31  ;;  %v7635_v33 = vpop.f32.mrb[47].mxu0 }
0x1806   :  { %4662 = vrot.lane.b32.xlu1 %v9111_v32, %s8414_s1 }
0x1813   :  { %v4825_v35 = vpop.f32.mrb[48].mxu0 }
0x1814   :  { %v8178_v36 = vadd.f32 %v6779_v34, %v4825_v35  ;;  %v7657_v37 = vpop.f32.mrb[49].mxu0 }
0x1815   :  { %v6810_v37 = vld [vmem:[%s9119_s8 + $0x68] sm:$0xff] }
0x1816   :  { %8320 = vtanh.f32 %v8178_v36  ;;  %v6809_v36 = vld [vmem:[%s9119_s8 + $0x60] sm:$0xff] }
0x1817   :  { %8322 = vpow2.f32 %v4651_v10  ;;  %v8090_v38 = vpack.c.bf16 %v6810_v37, %v6809_v36  ;;  %v6825_v10 = vld [vmem:[%s9161_s12 + $0x20] sm:$0xff]  ;;  %v5665_v36 = vld [vmem:[%s9248_s30 + $0x18] sm:$0xff] }
0x1818   :  { %8324 = vpow2.f32 %v4919_v12  ;;  %v6826_v12 = vld [vmem:[%s9161_s12 + $0x28] sm:$0xff] }
0x1819   :  { %8326 = vtanh.f32 %v9111_v32  ;;  %v6795_v32 = vld [vmem:[%s9180_s18] ss:$0 sm:$0xff] }
0x1820   :  { %v8321_v46 = vpop.eup %8320 }
0x1821   :  { %7667 = vmatmul.mubr.msk.f32.vlgmr.msra.gmra.mrb[48].mxu1 %vm304_vm2, %v8321_v46  ;;  %v8323_v15 = vpop.eup %8322  ;;  %v6815_v46 = vld [vmem:[%s9119_s8 + $0x80] sm:$0xff] }
0x1822   :  { %8067 = vmatpush3.bf16.msra.mxu1 %v8066_v40  ;;  %7677 = vmatprep.mubr.msk.f32.mxu1 %vm8376_vm0, %v8374_v0  ;;  %v8325_v21 = vpop.eup %8324  ;;  %v4658_v24 = vrot.slane %v8323_v15, %v8956_v13  ;;  %v6812_v40 = vld [vmem:[%s9119_s8 + $0x78] sm:$0xff]  ;;  %v6806_v15 = vld [vmem:[%s9237_s23] ss:$0 sm:$0xff] }
0x1823   :  { %8068 = vmatprep.subr.bf16.mxu1 %v8379_v3  ;;  %v4926_v25 = vrot.slane %v8325_v21, %v8956_v13  ;;  %v8327_v26 = vpop.eup %8326  ;;  %v8093_v45 = vpack.c.bf16 %v6812_v40, %v6811_v39  ;;  %v6836_v39 = vld [vmem:[%s9248_s30 + $0x20] sm:$0xff]  ;;  %v6837_v40 = vld [vmem:[%s9248_s30 + $0x28] sm:$0xff] }
0x1824   :  { %v4660_v42 = vmul.f32 %v8327_v26, %v4658_v24  ;;  %v6814_v26 = vld [vmem:[%s9180_s18 + $0x1] ss:$0 sm:$0xff]  ;;  %s8426_s18 = smov 43  }
0x1825   :  { %s6592_s20 = sld [smem:[%s9409_s0 + %s8426_s18]]  }
0x1826   :  { %8070 = vmatpush3.bf16.msra.mxu1 %v8069_v47  ;;  %v6816_v47 = vld [vmem:[%s9119_s8 + $0x88] sm:$0xff] }
0x1827   :  { %8071 = vmatprep.subr.bf16.mxu1 %v8379_v3  ;;  %v8096_v41 = vpack.c.bf16 %v6816_v47, %v6815_v46  ;;  %v6839_v46 = vld [vmem:[%s9248_s30 + $0x38] sm:$0xff] }
0x1829   :  { %7678 = vmatmul.mubr.msk.f32.vlgmr.msra.gmra.mrb[50].mxu1 %vm304_vm2, %v8544_v43 }
0x182a   :  { %8073 = vmatpush3.bf16.msra.mxu1 %v8072_v51  ;;  %7688 = vmatprep.mubr.msk.f32.mxu1 %vm8376_vm0, %v8374_v0  ;;  %v6818_v51 = vld [vmem:[%s9119_s8 + $0x98] sm:$0xff] }
0x182b   :  { %8074 = vmatprep.subr.bf16.mxu1 %v8379_v3  ;;  %v8099_v52 = vpack.c.bf16 %v6818_v51, %v6817_v50  ;;  %v6842_v50 = vld [vmem:[%s9248_s30 + $0x48] sm:$0xff] }
0x182e   :  { %8076 = vmatpush3.bf16.msra.mxu1 %v8075_v53  ;;  %v6821_v53 = vld [vmem:[%s9119_s8 + $0xa8] sm:$0xff] }
0x182f   :  { %8077 = vmatprep.subr.bf16.mxu1 %v8379_v3  ;;  %v8102_v55 = vpack.c.bf16 %v6821_v53, %v6820_v27  ;;  %v6844_v27 = vld [vmem:[%s9248_s30 + $0x58] sm:$0xff] }
0x1831   :  { %7689 = vmatmul.mubr.msk.f32.vlgmr.msra.gmra.mrb[50].mxu1 %vm304_vm2, %v8585_v7 }
0x1832   :  { %8079 = vmatpush3.bf16.msra.mxu1 %v8078_v58  ;;  %7699 = vmatprep.mubr.msk.f32.mxu1 %vm8376_vm0, %v8374_v0  ;;  %v6823_v58 = vld [vmem:[%s9119_s8 + $0xb8] sm:$0xff]  ;;  %s9300_s8 = sld [smem:[%s9409_s0 + %s8422_s2]]  }
0x1833   :  { %8080 = vmatprep.subr.bf16.mxu1 %v8379_v3 }
0x1836   :  { %8082 = vmatpush3.bf16.msra.mxu1 %v8081_v61 }
0x1837   :  { %8107 = vmatprep.subr.bf16.mxu1 %v8379_v3 }
0x1839   :  { %7700 = vmatmul.mubr.msk.f32.vlgmr.msra.gmra.mrb[50].mxu1 %vm304_vm2, %v9151_v63 }
0x183a   :  { %7754 = vmatprep.mubr.msk.f32.mxu1 %vm8376_vm0, %v8374_v0 }
0x1878   :  { %v4663_v61 = vpop.permute.xlu1 %4662 }
0x1879   :  { %v4665_v62 = vadd.f32 %v4663_v61, %v4403_v23  ;;  %v6733_v23 = vld [vmem:[%s8877_s17 + $0x3] ss:$0 sm:$0xff]  ;;  %s8423_s17 = smov 45  }
0x187a   :  { %v9290_v61 = vadd.f32 %v6733_v23, %v9010_v59  ;;  %v5975_v59 = vld [vmem:[%s9300_s8] sm:$0xff]  ;;  %s9313_s11 = sld [smem:[%s9409_s0 + %s8423_s17]]  }
0x18f4   :  { %v4913_v16 = vpop.f32.mrb[48].mxu1 }
0x18f5   :  { %v4914_v17 = vadd.f32 %v6790_v14, %v4913_v16  ;;  %v7668_v18 = vpop.f32.mrb[49].mxu1  ;;  %v6827_v14 = vld [vmem:[%s9161_s12 + $0x30] sm:$0xff]  ;;  %v8108_v16 = vpack.c.bf16 %v6826_v12, %v6825_v10 }
0x18f7   :  { %8328 = vtanh.f32 %v4914_v17  ;;  %4930 = vrot.lane.b32.xlu1 %v4914_v17, %s8414_s1  ;;  %v6828_v17 = vld [vmem:[%s9161_s12 + $0x38] sm:$0xff]  ;;  %8109 = vmatpush3.bf16.msra.mxu1 %v8108_v16  ;;  %v6854_v16 = vld [vmem:[%s9248_s30 + $0x80] sm:$0xff]  ;;  %s8424_s12 = smov 47  }
0x18f8   :  { %v8111_v18 = vpack.c.bf16 %v6828_v17, %v6827_v14  ;;  %8110 = vmatprep.subr.bf16.mxu1 %v8379_v3  ;;  %v6855_v17 = vld [vmem:[%s9248_s30 + $0x88] sm:$0xff]  ;;  %s9365_s14 = sld [smem:[%s9409_s0 + %s8424_s12]]   ;;  %s8428_s12 = smov 49  }
0x18fb   :  { %8112 = vmatpush3.bf16.msra.mxu1 %v8111_v18  ;;  %v8144_v18 = vpack.c.bf16 %v6855_v17, %v6854_v16 }
0x18fc   :  { %8113 = vmatprep.subr.bf16.mxu1 %v8379_v3 }
0x1901   :  { %v8329_v28 = vpop.eup %8328 }
0x1902   :  { %v4928_v30 = vmul.f32 %v8329_v28, %v4926_v25 }
0x1904   :  { %v9182_v31 = vadd.f32 %v4928_v30, %v4660_v42  ;;  %v4934_v60 = vmul.f32 1.442695, %v4928_v30 }
0x190c   :  { %v5189_v33 = vpop.f32.mrb[50].mxu1 }
0x190d   :  { %v8179_v34 = vadd.f32 %v6795_v32, %v5189_v33  ;;  %v7701_v35 = vpop.f32.mrb[51].mxu1  ;;  %v5662_v32 = vld [vmem:[%s9248_s30] sm:$0xff]  ;;  %v5663_v33 = vld [vmem:[%s9248_s30 + $0x8] sm:$0xff] }
0x190e   :  { %v5664_v35 = vld [vmem:[%s9248_s30 + $0x10] sm:$0xff] }
0x190f   :  { %8330 = vtanh.f32 %v8179_v34  ;;  %v8114_v34 = vpack.c.bf16 %v5663_v33, %v5662_v32  ;;  %v6862_v32 = vld [vmem:[%s9248_s30 + $0xb0] sm:$0xff]  ;;  %v6863_v33 = vld [vmem:[%s9248_s30 + $0xb8] sm:$0xff] }
0x1919   :  { %v8331_v44 = vpop.eup %8330 }
0x191a   :  { %7711 = vmatmul.mubr.msk.f32.vlgmr.msra.gmra.mrb[50].mxu0 %vm304_vm2, %v8331_v44  ;;  %v8120_v44 = vpack.c.bf16 %v6837_v40, %v6836_v39  ;;  %v6868_v39 = vld [vmem:[%s9248_s30 + $0xd8] sm:$0xff]  ;;  %v6870_v40 = vld [vmem:[%s9248_s30 + $0xe0] sm:$0xff] }
0x191b   :  { %8091 = vmatpush3.bf16.msra.mxu0 %v8090_v38  ;;  %7721 = vmatprep.mubr.msk.f32.mxu0 %vm8376_vm0, %v8374_v0  ;;  %v8117_v38 = vpack.c.bf16 %v5665_v36, %v5664_v35  ;;  %v6865_v35 = vld [vmem:[%s9248_s30 + $0xc0] sm:$0xff]  ;;  %v6866_v36 = vld [vmem:[%s9248_s30 + $0xc8] sm:$0xff] }
0x191c   :  { %8092 = vmatprep.subr.bf16.mxu0 %v8379_v3 }
0x191f   :  { %8094 = vmatpush3.bf16.msra.mxu0 %v8093_v45  ;;  %v6838_v45 = vld [vmem:[%s9248_s30 + $0x30] sm:$0xff] }
0x1920   :  { %8095 = vmatprep.subr.bf16.mxu0 %v8379_v3  ;;  %v8123_v47 = vpack.c.bf16 %v6839_v46, %v6838_v45  ;;  %v6872_v46 = vld [vmem:[%s9248_s30 + $0xf0] sm:$0xff] }
0x1922   :  { %7722 = vmatmul.mubr.msk.f32.vlgmr.msra.gmra.mrb[52].mxu0 %vm304_vm2, %v8544_v43  ;;  %v8105_v43 = vpack.c.bf16 %v6823_v58, %v6822_v57  ;;  %v6847_v57 = vld [vmem:[%s9248_s30 + $0x68] sm:$0xff] }
0x1923   :  { %8097 = vmatpush3.bf16.msra.mxu0 %v8096_v41  ;;  %7732 = vmatprep.mubr.msk.f32.mxu0 %vm8376_vm0, %v8374_v0  ;;  %v6841_v41 = vld [vmem:[%s9248_s30 + $0x40] sm:$0xff] }
0x1924   :  { %8098 = vmatprep.subr.bf16.mxu0 %v8379_v3  ;;  %v8126_v51 = vpack.c.bf16 %v6842_v50, %v6841_v41  ;;  %v6875_v41 = vld [vmem:[%s9300_s8 + $0x20] sm:$0xff]  ;;  %v6876_v50 = vld [vmem:[%s9300_s8 + $0x28] sm:$0xff] }
0x1927   :  { %8100 = vmatpush3.bf16.msra.mxu0 %v8099_v52  ;;  %v6843_v52 = vld [vmem:[%s9248_s30 + $0x50] sm:$0xff] }
0x1928   :  { %8101 = vmatprep.subr.bf16.mxu0 %v8379_v3  ;;  %v8129_v53 = vpack.c.bf16 %v6844_v27, %v6843_v52  ;;  %v8168_v52 = vpack.c.bf16 %v6876_v50, %v6875_v41  ;;  %v6878_v27 = vld [vmem:[%s9300_s8 + $0x38] sm:$0xff] }
0x192a   :  { %7733 = vmatmul.mubr.msk.f32.vlgmr.msra.gmra.mrb[52].mxu0 %vm304_vm2, %v8585_v7  ;;  %v4666_v7 = vmul.f32 1.442695, %v4660_v42 }
0x192b   :  { %8103 = vmatpush3.bf16.msra.mxu0 %v8102_v55  ;;  %7743 = vmatprep.mubr.msk.f32.mxu0 %vm8376_vm0, %v8374_v0  ;;  %v6846_v55 = vld [vmem:[%s9248_s30 + $0x60] sm:$0xff] }
0x192c   :  { %8104 = vmatprep.subr.bf16.mxu0 %v8379_v3  ;;  %8332 = vpow2.f32 %v4666_v7  ;;  %v8132_v58 = vpack.c.bf16 %v6847_v57, %v6846_v55  ;;  %v6849_v7 = vld [vmem:[%s9248_s30 + $0x78] sm:$0xff] }
0x192d   :  { %8334 = vpow2.f32 %v4934_v60 }
0x192f   :  { %8106 = vmatpush3.bf16.msra.mxu0 %v8105_v43  ;;  %v6848_v43 = vld [vmem:[%s9248_s30 + $0x70] sm:$0xff] }
0x1930   :  { %8137 = vmatprep.subr.bf16.mxu0 %v8379_v3  ;;  %v8135_v60 = vpack.c.bf16 %v6849_v7, %v6848_v43  ;;  %v6851_v43 = vld [vmem:[%s9365_s14] ss:$0 sm:$0xff] }
0x1932   :  { %7744 = vmatmul.mubr.msk.f32.vlgmr.msra.gmra.mrb[52].mxu0 %vm304_vm2, %v9151_v63 }
0x1933   :  { %7809 = vmatprep.mubr.msk.f32.mxu0 %vm8376_vm0, %v8374_v0 }
0x1936   :  { %v8333_v63 = vpop.eup %8332 }
0x1937   :  { %v4668_v11 = vmul.f32 %v8333_v63, %v4665_v62  ;;  %v8335_v4 = vpop.eup %8334  ;;  %v5976_v62 = vld [vmem:[%s9300_s8 + $0x8] sm:$0xff]  ;;  %v5977_v63 = vld [vmem:[%s9300_s8 + $0x10] sm:$0xff] }
0x1969   :  { %v4931_v1 = vpop.permute.xlu1 %4930 }
0x196a   :  { %v4933_v56 = vadd.f32 %v4931_v1, %v4668_v11  ;;  %v8138_v11 = vpack.c.bf16 %v5976_v62, %v5975_v59  ;;  %v5978_v1 = vld [vmem:[%s9300_s8 + $0x18] sm:$0xff] }
0x196c   :  { %v4936_v5 = vmul.f32 %v8335_v4, %v4933_v56  ;;  %8139 = vmatpush3.bf16.msra.mxu0 %v8138_v11  ;;  %v8141_v56 = vpack.c.bf16 %v5978_v1, %v5977_v63  ;;  %v469_v1 = vld [vmem:[%s6556_s5] sm:$0xff] }
0x196d   :  { %8140 = vmatprep.subr.bf16.mxu0 %v8379_v3 }
0x196e   :  { %v4938_v6 = vmul.f32 0.5, %v4936_v5 }
0x1970   :  { %v9224_v8 = vmul.f32 %v4938_v6, %v4936_v5  ;;  %8142 = vmatpush3.bf16.msra.mxu0 %v8141_v56  ;;  %v6835_v6 = vld [vmem:[%s9313_s11] ss:$0 sm:$0xff] }
0x1971   :  { %8143 = vmatprep.subr.bf16.mxu0 %v8379_v3 }
0x1972   :  { %v4940_v29 = vsub.f32 %v9224_v8, %v9182_v31 }
0x19ed   :  { %v5275_v21 = vpop.f32.mrb[50].mxu0 }
0x19ee   :  { %v9240_v24 = vadd.f32 %v6806_v15, %v5275_v21  ;;  %v7712_v25 = vpop.f32.mrb[51].mxu0  ;;  %v6856_v15 = vld [vmem:[%s9248_s30 + $0x90] sm:$0xff]  ;;  %v6857_v21 = vld [vmem:[%s9248_s30 + $0x98] sm:$0xff] }
0x19f0   :  { %5291 = vrot.lane.b32.xlu1 %v9240_v24, %s8414_s1 }
0x1a05   :  { %v5530_v28 = vpop.f32.mrb[52].mxu0 }
0x1a06   :  { %v8180_v42 = vadd.f32 %v6814_v26, %v5530_v28  ;;  %v7745_v30 = vpop.f32.mrb[53].mxu0  ;;  %v8147_v26 = vpack.c.bf16 %v6857_v21, %v6856_v15  ;;  %v6860_v28 = vld [vmem:[%s9248_s30 + $0xa0] sm:$0xff] }
0x1a08   :  { %8336 = vtanh.f32 %v8180_v42  ;;  %v6861_v42 = vld [vmem:[%s9248_s30 + $0xa8] sm:$0xff] }
0x1a09   :  { %v8150_v30 = vpack.c.bf16 %v6861_v42, %v6860_v28  ;;  %v5279_v28 = vld [vmem:[%s6592_s20] sm:$0x1] }
0x1a12   :  { %v8337_v37 = vpop.eup %8336 }
0x1a13   :  { %7755 = vmatmul.mubr.msk.f32.vlgmr.msra.gmra.mrb[52].mxu1 %vm304_vm2, %v8337_v37  ;;  %v8156_v37 = vpack.c.bf16 %v6866_v36, %v6865_v35 }
0x1a14   :  { %8115 = vmatpush3.bf16.msra.mxu1 %v8114_v34  ;;  %7765 = vmatprep.mubr.msk.f32.mxu1 %vm8376_vm0, %v8374_v0  ;;  %v8153_v34 = vpack.c.bf16 %v6863_v33, %v6862_v32  ;;  %v6832_v32 = vld [vmem:[%s6592_s20 + $0x1] sm:$0x1] }
0x1a15   :  { %8116 = vmatprep.subr.bf16.mxu1 %v8379_v3 }
0x1a18   :  { %8118 = vmatpush3.bf16.msra.mxu1 %v8117_v38  ;;  %v6867_v38 = vld [vmem:[%s9248_s30 + $0xd0] sm:$0xff] }
0x1a19   :  { %8119 = vmatprep.subr.bf16.mxu1 %v8379_v3 }
0x1a1b   :  { %7766 = vmatmul.mubr.msk.f32.vlgmr.msra.gmra.mrb[54].mxu1 %vm304_vm2, %v8552_v48 }
0x1a1c   :  { %8121 = vmatpush3.bf16.msra.mxu1 %v8120_v44  ;;  %7776 = vmatprep.mubr.msk.f32.mxu1 %vm8376_vm0, %v8374_v0  ;;  %v6871_v44 = vld [vmem:[%s9248_s30 + $0xe8] sm:$0xff] }
0x1a1d   :  { %8122 = vmatprep.subr.bf16.mxu1 %v8379_v3  ;;  %v8162_v45 = vpack.c.bf16 %v6871_v44, %v6870_v40 }
0x1a20   :  { %8124 = vmatpush3.bf16.msra.mxu1 %v8123_v47  ;;  %v6873_v47 = vld [vmem:[%s9248_s30 + $0xf8] sm:$0xff] }
0x1a21   :  { %8125 = vmatprep.subr.bf16.mxu1 %v8379_v3 }
0x1a23   :  { %7777 = vmatmul.mubr.msk.f32.vlgmr.msra.gmra.mrb[54].mxu1 %vm304_vm2, %v8592_v9 }
0x1a24   :  { %8127 = vmatpush3.bf16.msra.mxu1 %v8126_v51  ;;  %7787 = vmatprep.mubr.msk.f32.mxu1 %vm8376_vm0, %v8374_v0  ;;  %v6877_v51 = vld [vmem:[%s9300_s8 + $0x30] sm:$0xff] }
0x1a25   :  { %8128 = vmatprep.subr.bf16.mxu1 %v8379_v3 }
0x1a28   :  { %8130 = vmatpush3.bf16.msra.mxu1 %v8129_v53  ;;  %v8171_v53 = vpack.c.bf16 %v6878_v27, %v6877_v51  ;;  %v6793_v51 = vld [vmem:[%s9221_s22 + $0x2] sm:$0x3]  ;;  %v6833_v27 = vld [vmem:[%s9221_s22 + $0x4] sm:$0x3] }
0x1a29   :  { %8131 = vmatprep.subr.bf16.mxu1 %v8379_v3 }
0x1a2b   :  { %7788 = vmatmul.mubr.msk.f32.vlgmr.msra.gmra.mrb[54].mxu1 %vm304_vm2, %v8560_v54 }
0x1a2c   :  { %8133 = vmatpush3.bf16.msra.mxu1 %v8132_v58  ;;  %7798 = vmatprep.mubr.msk.f32.mxu1 %vm8376_vm0, %v8374_v0 }
0x1a2d   :  { %8134 = vmatprep.subr.bf16.mxu1 %v8379_v3 }
0x1a30   :  { %8136 = vmatpush3.bf16.msra.mxu1 %v8135_v60 }
0x1a31   :  { %8167 = vmatprep.subr.bf16.mxu1 %v8379_v3 }
0x1a33   :  { %7799 = vmatmul.mubr.msk.f32.vlgmr.msra.gmra.mrb[54].mxu1 %vm304_vm2, %v9290_v61 }
0x1a34   :  { %7864 = vmatprep.mubr.msk.f32.mxu1 %vm8376_vm0, %v8374_v0  ;;  %8169 = vmatpush3.bf16.msra.mxu1 %v8168_v52 }
0x1a35   :  { %8170 = vmatprep.subr.bf16.mxu1 %v8379_v3 }
0x1a38   :  { %8172 = vmatpush3.bf16.msra.mxu1 %v8171_v53 }
0x1a62   :  { %v5292_v52 = vpop.permute.xlu1 %5291 }
0x1a63   :  { %v5294_v53 = vadd.f32 %v6793_v51, %v5292_v52 }
0x1ae6   :  { %v9308_v4 = vpop.f32.mrb[52].mxu1 }
0x1ae7   :  { %v7756_v5 = vpop.f32.mrb[53].mxu1 }
0x1b06   :  { %v5969_v10 = vpop.f32.mrb[54].mxu1 }
0x1b07   :  { %v8181_v12 = vadd.f32 %v6835_v6, %v5969_v10  ;;  %v7800_v14 = vpop.f32.mrb[55].mxu1  ;;  %v478_v6 = vsub.f32 1.0, %v469_v1 }
0x1b09   :  { %8338 = vtanh.f32 %v8181_v12  ;;  %v6859_v12 = vld [vmem:[%s9313_s11 + $0x1] ss:$0 sm:$0xff] }
0x1b13   :  { %v8339_v25 = vpop.eup %8338 }
0x1b14   :  { %7810 = vmatmul.mubr.msk.f32.vlgmr.msra.gmra.mrb[54].mxu0 %vm304_vm2, %v8339_v25 }
0x1b15   :  { %8145 = vmatpush3.bf16.msra.mxu0 %v8144_v18  ;;  %7820 = vmatprep.mubr.msk.f32.mxu0 %vm8376_vm0, %v8374_v0 }
0x1b16   :  { %8146 = vmatprep.subr.bf16.mxu0 %v8379_v3 }
0x1b19   :  { %8148 = vmatpush3.bf16.msra.mxu0 %v8147_v26 }
0x1b1a   :  { %8149 = vmatprep.subr.bf16.mxu0 %v8379_v3 }
0x1b1c   :  { %7821 = vmatmul.mubr.msk.f32.vlgmr.msra.gmra.mrb[56].mxu0 %vm304_vm2, %v8552_v48  ;;  %v8159_v48 = vpack.c.bf16 %v6868_v39, %v6867_v38 }
0x1b1d   :  { %8151 = vmatpush3.bf16.msra.mxu0 %v8150_v30  ;;  %7831 = vmatprep.mubr.msk.f32.mxu0 %vm8376_vm0, %v8374_v0  ;;  %v5280_v30 = vmul.f32 1.442695, %v5279_v28 }
0x1b1e   :  { %8152 = vmatprep.subr.bf16.mxu0 %v8379_v3 }
0x1b21   :  { %8154 = vmatpush3.bf16.msra.mxu0 %v8153_v34  ;;  %v5624_v34 = vmul.f32 1.442695, %v6832_v32  ;;  %v4942_v32 = vsel %vm4941_vm9, %v4940_v29, 0.0 }
0x1b22   :  { %8155 = vmatprep.subr.bf16.mxu0 %v8379_v3 }
0x1b24   :  { %7832 = vmatmul.mubr.msk.f32.vlgmr.msra.gmra.mrb[56].mxu0 %vm304_vm2, %v8592_v9  ;;  %v8165_v9 = vpack.c.bf16 %v6873_v47, %v6872_v46 }
0x1b25   :  { %8157 = vmatpush3.bf16.msra.mxu0 %v8156_v37  ;;  %7842 = vmatprep.mubr.msk.f32.mxu0 %vm8376_vm0, %v8374_v0 }
0x1b26   :  { %8158 = vmatprep.subr.bf16.mxu0 %v8379_v3 }
0x1b29   :  { %8160 = vmatpush3.bf16.msra.mxu0 %v8159_v48 }
0x1b2a   :  { %8161 = vmatprep.subr.bf16.mxu0 %v8379_v3 }
0x1b2c   :  { %7843 = vmatmul.mubr.msk.f32.vlgmr.msra.gmra.mrb[56].mxu0 %vm304_vm2, %v8560_v54  ;;  %v6603_v54 = vld [vmem:[#allocation2] ss:$0 sm:$0xff] }
0x1b2d   :  { %8163 = vmatpush3.bf16.msra.mxu0 %v8162_v45  ;;  %7853 = vmatprep.mubr.msk.f32.mxu0 %vm8376_vm0, %v8374_v0  ;;  %v460_v0 = vadd.f32 %v6603_v54, %v8581_v2 }
0x1b2e   :  { %8164 = vmatprep.subr.bf16.mxu0 %v8379_v3 }
0x1b2f   :  { %v6605_v55 = vmul.f32 -1.442695, %v460_v0 }
0x1b31   :  { %8166 = vmatpush3.bf16.msra.mxu0 %v8165_v9  ;;  %8340 = vpow2.f32 %v6605_v55 }
0x1b34   :  { %7854 = vmatmul.mubr.msk.f32.vlgmr.msra.gmra.mrb[56].mxu0 %vm304_vm2, %v9290_v61  ;;  %v6830_v61 = vld [vmem:[%s9237_s23 + $0x1] ss:$0 sm:$0xff]  ;;  %s9383_s23 = sld [smem:[%s9409_s0 + %s8427_s24]]  }
0x1b35   :  { %v5619_v2 = vadd.f32 %v6830_v61, %v9308_v4 }
0x1b3a   :  { %v6059_v42 = vld [vmem:[%s9383_s23] sm:$0x1] }
0x1b3b   :  { %v8341_v57 = vpop.eup %8340  ;;  %v6060_v33 = vmul.f32 1.442695, %v6059_v42 }
0x1b3c   :  { %v466_v58 = vadd.f32 1.0, %v8341_v57 }
0x1b3e   :  { %8342 = vrcp.f32 %v466_v58 }
0x1b48   :  { %v8343_v23 = vpop.eup %8342 }
0x1b49   :  { %v473_v59 = vsub.f32 1.0, %v8343_v23 }
0x1b4b   :  { %8344 = vlog2.f32 %v473_v59 }
0x1b4c   :  { %8346 = vlog2.f32 %v8343_v23 }
0x1b55   :  { %v8345_v62 = vpop.eup %8344 }
0x1b56   :  { %v8347_v63 = vpop.eup %8346  ;;  %v475_v11 = vmul.f32 0.6931472, %v8345_v62 }
0x1b57   :  { %v471_v56 = vmul.f32 0.6931472, %v8347_v63 }
0x1b58   :  { %v476_v5 = vmax.f32 %v475_v11, -100.0 }
0x1b59   :  { %v472_v10 = vmax.f32 %v471_v56, -100.0 }
0x1b5a   :  { %v479_v4 = vmul.f32 %v478_v6, %v476_v5 }
0x1b5b   :  { %v477_v16 = vmul.f32 %v472_v10, %v469_v1 }
0x1b5d   :  { %v480_v15 = vadd.f32 %v479_v4, %v477_v16  ;;  %v6882_v4 = vld [vmem:[%s9383_s23 + $0x1] sm:$0x1] }
0x1b5e   :  { %v6880_v16 = vld [vmem:[%s9365_s14 + $0x1] ss:$0 sm:$0xff]  ;;  %s6598_s14 = sld [smem:[%s9409_s0 + %s8428_s12]]  }
0x1b5f   :  { %v481_v21 = vsub.f32 0.0, %v480_v15 }
0x1b61   :  { %v483_v25 = vsel %vm482_vm8, %v481_v21, 0.0 }
0x1be7   :  { %v6055_v7 = vpop.f32.mrb[54].mxu0 }
0x1be8   :  { %v6056_v3 = vadd.f32 %v6851_v43, %v6055_v7  ;;  %v7811_v60 = vpop.f32.mrb[55].mxu0 }
0x1bea   :  { %6071 = vrot.lane.b32.xlu1 %v6056_v3, %s8414_s1 }
0x1bee   :  { %5635 = vrot.lane.b32.xlu1 %v5619_v2, %s8414_s1 }
0x1c07   :  { %v6386_v14 = vpop.f32.mrb[56].mxu0 }
0x1c08   :  { %v8182_v17 = vadd.f32 %v6859_v12, %v6386_v14  ;;  %v7855_v18 = vpop.f32.mrb[57].mxu0  ;;  %v6480_v14 = vmul.f32 1.442695, %v6882_v4 }
0x1c0a   :  { %8348 = vtanh.f32 %v8182_v17 }
0x1c0b   :  { %8350 = vpow2.f32 %v5280_v30  ;;  %v4390_v30 = vsel %vm4389_vm10, %v4388_v20, 0.0 }
0x1c0c   :  { %8352 = vpow2.f32 %v6060_v33 }
0x1c0d   :  { %8354 = vtanh.f32 %v9240_v24 }
0x1c0e   :  { %8356 = vpow2.f32 %v5624_v34 }
0x1c0f   :  { %8358 = vtanh.f32 %v6056_v3 }
0x1c10   :  { %8360 = vtanh.f32 %v5619_v2 }
0x1c12   :  { %484 = vadd.xlane.f32.xlu1 %v483_v25 }
0x1c14   :  { %v8349_v26 = vpop.eup %8348 }
0x1c15   :  { %7865 = vmatmul.mubr.msk.f32.vlgmr.msra.gmra.mrb[56].mxu1 %vm304_vm2, %v8349_v26  ;;  %v8351_v35 = vpop.eup %8350 }
0x1c16   :  { %v8353_v36 = vpop.eup %8352  ;;  %v5287_v38 = vrot.slane %v8351_v35, %v8956_v13 }
0x1c17   :  { %v8355_v37 = vpop.eup %8354  ;;  %v6067_v48 = vrot.slane %v8353_v36, %v8956_v13 }
0x1c18   :  { %v8357_v39 = vpop.eup %8356  ;;  %v5289_v44 = vmul.f32 %v8355_v37, %v5287_v38 }
0x1c19   :  { %v8359_v40 = vpop.eup %8358  ;;  %v5631_v45 = vrot.slane %v8357_v39, %v8956_v13 }
0x1c1a   :  { %v6069_v46 = vmul.f32 %v8359_v40, %v6067_v48  ;;  %v8361_v47 = vpop.eup %8360  ;;  %v5295_v24 = vmul.f32 1.442695, %v5289_v44 }
0x1c1b   :  { %v5633_v9 = vmul.f32 %v8361_v47, %v5631_v45 }
0x1c1c   :  { %v6075_v41 = vmul.f32 1.442695, %v6069_v46  ;;  %8362 = vpow2.f32 %v5295_v24 }
0x1c1d   :  { %v5639_v50 = vmul.f32 1.442695, %v5633_v9  ;;  %v5642_v2 = vadd.f32 %v5633_v9, %v5289_v44 }
0x1c1e   :  { %8364 = vpow2.f32 %v6075_v41 }
0x1c1f   :  { %8366 = vpow2.f32 %v5639_v50 }
0x1c20   :  { %8368 = vpow2.f32 %v6480_v14 }
0x1c26   :  { %v8363_v0 = vpop.eup %8362 }
0x1c27   :  { %v5297_v58 = vmul.f32 %v8363_v0, %v5294_v53 }
0x1c28   :  { %v8365_v57 = vpop.eup %8364 }
0x1c29   :  { %v8367_v60 = vpop.eup %8366 }
0x1c2a   :  { %v8369_v21 = vpop.eup %8368 }
0x1c2b   :  { %v6487_v25 = vrot.slane %v8369_v21, %v8956_v13 }
0x1c5c   :  { %v6072_v54 = vpop.permute.xlu1 %6071 }
0x1c5d   :  { %v6074_v55 = vadd.f32 %v6833_v27, %v6072_v54 }
0x1c5f   :  { %v6077_v43 = vmul.f32 %v8365_v57, %v6074_v55 }
0x1c60   :  { %v5636_v7 = vpop.permute.xlu1 %5635 }
0x1c61   :  { %v5638_v3 = vadd.f32 %v5636_v7, %v5297_v58 }
0x1c63   :  { %v5641_v23 = vmul.f32 %v8367_v60, %v5638_v3 }
0x1c65   :  { %v5643_v61 = vmul.f32 0.5, %v5641_v23 }
0x1c67   :  { %v5644_v59 = vmul.f32 %v5643_v61, %v5641_v23  ;;  %v6520_v23 = vand.u32 127, %v4097_v22 }
0x1c69   :  { %v5645_v62 = vsub.f32 %v5644_v59, %v5642_v2  ;;  %vm6525_vm11 = vcmp.eq.s32.totalorder %v6520_v23, 1  ;;  %vm6521_vm12 = vcmp.eq.s32.totalorder %v6520_v23, 0  ;;  %vm6529_vm13 = vcmp.eq.s32.totalorder %v6520_v23, 2 }
0x1c6a   :  { %vm6533_vm14 = vcmp.eq.s32.totalorder %v6520_v23, 3  ;;  %vm6537_vm15 = vcmp.eq.s32.totalorder %v6520_v23, 4  ;;  %vm6541_vm0 = vcmp.eq.s32.totalorder %v6520_v23, 5 }
0x1c6b   :  { %v5646_v63 = vsel %vm4941_vm9, %v5645_v62, 0.0 }
0x1c6c   :  { %5647 = vadd.xlane.f32.xlu1 %v5646_v63 }
0x1c9f   :  { %v485_v11 = vpop.xlane.xlu1 %484 }
0x1ca0   :  { %v486_v1 = vrot.slane %v485_v11, 4 }
0x1ca2   :  { %v487_v56 = vadd.f32 %v486_v1, %v485_v11 }
0x1ca4   :  { %v488_v5 = vrot.slane %v487_v56, 2 }
0x1ca6   :  { %v489_v6 = vadd.f32 %v488_v5, %v487_v56 }
0x1ca8   :  { %v490_v10 = vrot.slane %v489_v6, 1 }
0x1caa   :  { %v491_v12 = vadd.f32 %v490_v10, %v489_v6 }
0x1cac   :  { %8217 = vpush %v491_v12 }
0x1ce8   :  { %v6474_v17 = vpop.f32.mrb[56].mxu1 }
0x1ce9   :  { %v6475_v18 = vadd.f32 %v6880_v16, %v6474_v17  ;;  %v7866_v15 = vpop.f32.mrb[57].mxu1 }
0x1ceb   :  { %8370 = vtanh.f32 %v6475_v18  ;;  %6491 = vrot.lane.b32.xlu0 %v6475_v18, %s8414_s1  ;;  %s8218_s1 = spop %8217 }
0x1cec   :  { %s495_s9 = smul.f32 0.125, %s8218_s1 }
0x1cee   :  { %v6530_v2 = vstv %s495_s9 }
0x1cef   :  { %v6531_v56 = vsel %vm6529_vm13, %v6530_v2, 0.0 }
0x1cf5   :  { %v8371_v26 = vpop.eup %8370 }
0x1cf6   :  { %v6489_v28 = vmul.f32 %v8371_v26, %v6487_v25 }
0x1cf8   :  { %v6498_v42 = vadd.f32 %v6489_v28, %v6069_v46  ;;  %v6495_v33 = vmul.f32 1.442695, %v6489_v28 }
0x1cf9   :  { %v5648_v49 = vpop.xlane.xlu1 %5647 }
0x1cfa   :  { %8372 = vpow2.f32 %v6495_v33  ;;  %v5649_v19 = vrot.slane %v5648_v49, 4 }
0x1cfc   :  { %v5650_v20 = vadd.f32 %v5649_v19, %v5648_v49 }
0x1cfe   :  { %v5651_v29 = vrot.slane %v5650_v20, 2 }
0x1d00   :  { %v5652_v9 = vadd.f32 %v5651_v29, %v5650_v20 }
0x1d02   :  { %v5653_v27 = vrot.slane %v5652_v9, 1 }
0x1d04   :  { %v8373_v13 = vpop.eup %8372  ;;  %v5654_v0 = vadd.f32 %v5653_v27, %v5652_v9 }
0x1d0a   :  { %4391 = vadd.xlane.f32.xlu0 %v4390_v30 }
0x1d0e   :  { %4943 = vadd.xlane.f32.xlu0 %v4942_v32 }
0x1d5d   :  { %v6492_v34 = vpop.permute.xlu0 %6491 }
0x1d5e   :  { %v6494_v35 = vadd.f32 %v6492_v34, %v6077_v43 }
0x1d60   :  { %v6497_v36 = vmul.f32 %v8373_v13, %v6494_v35 }
0x1d62   :  { %v6499_v37 = vmul.f32 0.5, %v6497_v36 }
0x1d64   :  { %v6500_v38 = vmul.f32 %v6499_v37, %v6497_v36 }
0x1d66   :  { %v6501_v39 = vsub.f32 %v6500_v38, %v6498_v42 }
0x1d68   :  { %v6502_v48 = vsel %vm4941_vm9, %v6501_v39, 0.0 }
0x1d69   :  { %6503 = vadd.xlane.f32.xlu0 %v6502_v48 }
0x1d97   :  { %v4392_v40 = vpop.xlane.xlu0 %4391 }
0x1d98   :  { %v4393_v31 = vrot.slane %v4392_v40, 4 }
0x1d9a   :  { %v4394_v8 = vadd.f32 %v4393_v31, %v4392_v40 }
0x1d9b   :  { %v4944_v44 = vpop.xlane.xlu0 %4943 }
0x1d9c   :  { %v4395_v45 = vrot.slane %v4394_v8, 2  ;;  %v4945_v46 = vrot.slane %v4944_v44, 4 }
0x1d9e   :  { %v4946_v47 = vadd.f32 %v4945_v46, %v4944_v44  ;;  %v4396_v24 = vadd.f32 %v4395_v45, %v4394_v8 }
0x1da0   :  { %v4947_v41 = vrot.slane %v4946_v47, 2  ;;  %v4397_v50 = vrot.slane %v4396_v24, 1 }
0x1da2   :  { %v4398_v51 = vadd.f32 %v4397_v50, %v4396_v24  ;;  %v4948_v52 = vadd.f32 %v4947_v41, %v4946_v47 }
0x1da4   :  { %8219 = vpush %v4398_v51  ;;  %v4949_v53 = vrot.slane %v4948_v52, 1 }
0x1da6   :  { %v4950_v54 = vadd.f32 %v4949_v53, %v4948_v52 }
0x1da8   :  { %8221 = vpush %v4950_v54 }
0x1da9   :  { %8223 = vpush %v5654_v0 }
0x1dd5   :  { %s8220_s22 = spop %8219 }
0x1dd6   :  { %s4402_s29 = smul.f32 0.125, %s8220_s22 }
0x1dd8   :  { %v6526_v61 = vstv %s4402_s29 }
0x1dd9   :  { %s8222_s27 = spop %8221  ;;  %v6527_v62 = vsel %vm6525_vm11, %v6526_v61, 0.0 }
0x1dda   :  { %s4954_s28 = smul.f32 0.5, %s8222_s27  ;;  %s8224_s30 = spop %8223 }
0x1ddb   :  { %s5658_s3 = smul.f32 0.5, %s8224_s30 }
0x1ddc   :  { %s6515_s2 = sadd.f32 %s4954_s28, %s4402_s29  ;;  %v6534_v11 = vstv %s4954_s28 }
0x1ddd   :  { %v6538_v5 = vstv %s5658_s3  ;;  %v6535_v6 = vsel %vm6533_vm14, %v6534_v11, 0.0 }
0x1dde   :  { %s6516_s8 = sadd.f32 %s6515_s2, %s5658_s3  ;;  %v6539_v4 = vsel %vm6537_vm15, %v6538_v5, 0.0 }
0x1df6   :  { %v6504_v55 = vpop.xlane.xlu0 %6503 }
0x1df7   :  { %v6505_v57 = vrot.slane %v6504_v55, 4 }
0x1df9   :  { %v6506_v58 = vadd.f32 %v6505_v57, %v6504_v55 }
0x1dfb   :  { %v6507_v43 = vrot.slane %v6506_v58, 2 }
0x1dfd   :  { %v6508_v7 = vadd.f32 %v6507_v43, %v6506_v58 }
0x1dff   :  { %v6509_v3 = vrot.slane %v6508_v7, 1 }
0x1e01   :  { %v6510_v60 = vadd.f32 %v6509_v3, %v6508_v7 }
0x1e03   :  { %8225 = vpush %v6510_v60 }
0x1e34   :  { %s8226_s6 = spop %8225 }
0x1e35   :  { %s6514_s17 = smul.f32 0.5, %s8226_s6 }
0x1e37   :  { %s6517_s10 = sadd.f32 %s6516_s8, %s6514_s17  ;;  %v6542_v12 = vstv %s6514_s17 }
0x1e38   :  { %v6543_v16 = vsel %vm6541_vm0, %v6542_v12, 0.0 }
0x1e39   :  { %s6518_s11 = sadd.f32 %s6517_s10, %s495_s9 }
0x1e3b   :  { %v6522_v59 = vstv %s6518_s11 }
0x1e3c   :  { %v6523_v63 = vsel %vm6521_vm12, %v6522_v59, 0.0 }
0x1e3d   :  { %v6528_v1 = vadd.f32 %v6527_v62, %v6523_v63 }
0x1e3f   :  { %v6532_v22 = vadd.f32 %v6531_v56, %v6528_v1 }
0x1e41   :  { %v6536_v10 = vadd.f32 %v6535_v6, %v6532_v22 }
0x1e43   :  { %v6540_v14 = vadd.f32 %v6539_v4, %v6536_v10 }
0x1e45   :  { %v6544_v17 = vadd.f32 %v6543_v16, %v6540_v14 }
0x1e47   :  { %6545 = vst [vmem:[%s6598_s14] sm:$0x1] %v6544_v17 }

</bundles_post_ra>
